<compile_context>
chip_gen: v7x
topology: tpu7x:2x2x1
jax: 0.10.0
libtpu: 0.0.40
codegen_flags: <defaults>
</compile_context>

<pallas_src>
import jax
import jax.numpy as jnp
from jax.experimental import pallas as pl
from jax.experimental.pallas import tpu as pltpu


# ----------------------------- fused Pallas kernel -----------------------------

def _arm_fused_kernel(xcol_ref, wconv_ref, cshift_ref, watt_ref, ashift_ref,
                      out_ref):
    """Fused AttentionRefinementModule forward for one block of NB batch elems.

    xcol_ref : (NB, Cin*9, HW) VMEM  im2col patches, lane-dense rows
    wconv_ref: (1, Cout, Cin*9) VMEM 3x3 conv weight with BN scale folded in
    cshift_ref: (1, Cout, 1)   VMEM  folded BN shift of the ConvBNReLU block
    watt_ref : (1, Cout, Cout) VMEM  1x1 attention weight with BN scale folded
    ashift_ref: (1, Cout, 1)   VMEM  folded BN shift of the attention branch
    out_ref  : (NB, Cout, HW)  VMEM  gated feature slab (single store)
    """
    nb, k, hw = xcol_ref.shape
    cout = out_ref.shape[1]
    inv_hw = 1.0 / float(hw)

    # ---- 3x3 conv (stride 1, pad 1, no bias) + folded BN + ReLU ----
    # K = Cin*9 broadcast MACs on the VPU; every operand is lane-dense (HW=256).
    acc = jnp.zeros((nb, cout, hw), jnp.float32)
    for t in range(k):
        acc = acc + wconv_ref[:, :, t:t + 1] * xcol_ref[:, t:t + 1, :]
    feat = jnp.maximum(acc + cshift_ref[...], 0.0)                # (NB, Cout, HW)

    # ---- global average pool (F.avg_pool2d over full spatial extent) ----
    pool = jnp.sum(feat, axis=-1, keepdims=True) * inv_hw         # (NB, Cout, 1)

    # ---- 1x1 attention conv (BN scale folded) + shift + sigmoid ----
    att = jnp.zeros((nb, cout, 1), jnp.float32)
    for c in range(cout):
        att = att + watt_ref[:, :, c:c + 1] * pool[:, c:c + 1, :]
    att = jax.nn.sigmoid(att + ashift_ref[...])                   # (NB, Cout, 1)

    # ---- channel gate, single lane-dense store of the whole slab ----
    out_ref[...] = feat * att


# ----------------------------- wrapper -----------------------------

def attention_refinement_forward(x, params, *, batch_block=None):
    """x: (N, Cin, H, W) float32 -> (N, Cout, H, W) float32."""
    n, cin, h, w = x.shape
    conv_w = params['conv_w']
    cout = conv_w.shape[0]
    hw = h * w
    nb = n if batch_block is None else batch_block
    assert n % nb == 0

    x = x.astype(jnp.float32)

    # im2col (Option A): lane-dense (N, Cin*9, HW) patches. Reads x once, writes
    # ~150 KiB at these sizes; taps become straight contiguous row loads in-kernel.
    xp = jnp.pad(x, ((0, 0), (0, 0), (1, 1), (1, 1)))
    taps = [xp[:, :, kh:kh + h, kw:kw + w] for kh in range(3) for kw in range(3)]
    xcol = jnp.stack(taps, axis=2).reshape(n, cin * 9, hw)

    # Fold inference-mode BN scale into the bias-free conv weights; keep shift.
    wconv = (conv_w.reshape(cout, cin * 9)
             * params['conv_scale'][:, None]).reshape(1, cout, cin * 9)
    cshift = params['conv_shift'].reshape(1, cout, 1)
    watt = (params['att_w'] * params['att_scale'][:, None]).reshape(1, cout, cout)
    ashift = params['att_shift'].reshape(1, cout, 1)

    out = pl.pallas_call(
        _arm_fused_kernel,
        out_shape=jax.ShapeDtypeStruct((n, cout, hw), jnp.float32),
        grid=(n // nb,),
        in_specs=[
            pl.BlockSpec((nb, cin * 9, hw), lambda b: (b, 0, 0)),
            pl.BlockSpec((1, cout, cin * 9), lambda b: (0, 0, 0)),
            pl.BlockSpec((1, cout, 1), lambda b: (0, 0, 0)),
            pl.BlockSpec((1, cout, cout), lambda b: (0, 0, 0)),
            pl.BlockSpec((1, cout, 1), lambda b: (0, 0, 0)),
        ],
        out_specs=pl.BlockSpec((nb, cout, hw), lambda b: (b, 0, 0)),
        # TODO(synk): pltpu.CORE_PARALLEL here (with nb < n) to split the batch
        # across v7x's two TensorCores.
        compiler_params=pltpu.CompilerParams(
            dimension_semantics=("parallel",)),
    )(xcol.astype(jnp.float32), wconv.astype(jnp.float32),
      cshift.astype(jnp.float32), watt.astype(jnp.float32),
      ashift.astype(jnp.float32))

    return out.reshape(n, cout, h, w)


# ----------------------------- pure-JAX reference -----------------------------

def _reference_forward(x, params):
    """Exact f32 reference of the PyTorch module (inference-mode BN)."""
    n, cin, h, w = x.shape
    cw = params['conv_w']
    cout = cw.shape[0]
    xp = jnp.pad(x, ((0, 0), (0, 0), (1, 1), (1, 1)))
    feat = jnp.zeros((n, cout, h, w), jnp.float32)
    for kh in range(3):
        for kw in range(3):
            tap = xp[:, :, kh:kh + h, kw:kw + w]                    # (N, Cin, H, W)
            wk = cw[:, :, kh, kw]                                   # (Cout, Cin)
            feat = feat + jnp.sum(wk[None, :, :, None, None] * tap[:, None],
                                  axis=2)
    feat = feat * params['conv_scale'][None, :, None, None] \
                + params['conv_shift'][None, :, None, None]
    feat = jnp.maximum(feat, 0.0)
    pool = jnp.mean(feat, axis=(2, 3))                              # (N, Cout)
    att = jnp.sum(params['att_w'][None] * pool[:, None, :], axis=-1)  # (N, Cout)
    att = jax.nn.sigmoid(att * params['att_scale'][None, :]
                         + params['att_shift'][None, :])
    return feat * att[:, :, None, None]


# ----------------------------- parameters -----------------------------

def init_params(key, in_chan, out_chan, bn_eps=1e-5):
    ks = jax.random.split(key, 10)
    f32 = jnp.float32
    conv_w = (0.2 * jax.random.normal(ks[0], (out_chan, in_chan, 3, 3))).astype(f32)
    g1 = 1.0 + 0.1 * jax.random.normal(ks[1], (out_chan,))
    b1 = 0.1 * jax.random.normal(ks[2], (out_chan,))
    m1 = 0.1 * jax.random.normal(ks[3], (out_chan,))
    v1 = 1.0 + 0.1 * jnp.abs(jax.random.normal(ks[4], (out_chan,)))
    att_w = (0.2 * jax.random.normal(ks[5], (out_chan, out_chan))).astype(f32)
    g2 = 1.0 + 0.1 * jax.random.normal(ks[6], (out_chan,))
    b2 = 0.1 * jax.random.normal(ks[7], (out_chan,))
    m2 = 0.1 * jax.random.normal(ks[8], (out_chan,))
    v2 = 1.0 + 0.1 * jnp.abs(jax.random.normal(ks[9], (out_chan,)))

    # inference-mode BatchNorm folded into per-channel scale/shift (convs have no bias)
    conv_scale = (g1 / jnp.sqrt(v1 + bn_eps)).astype(f32)
    conv_shift = (b1 - m1 * conv_scale).astype(f32)
    att_scale = (g2 / jnp.sqrt(v2 + bn_eps)).astype(f32)
    att_shift = (b2 - m2 * att_scale).astype(f32)
    return dict(conv_w=conv_w, conv_scale=conv_scale, conv_shift=conv_shift,
                att_w=att_w, att_scale=att_scale, att_shift=att_shift)


# ----------------------------- main -----------------------------

if __name__ == "__main__":
    key = jax.random.PRNGKey(0)
    kx, kp = jax.random.split(key)
    N, Cin, Cout, H, W = 2, 8, 4, 16, 16
    x = jax.random.normal(kx, (N, Cin, H, W), jnp.float32)
    params = init_params(kp, Cin, Cout)

    fwd = jax.jit(attention_refinement_forward)
    out = fwd(x, params)
    jax.block_until_ready(out)

    ref = _reference_forward(x, params)
    assert out.shape == (N, Cout, H, W), out.shape
    assert bool(jnp.all(jnp.isfinite(out)))
    assert bool(jnp.allclose(out, ref, rtol=1e-4, atol=1e-4)), \
        float(jnp.max(jnp.abs(out - ref)))
    print("KERNEL_OK")
</pallas_src>

<mosaic_0001>
module attributes {stable_mosaic.version = 11 : i64} {
  func.func @_arm_fused_kernel(%arg0: i32, %arg1: memref<2x72x256xf32, #tpu.memory_space<vmem>>, %arg2: memref<1x4x72xf32, #tpu.memory_space<vmem>>, %arg3: memref<1x4x1xf32, #tpu.memory_space<vmem>>, %arg4: memref<1x4x4xf32, #tpu.memory_space<vmem>>, %arg5: memref<1x4x1xf32, #tpu.memory_space<vmem>>, %arg6: memref<2x4x256xf32, #tpu.memory_space<vmem>>) attributes {dimension_semantics = [#tpu.dimension_semantics<parallel>], iteration_bounds = array<i64: 1>, scalar_prefetch = 0 : i64, scratch_operands = 0 : i64, tpu.core_type = #tpu.core_type<tc>, window_params = [{transform_indices = @transform_0, window_bounds = array<i64: 2, 72, 256>}, {pipeline_mode = #tpu.pipeline_mode<synchronous>, transform_indices = @transform_1, window_bounds = array<i64: 1, 4, 72>}, {pipeline_mode = #tpu.pipeline_mode<synchronous>, transform_indices = @transform_2, window_bounds = array<i64: 1, 4, 1>}, {pipeline_mode = #tpu.pipeline_mode<synchronous>, transform_indices = @transform_3, window_bounds = array<i64: 1, 4, 4>}, {pipeline_mode = #tpu.pipeline_mode<synchronous>, transform_indices = @transform_4, window_bounds = array<i64: 1, 4, 1>}, {transform_indices = @transform_5, window_bounds = array<i64: 2, 4, 256>}]} {
    %cst = arith.constant 0.000000e+00 : f32
    %0 = vector.broadcast %cst : f32 to vector<2x4x256xf32>
    %c0 = arith.constant 0 : index
    %c0_0 = arith.constant 0 : index
    %c0_1 = arith.constant 0 : index
    %1 = vector.load %arg2[%c0, %c0_0, %c0_1] : memref<1x4x72xf32, #tpu.memory_space<vmem>>, vector<1x4x1xf32>
    %c0_2 = arith.constant 0 : index
    %c0_3 = arith.constant 0 : index
    %c0_4 = arith.constant 0 : index
    %2 = vector.load %arg1[%c0_2, %c0_3, %c0_4] : memref<2x72x256xf32, #tpu.memory_space<vmem>>, vector<2x1x256xf32>
    %3 = vector.broadcast %1 : vector<1x4x1xf32> to vector<2x4x256xf32>
    %4 = vector.broadcast %2 : vector<2x1x256xf32> to vector<2x4x256xf32>
    %5 = arith.mulf %3, %4 : vector<2x4x256xf32>
    %6 = arith.addf %0, %5 : vector<2x4x256xf32>
    %c0_5 = arith.constant 0 : index
    %c0_6 = arith.constant 0 : index
    %c1 = arith.constant 1 : index
    %7 = vector.load %arg2[%c0_5, %c0_6, %c1] : memref<1x4x72xf32, #tpu.memory_space<vmem>>, vector<1x4x1xf32>
    %c0_7 = arith.constant 0 : index
    %c1_8 = arith.constant 1 : index
    %c0_9 = arith.constant 0 : index
    %8 = vector.load %arg1[%c0_7, %c1_8, %c0_9] : memref<2x72x256xf32, #tpu.memory_space<vmem>>, vector<2x1x256xf32>
    %9 = vector.broadcast %7 : vector<1x4x1xf32> to vector<2x4x256xf32>
    %10 = vector.broadcast %8 : vector<2x1x256xf32> to vector<2x4x256xf32>
    %11 = arith.mulf %9, %10 : vector<2x4x256xf32>
    %12 = arith.addf %6, %11 : vector<2x4x256xf32>
    %c0_10 = arith.constant 0 : index
    %c0_11 = arith.constant 0 : index
    %c2 = arith.constant 2 : index
    %13 = vector.load %arg2[%c0_10, %c0_11, %c2] : memref<1x4x72xf32, #tpu.memory_space<vmem>>, vector<1x4x1xf32>
    %c0_12 = arith.constant 0 : index
    %c2_13 = arith.constant 2 : index
    %c0_14 = arith.constant 0 : index
    %14 = vector.load %arg1[%c0_12, %c2_13, %c0_14] : memref<2x72x256xf32, #tpu.memory_space<vmem>>, vector<2x1x256xf32>
    %15 = vector.broadcast %13 : vector<1x4x1xf32> to vector<2x4x256xf32>
    %16 = vector.broadcast %14 : vector<2x1x256xf32> to vector<2x4x256xf32>
    %17 = arith.mulf %15, %16 : vector<2x4x256xf32>
    %18 = arith.addf %12, %17 : vector<2x4x256xf32>
    %c0_15 = arith.constant 0 : index
    %c0_16 = arith.constant 0 : index
    %c3 = arith.constant 3 : index
    %19 = vector.load %arg2[%c0_15, %c0_16, %c3] : memref<1x4x72xf32, #tpu.memory_space<vmem>>, vector<1x4x1xf32>
    %c0_17 = arith.constant 0 : index
    %c3_18 = arith.constant 3 : index
    %c0_19 = arith.constant 0 : index
    %20 = vector.load %arg1[%c0_17, %c3_18, %c0_19] : memref<2x72x256xf32, #tpu.memory_space<vmem>>, vector<2x1x256xf32>
    %21 = vector.broadcast %19 : vector<1x4x1xf32> to vector<2x4x256xf32>
    %22 = vector.broadcast %20 : vector<2x1x256xf32> to vector<2x4x256xf32>
    %23 = arith.mulf %21, %22 : vector<2x4x256xf32>
    %24 = arith.addf %18, %23 : vector<2x4x256xf32>
    %c0_20 = arith.constant 0 : index
    %c0_21 = arith.constant 0 : index
    %c4 = arith.constant 4 : index
    %25 = vector.load %arg2[%c0_20, %c0_21, %c4] : memref<1x4x72xf32, #tpu.memory_space<vmem>>, vector<1x4x1xf32>
    %c0_22 = arith.constant 0 : index
    %c4_23 = arith.constant 4 : index
    %c0_24 = arith.constant 0 : index
    %26 = vector.load %arg1[%c0_22, %c4_23, %c0_24] : memref<2x72x256xf32, #tpu.memory_space<vmem>>, vector<2x1x256xf32>
    %27 = vector.broadcast %25 : vector<1x4x1xf32> to vector<2x4x256xf32>
    %28 = vector.broadcast %26 : vector<2x1x256xf32> to vector<2x4x256xf32>
    %29 = arith.mulf %27, %28 : vector<2x4x256xf32>
    %30 = arith.addf %24, %29 : vector<2x4x256xf32>
    %c0_25 = arith.constant 0 : index
    %c0_26 = arith.constant 0 : index
    %c5 = arith.constant 5 : index
    %31 = vector.load %arg2[%c0_25, %c0_26, %c5] : memref<1x4x72xf32, #tpu.memory_space<vmem>>, vector<1x4x1xf32>
    %c0_27 = arith.constant 0 : index
    %c5_28 = arith.constant 5 : index
    %c0_29 = arith.constant 0 : index
    %32 = vector.load %arg1[%c0_27, %c5_28, %c0_29] : memref<2x72x256xf32, #tpu.memory_space<vmem>>, vector<2x1x256xf32>
    %33 = vector.broadcast %31 : vector<1x4x1xf32> to vector<2x4x256xf32>
    %34 = vector.broadcast %32 : vector<2x1x256xf32> to vector<2x4x256xf32>
    %35 = arith.mulf %33, %34 : vector<2x4x256xf32>
    %36 = arith.addf %30, %35 : vector<2x4x256xf32>
    %c0_30 = arith.constant 0 : index
    %c0_31 = arith.constant 0 : index
    %c6 = arith.constant 6 : index
    %37 = vector.load %arg2[%c0_30, %c0_31, %c6] : memref<1x4x72xf32, #tpu.memory_space<vmem>>, vector<1x4x1xf32>
    %c0_32 = arith.constant 0 : index
    %c6_33 = arith.constant 6 : index
    %c0_34 = arith.constant 0 : index
    %38 = vector.load %arg1[%c0_32, %c6_33, %c0_34] : memref<2x72x256xf32, #tpu.memory_space<vmem>>, vector<2x1x256xf32>
    %39 = vector.broadcast %37 : vector<1x4x1xf32> to vector<2x4x256xf32>
    %40 = vector.broadcast %38 : vector<2x1x256xf32> to vector<2x4x256xf32>
    %41 = arith.mulf %39, %40 : vector<2x4x256xf32>
    %42 = arith.addf %36, %41 : vector<2x4x256xf32>
    %c0_35 = arith.constant 0 : index
    %c0_36 = arith.constant 0 : index
    %c7 = arith.constant 7 : index
    %43 = vector.load %arg2[%c0_35, %c0_36, %c7] : memref<1x4x72xf32, #tpu.memory_space<vmem>>, vector<1x4x1xf32>
    %c0_37 = arith.constant 0 : index
    %c7_38 = arith.constant 7 : index
    %c0_39 = arith.constant 0 : index
    %44 = vector.load %arg1[%c0_37, %c7_38, %c0_39] : memref<2x72x256xf32, #tpu.memory_space<vmem>>, vector<2x1x256xf32>
    %45 = vector.broadcast %43 : vector<1x4x1xf32> to vector<2x4x256xf32>
    %46 = vector.broadcast %44 : vector<2x1x256xf32> to vector<2x4x256xf32>
    %47 = arith.mulf %45, %46 : vector<2x4x256xf32>
    %48 = arith.addf %42, %47 : vector<2x4x256xf32>
    %c0_40 = arith.constant 0 : index
    %c0_41 = arith.constant 0 : index
    %c8 = arith.constant 8 : index
    %49 = vector.load %arg2[%c0_40, %c0_41, %c8] : memref<1x4x72xf32, #tpu.memory_space<vmem>>, vector<1x4x1xf32>
    %c0_42 = arith.constant 0 : index
    %c8_43 = arith.constant 8 : index
    %c0_44 = arith.constant 0 : index
    %50 = vector.load %arg1[%c0_42, %c8_43, %c0_44] : memref<2x72x256xf32, #tpu.memory_space<vmem>>, vector<2x1x256xf32>
    %51 = vector.broadcast %49 : vector<1x4x1xf32> to vector<2x4x256xf32>
    %52 = vector.broadcast %50 : vector<2x1x256xf32> to vector<2x4x256xf32>
    %53 = arith.mulf %51, %52 : vector<2x4x256xf32>
    %54 = arith.addf %48, %53 : vector<2x4x256xf32>
    %c0_45 = arith.constant 0 : index
    %c0_46 = arith.constant 0 : index
    %c9 = arith.constant 9 : index
    %55 = vector.load %arg2[%c0_45, %c0_46, %c9] : memref<1x4x72xf32, #tpu.memory_space<vmem>>, vector<1x4x1xf32>
    %c0_47 = arith.constant 0 : index
    %c9_48 = arith.constant 9 : index
    %c0_49 = arith.constant 0 : index
    %56 = vector.load %arg1[%c0_47, %c9_48, %c0_49] : memref<2x72x256xf32, #tpu.memory_space<vmem>>, vector<2x1x256xf32>
    %57 = vector.broadcast %55 : vector<1x4x1xf32> to vector<2x4x256xf32>
    %58 = vector.broadcast %56 : vector<2x1x256xf32> to vector<2x4x256xf32>
    %59 = arith.mulf %57, %58 : vector<2x4x256xf32>
    %60 = arith.addf %54, %59 : vector<2x4x256xf32>
    %c0_50 = arith.constant 0 : index
    %c0_51 = arith.constant 0 : index
    %c10 = arith.constant 10 : index
    %61 = vector.load %arg2[%c0_50, %c0_51, %c10] : memref<1x4x72xf32, #tpu.memory_space<vmem>>, vector<1x4x1xf32>
    %c0_52 = arith.constant 0 : index
    %c10_53 = arith.constant 10 : index
    %c0_54 = arith.constant 0 : index
    %62 = vector.load %arg1[%c0_52, %c10_53, %c0_54] : memref<2x72x256xf32, #tpu.memory_space<vmem>>, vector<2x1x256xf32>
    %63 = vector.broadcast %61 : vector<1x4x1xf32> to vector<2x4x256xf32>
    %64 = vector.broadcast %62 : vector<2x1x256xf32> to vector<2x4x256xf32>
    %65 = arith.mulf %63, %64 : vector<2x4x256xf32>
    %66 = arith.addf %60, %65 : vector<2x4x256xf32>
    %c0_55 = arith.constant 0 : index
    %c0_56 = arith.constant 0 : index
    %c11 = arith.constant 11 : index
    %67 = vector.load %arg2[%c0_55, %c0_56, %c11] : memref<1x4x72xf32, #tpu.memory_space<vmem>>, vector<1x4x1xf32>
    %c0_57 = arith.constant 0 : index
    %c11_58 = arith.constant 11 : index
    %c0_59 = arith.constant 0 : index
    %68 = vector.load %arg1[%c0_57, %c11_58, %c0_59] : memref<2x72x256xf32, #tpu.memory_space<vmem>>, vector<2x1x256xf32>
    %69 = vector.broadcast %67 : vector<1x4x1xf32> to vector<2x4x256xf32>
    %70 = vector.broadcast %68 : vector<2x1x256xf32> to vector<2x4x256xf32>
    %71 = arith.mulf %69, %70 : vector<2x4x256xf32>
    %72 = arith.addf %66, %71 : vector<2x4x256xf32>
    %c0_60 = arith.constant 0 : index
    %c0_61 = arith.constant 0 : index
    %c12 = arith.constant 12 : index
    %73 = vector.load %arg2[%c0_60, %c0_61, %c12] : memref<1x4x72xf32, #tpu.memory_space<vmem>>, vector<1x4x1xf32>
    %c0_62 = arith.constant 0 : index
    %c12_63 = arith.constant 12 : index
    %c0_64 = arith.constant 0 : index
    %74 = vector.load %arg1[%c0_62, %c12_63, %c0_64] : memref<2x72x256xf32, #tpu.memory_space<vmem>>, vector<2x1x256xf32>
    %75 = vector.broadcast %73 : vector<1x4x1xf32> to vector<2x4x256xf32>
    %76 = vector.broadcast %74 : vector<2x1x256xf32> to vector<2x4x256xf32>
    %77 = arith.mulf %75, %76 : vector<2x4x256xf32>
    %78 = arith.addf %72, %77 : vector<2x4x256xf32>
    %c0_65 = arith.constant 0 : index
    %c0_66 = arith.constant 0 : index
    %c13 = arith.constant 13 : index
    %79 = vector.load %arg2[%c0_65, %c0_66, %c13] : memref<1x4x72xf32, #tpu.memory_space<vmem>>, vector<1x4x1xf32>
    %c0_67 = arith.constant 0 : index
    %c13_68 = arith.constant 13 : index
    %c0_69 = arith.constant 0 : index
    %80 = vector.load %arg1[%c0_67, %c13_68, %c0_69] : memref<2x72x256xf32, #tpu.memory_space<vmem>>, vector<2x1x256xf32>
    %81 = vector.broadcast %79 : vector<1x4x1xf32> to vector<2x4x256xf32>
    %82 = vector.broadcast %80 : vector<2x1x256xf32> to vector<2x4x256xf32>
    %83 = arith.mulf %81, %82 : vector<2x4x256xf32>
    %84 = arith.addf %78, %83 : vector<2x4x256xf32>
    %c0_70 = arith.constant 0 : index
    %c0_71 = arith.constant 0 : index
    %c14 = arith.constant 14 : index
    %85 = vector.load %arg2[%c0_70, %c0_71, %c14] : memref<1x4x72xf32, #tpu.memory_space<vmem>>, vector<1x4x1xf32>
    %c0_72 = arith.constant 0 : index
    %c14_73 = arith.constant 14 : index
    %c0_74 = arith.constant 0 : index
    %86 = vector.load %arg1[%c0_72, %c14_73, %c0_74] : memref<2x72x256xf32, #tpu.memory_space<vmem>>, vector<2x1x256xf32>
    %87 = vector.broadcast %85 : vector<1x4x1xf32> to vector<2x4x256xf32>
    %88 = vector.broadcast %86 : vector<2x1x256xf32> to vector<2x4x256xf32>
    %89 = arith.mulf %87, %88 : vector<2x4x256xf32>
    %90 = arith.addf %84, %89 : vector<2x4x256xf32>
    %c0_75 = arith.constant 0 : index
    %c0_76 = arith.constant 0 : index
    %c15 = arith.constant 15 : index
    %91 = vector.load %arg2[%c0_75, %c0_76, %c15] : memref<1x4x72xf32, #tpu.memory_space<vmem>>, vector<1x4x1xf32>
    %c0_77 = arith.constant 0 : index
    %c15_78 = arith.constant 15 : index
    %c0_79 = arith.constant 0 : index
    %92 = vector.load %arg1[%c0_77, %c15_78, %c0_79] : memref<2x72x256xf32, #tpu.memory_space<vmem>>, vector<2x1x256xf32>
    %93 = vector.broadcast %91 : vector<1x4x1xf32> to vector<2x4x256xf32>
    %94 = vector.broadcast %92 : vector<2x1x256xf32> to vector<2x4x256xf32>
    %95 = arith.mulf %93, %94 : vector<2x4x256xf32>
    %96 = arith.addf %90, %95 : vector<2x4x256xf32>
    %c0_80 = arith.constant 0 : index
    %c0_81 = arith.constant 0 : index
    %c16 = arith.constant 16 : index
    %97 = vector.load %arg2[%c0_80, %c0_81, %c16] : memref<1x4x72xf32, #tpu.memory_space<vmem>>, vector<1x4x1xf32>
    %c0_82 = arith.constant 0 : index
    %c16_83 = arith.constant 16 : index
    %c0_84 = arith.constant 0 : index
    %98 = vector.load %arg1[%c0_82, %c16_83, %c0_84] : memref<2x72x256xf32, #tpu.memory_space<vmem>>, vector<2x1x256xf32>
    %99 = vector.broadcast %97 : vector<1x4x1xf32> to vector<2x4x256xf32>
    %100 = vector.broadcast %98 : vector<2x1x256xf32> to vector<2x4x256xf32>
    %101 = arith.mulf %99, %100 : vector<2x4x256xf32>
    %102 = arith.addf %96, %101 : vector<2x4x256xf32>
    %c0_85 = arith.constant 0 : index
    %c0_86 = arith.constant 0 : index
    %c17 = arith.constant 17 : index
    %103 = vector.load %arg2[%c0_85, %c0_86, %c17] : memref<1x4x72xf32, #tpu.memory_space<vmem>>, vector<1x4x1xf32>
    %c0_87 = arith.constant 0 : index
    %c17_88 = arith.constant 17 : index
    %c0_89 = arith.constant 0 : index
    %104 = vector.load %arg1[%c0_87, %c17_88, %c0_89] : memref<2x72x256xf32, #tpu.memory_space<vmem>>, vector<2x1x256xf32>
    %105 = vector.broadcast %103 : vector<1x4x1xf32> to vector<2x4x256xf32>
    %106 = vector.broadcast %104 : vector<2x1x256xf32> to vector<2x4x256xf32>
    %107 = arith.mulf %105, %106 : vector<2x4x256xf32>
    %108 = arith.addf %102, %107 : vector<2x4x256xf32>
    %c0_90 = arith.constant 0 : index
    %c0_91 = arith.constant 0 : index
    %c18 = arith.constant 18 : index
    %109 = vector.load %arg2[%c0_90, %c0_91, %c18] : memref<1x4x72xf32, #tpu.memory_space<vmem>>, vector<1x4x1xf32>
    %c0_92 = arith.constant 0 : index
    %c18_93 = arith.constant 18 : index
    %c0_94 = arith.constant 0 : index
    %110 = vector.load %arg1[%c0_92, %c18_93, %c0_94] : memref<2x72x256xf32, #tpu.memory_space<vmem>>, vector<2x1x256xf32>
    %111 = vector.broadcast %109 : vector<1x4x1xf32> to vector<2x4x256xf32>
    %112 = vector.broadcast %110 : vector<2x1x256xf32> to vector<2x4x256xf32>
    %113 = arith.mulf %111, %112 : vector<2x4x256xf32>
    %114 = arith.addf %108, %113 : vector<2x4x256xf32>
    %c0_95 = arith.constant 0 : index
    %c0_96 = arith.constant 0 : index
    %c19 = arith.constant 19 : index
    %115 = vector.load %arg2[%c0_95, %c0_96, %c19] : memref<1x4x72xf32, #tpu.memory_space<vmem>>, vector<1x4x1xf32>
    %c0_97 = arith.constant 0 : index
    %c19_98 = arith.constant 19 : index
    %c0_99 = arith.constant 0 : index
    %116 = vector.load %arg1[%c0_97, %c19_98, %c0_99] : memref<2x72x256xf32, #tpu.memory_space<vmem>>, vector<2x1x256xf32>
    %117 = vector.broadcast %115 : vector<1x4x1xf32> to vector<2x4x256xf32>
    %118 = vector.broadcast %116 : vector<2x1x256xf32> to vector<2x4x256xf32>
    %119 = arith.mulf %117, %118 : vector<2x4x256xf32>
    %120 = arith.addf %114, %119 : vector<2x4x256xf32>
    %c0_100 = arith.constant 0 : index
    %c0_101 = arith.constant 0 : index
    %c20 = arith.constant 20 : index
    %121 = vector.load %arg2[%c0_100, %c0_101, %c20] : memref<1x4x72xf32, #tpu.memory_space<vmem>>, vector<1x4x1xf32>
    %c0_102 = arith.constant 0 : index
    %c20_103 = arith.constant 20 : index
    %c0_104 = arith.constant 0 : index
    %122 = vector.load %arg1[%c0_102, %c20_103, %c0_104] : memref<2x72x256xf32, #tpu.memory_space<vmem>>, vector<2x1x256xf32>
    %123 = vector.broadcast %121 : vector<1x4x1xf32> to vector<2x4x256xf32>
    %124 = vector.broadcast %122 : vector<2x1x256xf32> to vector<2x4x256xf32>
    %125 = arith.mulf %123, %124 : vector<2x4x256xf32>
    %126 = arith.addf %120, %125 : vector<2x4x256xf32>
    %c0_105 = arith.constant 0 : index
    %c0_106 = arith.constant 0 : index
    %c21 = arith.constant 21 : index
    %127 = vector.load %arg2[%c0_105, %c0_106, %c21] : memref<1x4x72xf32, #tpu.memory_space<vmem>>, vector<1x4x1xf32>
    %c0_107 = arith.constant 0 : index
    %c21_108 = arith.constant 21 : index
    %c0_109 = arith.constant 0 : index
    %128 = vector.load %arg1[%c0_107, %c21_108, %c0_109] : memref<2x72x256xf32, #tpu.memory_space<vmem>>, vector<2x1x256xf32>
    %129 = vector.broadcast %127 : vector<1x4x1xf32> to vector<2x4x256xf32>
    %130 = vector.broadcast %128 : vector<2x1x256xf32> to vector<2x4x256xf32>
    %131 = arith.mulf %129, %130 : vector<2x4x256xf32>
    %132 = arith.addf %126, %131 : vector<2x4x256xf32>
    %c0_110 = arith.constant 0 : index
    %c0_111 = arith.constant 0 : index
    %c22 = arith.constant 22 : index
    %133 = vector.load %arg2[%c0_110, %c0_111, %c22] : memref<1x4x72xf32, #tpu.memory_space<vmem>>, vector<1x4x1xf32>
    %c0_112 = arith.constant 0 : index
    %c22_113 = arith.constant 22 : index
    %c0_114 = arith.constant 0 : index
    %134 = vector.load %arg1[%c0_112, %c22_113, %c0_114] : memref<2x72x256xf32, #tpu.memory_space<vmem>>, vector<2x1x256xf32>
    %135 = vector.broadcast %133 : vector<1x4x1xf32> to vector<2x4x256xf32>
    %136 = vector.broadcast %134 : vector<2x1x256xf32> to vector<2x4x256xf32>
    %137 = arith.mulf %135, %136 : vector<2x4x256xf32>
    %138 = arith.addf %132, %137 : vector<2x4x256xf32>
    %c0_115 = arith.constant 0 : index
    %c0_116 = arith.constant 0 : index
    %c23 = arith.constant 23 : index
    %139 = vector.load %arg2[%c0_115, %c0_116, %c23] : memref<1x4x72xf32, #tpu.memory_space<vmem>>, vector<1x4x1xf32>
    %c0_117 = arith.constant 0 : index
    %c23_118 = arith.constant 23 : index
    %c0_119 = arith.constant 0 : index
    %140 = vector.load %arg1[%c0_117, %c23_118, %c0_119] : memref<2x72x256xf32, #tpu.memory_space<vmem>>, vector<2x1x256xf32>
    %141 = vector.broadcast %139 : vector<1x4x1xf32> to vector<2x4x256xf32>
    %142 = vector.broadcast %140 : vector<2x1x256xf32> to vector<2x4x256xf32>
    %143 = arith.mulf %141, %142 : vector<2x4x256xf32>
    %144 = arith.addf %138, %143 : vector<2x4x256xf32>
    %c0_120 = arith.constant 0 : index
    %c0_121 = arith.constant 0 : index
    %c24 = arith.constant 24 : index
    %145 = vector.load %arg2[%c0_120, %c0_121, %c24] : memref<1x4x72xf32, #tpu.memory_space<vmem>>, vector<1x4x1xf32>
    %c0_122 = arith.constant 0 : index
    %c24_123 = arith.constant 24 : index
    %c0_124 = arith.constant 0 : index
    %146 = vector.load %arg1[%c0_122, %c24_123, %c0_124] : memref<2x72x256xf32, #tpu.memory_space<vmem>>, vector<2x1x256xf32>
    %147 = vector.broadcast %145 : vector<1x4x1xf32> to vector<2x4x256xf32>
    %148 = vector.broadcast %146 : vector<2x1x256xf32> to vector<2x4x256xf32>
    %149 = arith.mulf %147, %148 : vector<2x4x256xf32>
    %150 = arith.addf %144, %149 : vector<2x4x256xf32>
    %c0_125 = arith.constant 0 : index
    %c0_126 = arith.constant 0 : index
    %c25 = arith.constant 25 : index
    %151 = vector.load %arg2[%c0_125, %c0_126, %c25] : memref<1x4x72xf32, #tpu.memory_space<vmem>>, vector<1x4x1xf32>
    %c0_127 = arith.constant 0 : index
    %c25_128 = arith.constant 25 : index
    %c0_129 = arith.constant 0 : index
    %152 = vector.load %arg1[%c0_127, %c25_128, %c0_129] : memref<2x72x256xf32, #tpu.memory_space<vmem>>, vector<2x1x256xf32>
    %153 = vector.broadcast %151 : vector<1x4x1xf32> to vector<2x4x256xf32>
    %154 = vector.broadcast %152 : vector<2x1x256xf32> to vector<2x4x256xf32>
    %155 = arith.mulf %153, %154 : vector<2x4x256xf32>
    %156 = arith.addf %150, %155 : vector<2x4x256xf32>
    %c0_130 = arith.constant 0 : index
    %c0_131 = arith.constant 0 : index
    %c26 = arith.constant 26 : index
    %157 = vector.load %arg2[%c0_130, %c0_131, %c26] : memref<1x4x72xf32, #tpu.memory_space<vmem>>, vector<1x4x1xf32>
    %c0_132 = arith.constant 0 : index
    %c26_133 = arith.constant 26 : index
    %c0_134 = arith.constant 0 : index
    %158 = vector.load %arg1[%c0_132, %c26_133, %c0_134] : memref<2x72x256xf32, #tpu.memory_space<vmem>>, vector<2x1x256xf32>
    %159 = vector.broadcast %157 : vector<1x4x1xf32> to vector<2x4x256xf32>
    %160 = vector.broadcast %158 : vector<2x1x256xf32> to vector<2x4x256xf32>
    %161 = arith.mulf %159, %160 : vector<2x4x256xf32>
    %162 = arith.addf %156, %161 : vector<2x4x256xf32>
    %c0_135 = arith.constant 0 : index
    %c0_136 = arith.constant 0 : index
    %c27 = arith.constant 27 : index
    %163 = vector.load %arg2[%c0_135, %c0_136, %c27] : memref<1x4x72xf32, #tpu.memory_space<vmem>>, vector<1x4x1xf32>
    %c0_137 = arith.constant 0 : index
    %c27_138 = arith.constant 27 : index
    %c0_139 = arith.constant 0 : index
    %164 = vector.load %arg1[%c0_137, %c27_138, %c0_139] : memref<2x72x256xf32, #tpu.memory_space<vmem>>, vector<2x1x256xf32>
    %165 = vector.broadcast %163 : vector<1x4x1xf32> to vector<2x4x256xf32>
    %166 = vector.broadcast %164 : vector<2x1x256xf32> to vector<2x4x256xf32>
    %167 = arith.mulf %165, %166 : vector<2x4x256xf32>
    %168 = arith.addf %162, %167 : vector<2x4x256xf32>
    %c0_140 = arith.constant 0 : index
    %c0_141 = arith.constant 0 : index
    %c28 = arith.constant 28 : index
    %169 = vector.load %arg2[%c0_140, %c0_141, %c28] : memref<1x4x72xf32, #tpu.memory_space<vmem>>, vector<1x4x1xf32>
    %c0_142 = arith.constant 0 : index
    %c28_143 = arith.constant 28 : index
    %c0_144 = arith.constant 0 : index
    %170 = vector.load %arg1[%c0_142, %c28_143, %c0_144] : memref<2x72x256xf32, #tpu.memory_space<vmem>>, vector<2x1x256xf32>
    %171 = vector.broadcast %169 : vector<1x4x1xf32> to vector<2x4x256xf32>
    %172 = vector.broadcast %170 : vector<2x1x256xf32> to vector<2x4x256xf32>
    %173 = arith.mulf %171, %172 : vector<2x4x256xf32>
    %174 = arith.addf %168, %173 : vector<2x4x256xf32>
    %c0_145 = arith.constant 0 : index
    %c0_146 = arith.constant 0 : index
    %c29 = arith.constant 29 : index
    %175 = vector.load %arg2[%c0_145, %c0_146, %c29] : memref<1x4x72xf32, #tpu.memory_space<vmem>>, vector<1x4x1xf32>
    %c0_147 = arith.constant 0 : index
    %c29_148 = arith.constant 29 : index
    %c0_149 = arith.constant 0 : index
    %176 = vector.load %arg1[%c0_147, %c29_148, %c0_149] : memref<2x72x256xf32, #tpu.memory_space<vmem>>, vector<2x1x256xf32>
    %177 = vector.broadcast %175 : vector<1x4x1xf32> to vector<2x4x256xf32>
    %178 = vector.broadcast %176 : vector<2x1x256xf32> to vector<2x4x256xf32>
    %179 = arith.mulf %177, %178 : vector<2x4x256xf32>
    %180 = arith.addf %174, %179 : vector<2x4x256xf32>
    %c0_150 = arith.constant 0 : index
    %c0_151 = arith.constant 0 : index
    %c30 = arith.constant 30 : index
    %181 = vector.load %arg2[%c0_150, %c0_151, %c30] : memref<1x4x72xf32, #tpu.memory_space<vmem>>, vector<1x4x1xf32>
    %c0_152 = arith.constant 0 : index
    %c30_153 = arith.constant 30 : index
    %c0_154 = arith.constant 0 : index
    %182 = vector.load %arg1[%c0_152, %c30_153, %c0_154] : memref<2x72x256xf32, #tpu.memory_space<vmem>>, vector<2x1x256xf32>
    %183 = vector.broadcast %181 : vector<1x4x1xf32> to vector<2x4x256xf32>
    %184 = vector.broadcast %182 : vector<2x1x256xf32> to vector<2x4x256xf32>
    %185 = arith.mulf %183, %184 : vector<2x4x256xf32>
    %186 = arith.addf %180, %185 : vector<2x4x256xf32>
    %c0_155 = arith.constant 0 : index
    %c0_156 = arith.constant 0 : index
    %c31 = arith.constant 31 : index
    %187 = vector.load %arg2[%c0_155, %c0_156, %c31] : memref<1x4x72xf32, #tpu.memory_space<vmem>>, vector<1x4x1xf32>
    %c0_157 = arith.constant 0 : index
    %c31_158 = arith.constant 31 : index
    %c0_159 = arith.constant 0 : index
    %188 = vector.load %arg1[%c0_157, %c31_158, %c0_159] : memref<2x72x256xf32, #tpu.memory_space<vmem>>, vector<2x1x256xf32>
    %189 = vector.broadcast %187 : vector<1x4x1xf32> to vector<2x4x256xf32>
    %190 = vector.broadcast %188 : vector<2x1x256xf32> to vector<2x4x256xf32>
    %191 = arith.mulf %189, %190 : vector<2x4x256xf32>
    %192 = arith.addf %186, %191 : vector<2x4x256xf32>
    %c0_160 = arith.constant 0 : index
    %c0_161 = arith.constant 0 : index
    %c32 = arith.constant 32 : index
    %193 = vector.load %arg2[%c0_160, %c0_161, %c32] : memref<1x4x72xf32, #tpu.memory_space<vmem>>, vector<1x4x1xf32>
    %c0_162 = arith.constant 0 : index
    %c32_163 = arith.constant 32 : index
    %c0_164 = arith.constant 0 : index
    %194 = vector.load %arg1[%c0_162, %c32_163, %c0_164] : memref<2x72x256xf32, #tpu.memory_space<vmem>>, vector<2x1x256xf32>
    %195 = vector.broadcast %193 : vector<1x4x1xf32> to vector<2x4x256xf32>
    %196 = vector.broadcast %194 : vector<2x1x256xf32> to vector<2x4x256xf32>
    %197 = arith.mulf %195, %196 : vector<2x4x256xf32>
    %198 = arith.addf %192, %197 : vector<2x4x256xf32>
    %c0_165 = arith.constant 0 : index
    %c0_166 = arith.constant 0 : index
    %c33 = arith.constant 33 : index
    %199 = vector.load %arg2[%c0_165, %c0_166, %c33] : memref<1x4x72xf32, #tpu.memory_space<vmem>>, vector<1x4x1xf32>
    %c0_167 = arith.constant 0 : index
    %c33_168 = arith.constant 33 : index
    %c0_169 = arith.constant 0 : index
    %200 = vector.load %arg1[%c0_167, %c33_168, %c0_169] : memref<2x72x256xf32, #tpu.memory_space<vmem>>, vector<2x1x256xf32>
    %201 = vector.broadcast %199 : vector<1x4x1xf32> to vector<2x4x256xf32>
    %202 = vector.broadcast %200 : vector<2x1x256xf32> to vector<2x4x256xf32>
    %203 = arith.mulf %201, %202 : vector<2x4x256xf32>
    %204 = arith.addf %198, %203 : vector<2x4x256xf32>
    %c0_170 = arith.constant 0 : index
    %c0_171 = arith.constant 0 : index
    %c34 = arith.constant 34 : index
    %205 = vector.load %arg2[%c0_170, %c0_171, %c34] : memref<1x4x72xf32, #tpu.memory_space<vmem>>, vector<1x4x1xf32>
    %c0_172 = arith.constant 0 : index
    %c34_173 = arith.constant 34 : index
    %c0_174 = arith.constant 0 : index
    %206 = vector.load %arg1[%c0_172, %c34_173, %c0_174] : memref<2x72x256xf32, #tpu.memory_space<vmem>>, vector<2x1x256xf32>
    %207 = vector.broadcast %205 : vector<1x4x1xf32> to vector<2x4x256xf32>
    %208 = vector.broadcast %206 : vector<2x1x256xf32> to vector<2x4x256xf32>
    %209 = arith.mulf %207, %208 : vector<2x4x256xf32>
    %210 = arith.addf %204, %209 : vector<2x4x256xf32>
    %c0_175 = arith.constant 0 : index
    %c0_176 = arith.constant 0 : index
    %c35 = arith.constant 35 : index
    %211 = vector.load %arg2[%c0_175, %c0_176, %c35] : memref<1x4x72xf32, #tpu.memory_space<vmem>>, vector<1x4x1xf32>
    %c0_177 = arith.constant 0 : index
    %c35_178 = arith.constant 35 : index
    %c0_179 = arith.constant 0 : index
    %212 = vector.load %arg1[%c0_177, %c35_178, %c0_179] : memref<2x72x256xf32, #tpu.memory_space<vmem>>, vector<2x1x256xf32>
    %213 = vector.broadcast %211 : vector<1x4x1xf32> to vector<2x4x256xf32>
    %214 = vector.broadcast %212 : vector<2x1x256xf32> to vector<2x4x256xf32>
    %215 = arith.mulf %213, %214 : vector<2x4x256xf32>
    %216 = arith.addf %210, %215 : vector<2x4x256xf32>
    %c0_180 = arith.constant 0 : index
    %c0_181 = arith.constant 0 : index
    %c36 = arith.constant 36 : index
    %217 = vector.load %arg2[%c0_180, %c0_181, %c36] : memref<1x4x72xf32, #tpu.memory_space<vmem>>, vector<1x4x1xf32>
    %c0_182 = arith.constant 0 : index
    %c36_183 = arith.constant 36 : index
    %c0_184 = arith.constant 0 : index
    %218 = vector.load %arg1[%c0_182, %c36_183, %c0_184] : memref<2x72x256xf32, #tpu.memory_space<vmem>>, vector<2x1x256xf32>
    %219 = vector.broadcast %217 : vector<1x4x1xf32> to vector<2x4x256xf32>
    %220 = vector.broadcast %218 : vector<2x1x256xf32> to vector<2x4x256xf32>
    %221 = arith.mulf %219, %220 : vector<2x4x256xf32>
    %222 = arith.addf %216, %221 : vector<2x4x256xf32>
    %c0_185 = arith.constant 0 : index
    %c0_186 = arith.constant 0 : index
    %c37 = arith.constant 37 : index
    %223 = vector.load %arg2[%c0_185, %c0_186, %c37] : memref<1x4x72xf32, #tpu.memory_space<vmem>>, vector<1x4x1xf32>
    %c0_187 = arith.constant 0 : index
    %c37_188 = arith.constant 37 : index
    %c0_189 = arith.constant 0 : index
    %224 = vector.load %arg1[%c0_187, %c37_188, %c0_189] : memref<2x72x256xf32, #tpu.memory_space<vmem>>, vector<2x1x256xf32>
    %225 = vector.broadcast %223 : vector<1x4x1xf32> to vector<2x4x256xf32>
    %226 = vector.broadcast %224 : vector<2x1x256xf32> to vector<2x4x256xf32>
    %227 = arith.mulf %225, %226 : vector<2x4x256xf32>
    %228 = arith.addf %222, %227 : vector<2x4x256xf32>
    %c0_190 = arith.constant 0 : index
    %c0_191 = arith.constant 0 : index
    %c38 = arith.constant 38 : index
    %229 = vector.load %arg2[%c0_190, %c0_191, %c38] : memref<1x4x72xf32, #tpu.memory_space<vmem>>, vector<1x4x1xf32>
    %c0_192 = arith.constant 0 : index
    %c38_193 = arith.constant 38 : index
    %c0_194 = arith.constant 0 : index
    %230 = vector.load %arg1[%c0_192, %c38_193, %c0_194] : memref<2x72x256xf32, #tpu.memory_space<vmem>>, vector<2x1x256xf32>
    %231 = vector.broadcast %229 : vector<1x4x1xf32> to vector<2x4x256xf32>
    %232 = vector.broadcast %230 : vector<2x1x256xf32> to vector<2x4x256xf32>
    %233 = arith.mulf %231, %232 : vector<2x4x256xf32>
    %234 = arith.addf %228, %233 : vector<2x4x256xf32>
    %c0_195 = arith.constant 0 : index
    %c0_196 = arith.constant 0 : index
    %c39 = arith.constant 39 : index
    %235 = vector.load %arg2[%c0_195, %c0_196, %c39] : memref<1x4x72xf32, #tpu.memory_space<vmem>>, vector<1x4x1xf32>
    %c0_197 = arith.constant 0 : index
    %c39_198 = arith.constant 39 : index
    %c0_199 = arith.constant 0 : index
    %236 = vector.load %arg1[%c0_197, %c39_198, %c0_199] : memref<2x72x256xf32, #tpu.memory_space<vmem>>, vector<2x1x256xf32>
    %237 = vector.broadcast %235 : vector<1x4x1xf32> to vector<2x4x256xf32>
    %238 = vector.broadcast %236 : vector<2x1x256xf32> to vector<2x4x256xf32>
    %239 = arith.mulf %237, %238 : vector<2x4x256xf32>
    %240 = arith.addf %234, %239 : vector<2x4x256xf32>
    %c0_200 = arith.constant 0 : index
    %c0_201 = arith.constant 0 : index
    %c40 = arith.constant 40 : index
    %241 = vector.load %arg2[%c0_200, %c0_201, %c40] : memref<1x4x72xf32, #tpu.memory_space<vmem>>, vector<1x4x1xf32>
    %c0_202 = arith.constant 0 : index
    %c40_203 = arith.constant 40 : index
    %c0_204 = arith.constant 0 : index
    %242 = vector.load %arg1[%c0_202, %c40_203, %c0_204] : memref<2x72x256xf32, #tpu.memory_space<vmem>>, vector<2x1x256xf32>
    %243 = vector.broadcast %241 : vector<1x4x1xf32> to vector<2x4x256xf32>
    %244 = vector.broadcast %242 : vector<2x1x256xf32> to vector<2x4x256xf32>
    %245 = arith.mulf %243, %244 : vector<2x4x256xf32>
    %246 = arith.addf %240, %245 : vector<2x4x256xf32>
    %c0_205 = arith.constant 0 : index
    %c0_206 = arith.constant 0 : index
    %c41 = arith.constant 41 : index
    %247 = vector.load %arg2[%c0_205, %c0_206, %c41] : memref<1x4x72xf32, #tpu.memory_space<vmem>>, vector<1x4x1xf32>
    %c0_207 = arith.constant 0 : index
    %c41_208 = arith.constant 41 : index
    %c0_209 = arith.constant 0 : index
    %248 = vector.load %arg1[%c0_207, %c41_208, %c0_209] : memref<2x72x256xf32, #tpu.memory_space<vmem>>, vector<2x1x256xf32>
    %249 = vector.broadcast %247 : vector<1x4x1xf32> to vector<2x4x256xf32>
    %250 = vector.broadcast %248 : vector<2x1x256xf32> to vector<2x4x256xf32>
    %251 = arith.mulf %249, %250 : vector<2x4x256xf32>
    %252 = arith.addf %246, %251 : vector<2x4x256xf32>
    %c0_210 = arith.constant 0 : index
    %c0_211 = arith.constant 0 : index
    %c42 = arith.constant 42 : index
    %253 = vector.load %arg2[%c0_210, %c0_211, %c42] : memref<1x4x72xf32, #tpu.memory_space<vmem>>, vector<1x4x1xf32>
    %c0_212 = arith.constant 0 : index
    %c42_213 = arith.constant 42 : index
    %c0_214 = arith.constant 0 : index
    %254 = vector.load %arg1[%c0_212, %c42_213, %c0_214] : memref<2x72x256xf32, #tpu.memory_space<vmem>>, vector<2x1x256xf32>
    %255 = vector.broadcast %253 : vector<1x4x1xf32> to vector<2x4x256xf32>
    %256 = vector.broadcast %254 : vector<2x1x256xf32> to vector<2x4x256xf32>
    %257 = arith.mulf %255, %256 : vector<2x4x256xf32>
    %258 = arith.addf %252, %257 : vector<2x4x256xf32>
    %c0_215 = arith.constant 0 : index
    %c0_216 = arith.constant 0 : index
    %c43 = arith.constant 43 : index
    %259 = vector.load %arg2[%c0_215, %c0_216, %c43] : memref<1x4x72xf32, #tpu.memory_space<vmem>>, vector<1x4x1xf32>
    %c0_217 = arith.constant 0 : index
    %c43_218 = arith.constant 43 : index
    %c0_219 = arith.constant 0 : index
    %260 = vector.load %arg1[%c0_217, %c43_218, %c0_219] : memref<2x72x256xf32, #tpu.memory_space<vmem>>, vector<2x1x256xf32>
    %261 = vector.broadcast %259 : vector<1x4x1xf32> to vector<2x4x256xf32>
    %262 = vector.broadcast %260 : vector<2x1x256xf32> to vector<2x4x256xf32>
    %263 = arith.mulf %261, %262 : vector<2x4x256xf32>
    %264 = arith.addf %258, %263 : vector<2x4x256xf32>
    %c0_220 = arith.constant 0 : index
    %c0_221 = arith.constant 0 : index
    %c44 = arith.constant 44 : index
    %265 = vector.load %arg2[%c0_220, %c0_221, %c44] : memref<1x4x72xf32, #tpu.memory_space<vmem>>, vector<1x4x1xf32>
    %c0_222 = arith.constant 0 : index
    %c44_223 = arith.constant 44 : index
    %c0_224 = arith.constant 0 : index
    %266 = vector.load %arg1[%c0_222, %c44_223, %c0_224] : memref<2x72x256xf32, #tpu.memory_space<vmem>>, vector<2x1x256xf32>
    %267 = vector.broadcast %265 : vector<1x4x1xf32> to vector<2x4x256xf32>
    %268 = vector.broadcast %266 : vector<2x1x256xf32> to vector<2x4x256xf32>
    %269 = arith.mulf %267, %268 : vector<2x4x256xf32>
    %270 = arith.addf %264, %269 : vector<2x4x256xf32>
    %c0_225 = arith.constant 0 : index
    %c0_226 = arith.constant 0 : index
    %c45 = arith.constant 45 : index
    %271 = vector.load %arg2[%c0_225, %c0_226, %c45] : memref<1x4x72xf32, #tpu.memory_space<vmem>>, vector<1x4x1xf32>
    %c0_227 = arith.constant 0 : index
    %c45_228 = arith.constant 45 : index
    %c0_229 = arith.constant 0 : index
    %272 = vector.load %arg1[%c0_227, %c45_228, %c0_229] : memref<2x72x256xf32, #tpu.memory_space<vmem>>, vector<2x1x256xf32>
    %273 = vector.broadcast %271 : vector<1x4x1xf32> to vector<2x4x256xf32>
    %274 = vector.broadcast %272 : vector<2x1x256xf32> to vector<2x4x256xf32>
    %275 = arith.mulf %273, %274 : vector<2x4x256xf32>
    %276 = arith.addf %270, %275 : vector<2x4x256xf32>
    %c0_230 = arith.constant 0 : index
    %c0_231 = arith.constant 0 : index
    %c46 = arith.constant 46 : index
    %277 = vector.load %arg2[%c0_230, %c0_231, %c46] : memref<1x4x72xf32, #tpu.memory_space<vmem>>, vector<1x4x1xf32>
    %c0_232 = arith.constant 0 : index
    %c46_233 = arith.constant 46 : index
    %c0_234 = arith.constant 0 : index
    %278 = vector.load %arg1[%c0_232, %c46_233, %c0_234] : memref<2x72x256xf32, #tpu.memory_space<vmem>>, vector<2x1x256xf32>
    %279 = vector.broadcast %277 : vector<1x4x1xf32> to vector<2x4x256xf32>
    %280 = vector.broadcast %278 : vector<2x1x256xf32> to vector<2x4x256xf32>
    %281 = arith.mulf %279, %280 : vector<2x4x256xf32>
    %282 = arith.addf %276, %281 : vector<2x4x256xf32>
    %c0_235 = arith.constant 0 : index
    %c0_236 = arith.constant 0 : index
    %c47 = arith.constant 47 : index
    %283 = vector.load %arg2[%c0_235, %c0_236, %c47] : memref<1x4x72xf32, #tpu.memory_space<vmem>>, vector<1x4x1xf32>
    %c0_237 = arith.constant 0 : index
    %c47_238 = arith.constant 47 : index
    %c0_239 = arith.constant 0 : index
    %284 = vector.load %arg1[%c0_237, %c47_238, %c0_239] : memref<2x72x256xf32, #tpu.memory_space<vmem>>, vector<2x1x256xf32>
    %285 = vector.broadcast %283 : vector<1x4x1xf32> to vector<2x4x256xf32>
    %286 = vector.broadcast %284 : vector<2x1x256xf32> to vector<2x4x256xf32>
    %287 = arith.mulf %285, %286 : vector<2x4x256xf32>
    %288 = arith.addf %282, %287 : vector<2x4x256xf32>
    %c0_240 = arith.constant 0 : index
    %c0_241 = arith.constant 0 : index
    %c48 = arith.constant 48 : index
    %289 = vector.load %arg2[%c0_240, %c0_241, %c48] : memref<1x4x72xf32, #tpu.memory_space<vmem>>, vector<1x4x1xf32>
    %c0_242 = arith.constant 0 : index
    %c48_243 = arith.constant 48 : index
    %c0_244 = arith.constant 0 : index
    %290 = vector.load %arg1[%c0_242, %c48_243, %c0_244] : memref<2x72x256xf32, #tpu.memory_space<vmem>>, vector<2x1x256xf32>
    %291 = vector.broadcast %289 : vector<1x4x1xf32> to vector<2x4x256xf32>
    %292 = vector.broadcast %290 : vector<2x1x256xf32> to vector<2x4x256xf32>
    %293 = arith.mulf %291, %292 : vector<2x4x256xf32>
    %294 = arith.addf %288, %293 : vector<2x4x256xf32>
    %c0_245 = arith.constant 0 : index
    %c0_246 = arith.constant 0 : index
    %c49 = arith.constant 49 : index
    %295 = vector.load %arg2[%c0_245, %c0_246, %c49] : memref<1x4x72xf32, #tpu.memory_space<vmem>>, vector<1x4x1xf32>
    %c0_247 = arith.constant 0 : index
    %c49_248 = arith.constant 49 : index
    %c0_249 = arith.constant 0 : index
    %296 = vector.load %arg1[%c0_247, %c49_248, %c0_249] : memref<2x72x256xf32, #tpu.memory_space<vmem>>, vector<2x1x256xf32>
    %297 = vector.broadcast %295 : vector<1x4x1xf32> to vector<2x4x256xf32>
    %298 = vector.broadcast %296 : vector<2x1x256xf32> to vector<2x4x256xf32>
    %299 = arith.mulf %297, %298 : vector<2x4x256xf32>
    %300 = arith.addf %294, %299 : vector<2x4x256xf32>
    %c0_250 = arith.constant 0 : index
    %c0_251 = arith.constant 0 : index
    %c50 = arith.constant 50 : index
    %301 = vector.load %arg2[%c0_250, %c0_251, %c50] : memref<1x4x72xf32, #tpu.memory_space<vmem>>, vector<1x4x1xf32>
    %c0_252 = arith.constant 0 : index
    %c50_253 = arith.constant 50 : index
    %c0_254 = arith.constant 0 : index
    %302 = vector.load %arg1[%c0_252, %c50_253, %c0_254] : memref<2x72x256xf32, #tpu.memory_space<vmem>>, vector<2x1x256xf32>
    %303 = vector.broadcast %301 : vector<1x4x1xf32> to vector<2x4x256xf32>
    %304 = vector.broadcast %302 : vector<2x1x256xf32> to vector<2x4x256xf32>
    %305 = arith.mulf %303, %304 : vector<2x4x256xf32>
    %306 = arith.addf %300, %305 : vector<2x4x256xf32>
    %c0_255 = arith.constant 0 : index
    %c0_256 = arith.constant 0 : index
    %c51 = arith.constant 51 : index
    %307 = vector.load %arg2[%c0_255, %c0_256, %c51] : memref<1x4x72xf32, #tpu.memory_space<vmem>>, vector<1x4x1xf32>
    %c0_257 = arith.constant 0 : index
    %c51_258 = arith.constant 51 : index
    %c0_259 = arith.constant 0 : index
    %308 = vector.load %arg1[%c0_257, %c51_258, %c0_259] : memref<2x72x256xf32, #tpu.memory_space<vmem>>, vector<2x1x256xf32>
    %309 = vector.broadcast %307 : vector<1x4x1xf32> to vector<2x4x256xf32>
    %310 = vector.broadcast %308 : vector<2x1x256xf32> to vector<2x4x256xf32>
    %311 = arith.mulf %309, %310 : vector<2x4x256xf32>
    %312 = arith.addf %306, %311 : vector<2x4x256xf32>
    %c0_260 = arith.constant 0 : index
    %c0_261 = arith.constant 0 : index
    %c52 = arith.constant 52 : index
    %313 = vector.load %arg2[%c0_260, %c0_261, %c52] : memref<1x4x72xf32, #tpu.memory_space<vmem>>, vector<1x4x1xf32>
    %c0_262 = arith.constant 0 : index
    %c52_263 = arith.constant 52 : index
    %c0_264 = arith.constant 0 : index
    %314 = vector.load %arg1[%c0_262, %c52_263, %c0_264] : memref<2x72x256xf32, #tpu.memory_space<vmem>>, vector<2x1x256xf32>
    %315 = vector.broadcast %313 : vector<1x4x1xf32> to vector<2x4x256xf32>
    %316 = vector.broadcast %314 : vector<2x1x256xf32> to vector<2x4x256xf32>
    %317 = arith.mulf %315, %316 : vector<2x4x256xf32>
    %318 = arith.addf %312, %317 : vector<2x4x256xf32>
    %c0_265 = arith.constant 0 : index
    %c0_266 = arith.constant 0 : index
    %c53 = arith.constant 53 : index
    %319 = vector.load %arg2[%c0_265, %c0_266, %c53] : memref<1x4x72xf32, #tpu.memory_space<vmem>>, vector<1x4x1xf32>
    %c0_267 = arith.constant 0 : index
    %c53_268 = arith.constant 53 : index
    %c0_269 = arith.constant 0 : index
    %320 = vector.load %arg1[%c0_267, %c53_268, %c0_269] : memref<2x72x256xf32, #tpu.memory_space<vmem>>, vector<2x1x256xf32>
    %321 = vector.broadcast %319 : vector<1x4x1xf32> to vector<2x4x256xf32>
    %322 = vector.broadcast %320 : vector<2x1x256xf32> to vector<2x4x256xf32>
    %323 = arith.mulf %321, %322 : vector<2x4x256xf32>
    %324 = arith.addf %318, %323 : vector<2x4x256xf32>
    %c0_270 = arith.constant 0 : index
    %c0_271 = arith.constant 0 : index
    %c54 = arith.constant 54 : index
    %325 = vector.load %arg2[%c0_270, %c0_271, %c54] : memref<1x4x72xf32, #tpu.memory_space<vmem>>, vector<1x4x1xf32>
    %c0_272 = arith.constant 0 : index
    %c54_273 = arith.constant 54 : index
    %c0_274 = arith.constant 0 : index
    %326 = vector.load %arg1[%c0_272, %c54_273, %c0_274] : memref<2x72x256xf32, #tpu.memory_space<vmem>>, vector<2x1x256xf32>
    %327 = vector.broadcast %325 : vector<1x4x1xf32> to vector<2x4x256xf32>
    %328 = vector.broadcast %326 : vector<2x1x256xf32> to vector<2x4x256xf32>
    %329 = arith.mulf %327, %328 : vector<2x4x256xf32>
    %330 = arith.addf %324, %329 : vector<2x4x256xf32>
    %c0_275 = arith.constant 0 : index
    %c0_276 = arith.constant 0 : index
    %c55 = arith.constant 55 : index
    %331 = vector.load %arg2[%c0_275, %c0_276, %c55] : memref<1x4x72xf32, #tpu.memory_space<vmem>>, vector<1x4x1xf32>
    %c0_277 = arith.constant 0 : index
    %c55_278 = arith.constant 55 : index
    %c0_279 = arith.constant 0 : index
    %332 = vector.load %arg1[%c0_277, %c55_278, %c0_279] : memref<2x72x256xf32, #tpu.memory_space<vmem>>, vector<2x1x256xf32>
    %333 = vector.broadcast %331 : vector<1x4x1xf32> to vector<2x4x256xf32>
    %334 = vector.broadcast %332 : vector<2x1x256xf32> to vector<2x4x256xf32>
    %335 = arith.mulf %333, %334 : vector<2x4x256xf32>
    %336 = arith.addf %330, %335 : vector<2x4x256xf32>
    %c0_280 = arith.constant 0 : index
    %c0_281 = arith.constant 0 : index
    %c56 = arith.constant 56 : index
    %337 = vector.load %arg2[%c0_280, %c0_281, %c56] : memref<1x4x72xf32, #tpu.memory_space<vmem>>, vector<1x4x1xf32>
    %c0_282 = arith.constant 0 : index
    %c56_283 = arith.constant 56 : index
    %c0_284 = arith.constant 0 : index
    %338 = vector.load %arg1[%c0_282, %c56_283, %c0_284] : memref<2x72x256xf32, #tpu.memory_space<vmem>>, vector<2x1x256xf32>
    %339 = vector.broadcast %337 : vector<1x4x1xf32> to vector<2x4x256xf32>
    %340 = vector.broadcast %338 : vector<2x1x256xf32> to vector<2x4x256xf32>
    %341 = arith.mulf %339, %340 : vector<2x4x256xf32>
    %342 = arith.addf %336, %341 : vector<2x4x256xf32>
    %c0_285 = arith.constant 0 : index
    %c0_286 = arith.constant 0 : index
    %c57 = arith.constant 57 : index
    %343 = vector.load %arg2[%c0_285, %c0_286, %c57] : memref<1x4x72xf32, #tpu.memory_space<vmem>>, vector<1x4x1xf32>
    %c0_287 = arith.constant 0 : index
    %c57_288 = arith.constant 57 : index
    %c0_289 = arith.constant 0 : index
    %344 = vector.load %arg1[%c0_287, %c57_288, %c0_289] : memref<2x72x256xf32, #tpu.memory_space<vmem>>, vector<2x1x256xf32>
    %345 = vector.broadcast %343 : vector<1x4x1xf32> to vector<2x4x256xf32>
    %346 = vector.broadcast %344 : vector<2x1x256xf32> to vector<2x4x256xf32>
    %347 = arith.mulf %345, %346 : vector<2x4x256xf32>
    %348 = arith.addf %342, %347 : vector<2x4x256xf32>
    %c0_290 = arith.constant 0 : index
    %c0_291 = arith.constant 0 : index
    %c58 = arith.constant 58 : index
    %349 = vector.load %arg2[%c0_290, %c0_291, %c58] : memref<1x4x72xf32, #tpu.memory_space<vmem>>, vector<1x4x1xf32>
    %c0_292 = arith.constant 0 : index
    %c58_293 = arith.constant 58 : index
    %c0_294 = arith.constant 0 : index
    %350 = vector.load %arg1[%c0_292, %c58_293, %c0_294] : memref<2x72x256xf32, #tpu.memory_space<vmem>>, vector<2x1x256xf32>
    %351 = vector.broadcast %349 : vector<1x4x1xf32> to vector<2x4x256xf32>
    %352 = vector.broadcast %350 : vector<2x1x256xf32> to vector<2x4x256xf32>
    %353 = arith.mulf %351, %352 : vector<2x4x256xf32>
    %354 = arith.addf %348, %353 : vector<2x4x256xf32>
    %c0_295 = arith.constant 0 : index
    %c0_296 = arith.constant 0 : index
    %c59 = arith.constant 59 : index
    %355 = vector.load %arg2[%c0_295, %c0_296, %c59] : memref<1x4x72xf32, #tpu.memory_space<vmem>>, vector<1x4x1xf32>
    %c0_297 = arith.constant 0 : index
    %c59_298 = arith.constant 59 : index
    %c0_299 = arith.constant 0 : index
    %356 = vector.load %arg1[%c0_297, %c59_298, %c0_299] : memref<2x72x256xf32, #tpu.memory_space<vmem>>, vector<2x1x256xf32>
    %357 = vector.broadcast %355 : vector<1x4x1xf32> to vector<2x4x256xf32>
    %358 = vector.broadcast %356 : vector<2x1x256xf32> to vector<2x4x256xf32>
    %359 = arith.mulf %357, %358 : vector<2x4x256xf32>
    %360 = arith.addf %354, %359 : vector<2x4x256xf32>
    %c0_300 = arith.constant 0 : index
    %c0_301 = arith.constant 0 : index
    %c60 = arith.constant 60 : index
    %361 = vector.load %arg2[%c0_300, %c0_301, %c60] : memref<1x4x72xf32, #tpu.memory_space<vmem>>, vector<1x4x1xf32>
    %c0_302 = arith.constant 0 : index
    %c60_303 = arith.constant 60 : index
    %c0_304 = arith.constant 0 : index
    %362 = vector.load %arg1[%c0_302, %c60_303, %c0_304] : memref<2x72x256xf32, #tpu.memory_space<vmem>>, vector<2x1x256xf32>
    %363 = vector.broadcast %361 : vector<1x4x1xf32> to vector<2x4x256xf32>
    %364 = vector.broadcast %362 : vector<2x1x256xf32> to vector<2x4x256xf32>
    %365 = arith.mulf %363, %364 : vector<2x4x256xf32>
    %366 = arith.addf %360, %365 : vector<2x4x256xf32>
    %c0_305 = arith.constant 0 : index
    %c0_306 = arith.constant 0 : index
    %c61 = arith.constant 61 : index
    %367 = vector.load %arg2[%c0_305, %c0_306, %c61] : memref<1x4x72xf32, #tpu.memory_space<vmem>>, vector<1x4x1xf32>
    %c0_307 = arith.constant 0 : index
    %c61_308 = arith.constant 61 : index
    %c0_309 = arith.constant 0 : index
    %368 = vector.load %arg1[%c0_307, %c61_308, %c0_309] : memref<2x72x256xf32, #tpu.memory_space<vmem>>, vector<2x1x256xf32>
    %369 = vector.broadcast %367 : vector<1x4x1xf32> to vector<2x4x256xf32>
    %370 = vector.broadcast %368 : vector<2x1x256xf32> to vector<2x4x256xf32>
    %371 = arith.mulf %369, %370 : vector<2x4x256xf32>
    %372 = arith.addf %366, %371 : vector<2x4x256xf32>
    %c0_310 = arith.constant 0 : index
    %c0_311 = arith.constant 0 : index
    %c62 = arith.constant 62 : index
    %373 = vector.load %arg2[%c0_310, %c0_311, %c62] : memref<1x4x72xf32, #tpu.memory_space<vmem>>, vector<1x4x1xf32>
    %c0_312 = arith.constant 0 : index
    %c62_313 = arith.constant 62 : index
    %c0_314 = arith.constant 0 : index
    %374 = vector.load %arg1[%c0_312, %c62_313, %c0_314] : memref<2x72x256xf32, #tpu.memory_space<vmem>>, vector<2x1x256xf32>
    %375 = vector.broadcast %373 : vector<1x4x1xf32> to vector<2x4x256xf32>
    %376 = vector.broadcast %374 : vector<2x1x256xf32> to vector<2x4x256xf32>
    %377 = arith.mulf %375, %376 : vector<2x4x256xf32>
    %378 = arith.addf %372, %377 : vector<2x4x256xf32>
    %c0_315 = arith.constant 0 : index
    %c0_316 = arith.constant 0 : index
    %c63 = arith.constant 63 : index
    %379 = vector.load %arg2[%c0_315, %c0_316, %c63] : memref<1x4x72xf32, #tpu.memory_space<vmem>>, vector<1x4x1xf32>
    %c0_317 = arith.constant 0 : index
    %c63_318 = arith.constant 63 : index
    %c0_319 = arith.constant 0 : index
    %380 = vector.load %arg1[%c0_317, %c63_318, %c0_319] : memref<2x72x256xf32, #tpu.memory_space<vmem>>, vector<2x1x256xf32>
    %381 = vector.broadcast %379 : vector<1x4x1xf32> to vector<2x4x256xf32>
    %382 = vector.broadcast %380 : vector<2x1x256xf32> to vector<2x4x256xf32>
    %383 = arith.mulf %381, %382 : vector<2x4x256xf32>
    %384 = arith.addf %378, %383 : vector<2x4x256xf32>
    %c0_320 = arith.constant 0 : index
    %c0_321 = arith.constant 0 : index
    %c64 = arith.constant 64 : index
    %385 = vector.load %arg2[%c0_320, %c0_321, %c64] : memref<1x4x72xf32, #tpu.memory_space<vmem>>, vector<1x4x1xf32>
    %c0_322 = arith.constant 0 : index
    %c64_323 = arith.constant 64 : index
    %c0_324 = arith.constant 0 : index
    %386 = vector.load %arg1[%c0_322, %c64_323, %c0_324] : memref<2x72x256xf32, #tpu.memory_space<vmem>>, vector<2x1x256xf32>
    %387 = vector.broadcast %385 : vector<1x4x1xf32> to vector<2x4x256xf32>
    %388 = vector.broadcast %386 : vector<2x1x256xf32> to vector<2x4x256xf32>
    %389 = arith.mulf %387, %388 : vector<2x4x256xf32>
    %390 = arith.addf %384, %389 : vector<2x4x256xf32>
    %c0_325 = arith.constant 0 : index
    %c0_326 = arith.constant 0 : index
    %c65 = arith.constant 65 : index
    %391 = vector.load %arg2[%c0_325, %c0_326, %c65] : memref<1x4x72xf32, #tpu.memory_space<vmem>>, vector<1x4x1xf32>
    %c0_327 = arith.constant 0 : index
    %c65_328 = arith.constant 65 : index
    %c0_329 = arith.constant 0 : index
    %392 = vector.load %arg1[%c0_327, %c65_328, %c0_329] : memref<2x72x256xf32, #tpu.memory_space<vmem>>, vector<2x1x256xf32>
    %393 = vector.broadcast %391 : vector<1x4x1xf32> to vector<2x4x256xf32>
    %394 = vector.broadcast %392 : vector<2x1x256xf32> to vector<2x4x256xf32>
    %395 = arith.mulf %393, %394 : vector<2x4x256xf32>
    %396 = arith.addf %390, %395 : vector<2x4x256xf32>
    %c0_330 = arith.constant 0 : index
    %c0_331 = arith.constant 0 : index
    %c66 = arith.constant 66 : index
    %397 = vector.load %arg2[%c0_330, %c0_331, %c66] : memref<1x4x72xf32, #tpu.memory_space<vmem>>, vector<1x4x1xf32>
    %c0_332 = arith.constant 0 : index
    %c66_333 = arith.constant 66 : index
    %c0_334 = arith.constant 0 : index
    %398 = vector.load %arg1[%c0_332, %c66_333, %c0_334] : memref<2x72x256xf32, #tpu.memory_space<vmem>>, vector<2x1x256xf32>
    %399 = vector.broadcast %397 : vector<1x4x1xf32> to vector<2x4x256xf32>
    %400 = vector.broadcast %398 : vector<2x1x256xf32> to vector<2x4x256xf32>
    %401 = arith.mulf %399, %400 : vector<2x4x256xf32>
    %402 = arith.addf %396, %401 : vector<2x4x256xf32>
    %c0_335 = arith.constant 0 : index
    %c0_336 = arith.constant 0 : index
    %c67 = arith.constant 67 : index
    %403 = vector.load %arg2[%c0_335, %c0_336, %c67] : memref<1x4x72xf32, #tpu.memory_space<vmem>>, vector<1x4x1xf32>
    %c0_337 = arith.constant 0 : index
    %c67_338 = arith.constant 67 : index
    %c0_339 = arith.constant 0 : index
    %404 = vector.load %arg1[%c0_337, %c67_338, %c0_339] : memref<2x72x256xf32, #tpu.memory_space<vmem>>, vector<2x1x256xf32>
    %405 = vector.broadcast %403 : vector<1x4x1xf32> to vector<2x4x256xf32>
    %406 = vector.broadcast %404 : vector<2x1x256xf32> to vector<2x4x256xf32>
    %407 = arith.mulf %405, %406 : vector<2x4x256xf32>
    %408 = arith.addf %402, %407 : vector<2x4x256xf32>
    %c0_340 = arith.constant 0 : index
    %c0_341 = arith.constant 0 : index
    %c68 = arith.constant 68 : index
    %409 = vector.load %arg2[%c0_340, %c0_341, %c68] : memref<1x4x72xf32, #tpu.memory_space<vmem>>, vector<1x4x1xf32>
    %c0_342 = arith.constant 0 : index
    %c68_343 = arith.constant 68 : index
    %c0_344 = arith.constant 0 : index
    %410 = vector.load %arg1[%c0_342, %c68_343, %c0_344] : memref<2x72x256xf32, #tpu.memory_space<vmem>>, vector<2x1x256xf32>
    %411 = vector.broadcast %409 : vector<1x4x1xf32> to vector<2x4x256xf32>
    %412 = vector.broadcast %410 : vector<2x1x256xf32> to vector<2x4x256xf32>
    %413 = arith.mulf %411, %412 : vector<2x4x256xf32>
    %414 = arith.addf %408, %413 : vector<2x4x256xf32>
    %c0_345 = arith.constant 0 : index
    %c0_346 = arith.constant 0 : index
    %c69 = arith.constant 69 : index
    %415 = vector.load %arg2[%c0_345, %c0_346, %c69] : memref<1x4x72xf32, #tpu.memory_space<vmem>>, vector<1x4x1xf32>
    %c0_347 = arith.constant 0 : index
    %c69_348 = arith.constant 69 : index
    %c0_349 = arith.constant 0 : index
    %416 = vector.load %arg1[%c0_347, %c69_348, %c0_349] : memref<2x72x256xf32, #tpu.memory_space<vmem>>, vector<2x1x256xf32>
    %417 = vector.broadcast %415 : vector<1x4x1xf32> to vector<2x4x256xf32>
    %418 = vector.broadcast %416 : vector<2x1x256xf32> to vector<2x4x256xf32>
    %419 = arith.mulf %417, %418 : vector<2x4x256xf32>
    %420 = arith.addf %414, %419 : vector<2x4x256xf32>
    %c0_350 = arith.constant 0 : index
    %c0_351 = arith.constant 0 : index
    %c70 = arith.constant 70 : index
    %421 = vector.load %arg2[%c0_350, %c0_351, %c70] : memref<1x4x72xf32, #tpu.memory_space<vmem>>, vector<1x4x1xf32>
    %c0_352 = arith.constant 0 : index
    %c70_353 = arith.constant 70 : index
    %c0_354 = arith.constant 0 : index
    %422 = vector.load %arg1[%c0_352, %c70_353, %c0_354] : memref<2x72x256xf32, #tpu.memory_space<vmem>>, vector<2x1x256xf32>
    %423 = vector.broadcast %421 : vector<1x4x1xf32> to vector<2x4x256xf32>
    %424 = vector.broadcast %422 : vector<2x1x256xf32> to vector<2x4x256xf32>
    %425 = arith.mulf %423, %424 : vector<2x4x256xf32>
    %426 = arith.addf %420, %425 : vector<2x4x256xf32>
    %c0_355 = arith.constant 0 : index
    %c0_356 = arith.constant 0 : index
    %c71 = arith.constant 71 : index
    %427 = vector.load %arg2[%c0_355, %c0_356, %c71] : memref<1x4x72xf32, #tpu.memory_space<vmem>>, vector<1x4x1xf32>
    %c0_357 = arith.constant 0 : index
    %c71_358 = arith.constant 71 : index
    %c0_359 = arith.constant 0 : index
    %428 = vector.load %arg1[%c0_357, %c71_358, %c0_359] : memref<2x72x256xf32, #tpu.memory_space<vmem>>, vector<2x1x256xf32>
    %429 = vector.broadcast %427 : vector<1x4x1xf32> to vector<2x4x256xf32>
    %430 = vector.broadcast %428 : vector<2x1x256xf32> to vector<2x4x256xf32>
    %431 = arith.mulf %429, %430 : vector<2x4x256xf32>
    %432 = arith.addf %426, %431 : vector<2x4x256xf32>
    %c0_360 = arith.constant 0 : index
    %c0_361 = arith.constant 0 : index
    %c0_362 = arith.constant 0 : index
    %433 = vector.load %arg3[%c0_360, %c0_361, %c0_362] : memref<1x4x1xf32, #tpu.memory_space<vmem>>, vector<1x4x1xf32>
    %434 = vector.broadcast %433 : vector<1x4x1xf32> to vector<2x4x256xf32>
    %435 = arith.addf %432, %434 : vector<2x4x256xf32>
    %cst_363 = arith.constant 0.000000e+00 : f32
    %436 = vector.broadcast %cst_363 : f32 to vector<2x4x256xf32>
    %437 = arith.maximumf %435, %436 : vector<2x4x256xf32>
    %cst_364 = arith.constant dense<0.000000e+00> : vector<2x4xf32>
    %438 = vector.multi_reduction <add>, %437, %cst_364 [2] : vector<2x4x256xf32> to vector<2x4xf32>
    %439 = vector.shape_cast %438 : vector<2x4xf32> to vector<2x4x1xf32>
    %cst_365 = arith.constant 3.906250e-03 : f32
    %440 = vector.broadcast %cst_365 : f32 to vector<2x4x1xf32>
    %441 = arith.mulf %439, %440 : vector<2x4x1xf32>
    %cst_366 = arith.constant 0.000000e+00 : f32
    %442 = vector.broadcast %cst_366 : f32 to vector<2x4x1xf32>
    %c0_367 = arith.constant 0 : index
    %c0_368 = arith.constant 0 : index
    %c0_369 = arith.constant 0 : index
    %443 = vector.load %arg4[%c0_367, %c0_368, %c0_369] : memref<1x4x4xf32, #tpu.memory_space<vmem>>, vector<1x4x1xf32>
    %444 = vector.extract_strided_slice %441 {offsets = [0, 0, 0], sizes = [2, 1, 1], strides = [1, 1, 1]} : vector<2x4x1xf32> to vector<2x1x1xf32>
    %445 = vector.broadcast %443 : vector<1x4x1xf32> to vector<2x4x1xf32>
    %446 = vector.broadcast %444 : vector<2x1x1xf32> to vector<2x4x1xf32>
    %447 = arith.mulf %445, %446 : vector<2x4x1xf32>
    %448 = arith.addf %442, %447 : vector<2x4x1xf32>
    %c0_370 = arith.constant 0 : index
    %c0_371 = arith.constant 0 : index
    %c1_372 = arith.constant 1 : index
    %449 = vector.load %arg4[%c0_370, %c0_371, %c1_372] : memref<1x4x4xf32, #tpu.memory_space<vmem>>, vector<1x4x1xf32>
    %450 = vector.extract_strided_slice %441 {offsets = [0, 1, 0], sizes = [2, 1, 1], strides = [1, 1, 1]} : vector<2x4x1xf32> to vector<2x1x1xf32>
    %451 = vector.broadcast %449 : vector<1x4x1xf32> to vector<2x4x1xf32>
    %452 = vector.broadcast %450 : vector<2x1x1xf32> to vector<2x4x1xf32>
    %453 = arith.mulf %451, %452 : vector<2x4x1xf32>
    %454 = arith.addf %448, %453 : vector<2x4x1xf32>
    %c0_373 = arith.constant 0 : index
    %c0_374 = arith.constant 0 : index
    %c2_375 = arith.constant 2 : index
    %455 = vector.load %arg4[%c0_373, %c0_374, %c2_375] : memref<1x4x4xf32, #tpu.memory_space<vmem>>, vector<1x4x1xf32>
    %456 = vector.extract_strided_slice %441 {offsets = [0, 2, 0], sizes = [2, 1, 1], strides = [1, 1, 1]} : vector<2x4x1xf32> to vector<2x1x1xf32>
    %457 = vector.broadcast %455 : vector<1x4x1xf32> to vector<2x4x1xf32>
    %458 = vector.broadcast %456 : vector<2x1x1xf32> to vector<2x4x1xf32>
    %459 = arith.mulf %457, %458 : vector<2x4x1xf32>
    %460 = arith.addf %454, %459 : vector<2x4x1xf32>
    %c0_376 = arith.constant 0 : index
    %c0_377 = arith.constant 0 : index
    %c3_378 = arith.constant 3 : index
    %461 = vector.load %arg4[%c0_376, %c0_377, %c3_378] : memref<1x4x4xf32, #tpu.memory_space<vmem>>, vector<1x4x1xf32>
    %462 = vector.extract_strided_slice %441 {offsets = [0, 3, 0], sizes = [2, 1, 1], strides = [1, 1, 1]} : vector<2x4x1xf32> to vector<2x1x1xf32>
    %463 = vector.broadcast %461 : vector<1x4x1xf32> to vector<2x4x1xf32>
    %464 = vector.broadcast %462 : vector<2x1x1xf32> to vector<2x4x1xf32>
    %465 = arith.mulf %463, %464 : vector<2x4x1xf32>
    %466 = arith.addf %460, %465 : vector<2x4x1xf32>
    %c0_379 = arith.constant 0 : index
    %c0_380 = arith.constant 0 : index
    %c0_381 = arith.constant 0 : index
    %467 = vector.load %arg5[%c0_379, %c0_380, %c0_381] : memref<1x4x1xf32, #tpu.memory_space<vmem>>, vector<1x4x1xf32>
    %468 = vector.broadcast %467 : vector<1x4x1xf32> to vector<2x4x1xf32>
    %469 = arith.addf %466, %468 : vector<2x4x1xf32>
    %470 = arith.negf %469 : vector<2x4x1xf32>
    %471 = math.exp %470 : vector<2x4x1xf32>
    %cst_382 = arith.constant 1.000000e+00 : f32
    %472 = vector.broadcast %cst_382 : f32 to vector<2x4x1xf32>
    %473 = arith.addf %472, %471 : vector<2x4x1xf32>
    %474 = arith.divf %472, %473 : vector<2x4x1xf32>
    %475 = vector.broadcast %474 : vector<2x4x1xf32> to vector<2x4x256xf32>
    %476 = arith.mulf %437, %475 : vector<2x4x256xf32>
    %c0_383 = arith.constant 0 : index
    %c0_384 = arith.constant 0 : index
    %c0_385 = arith.constant 0 : index
    %477 = vector.load %arg6[%c0_383, %c0_384, %c0_385] : memref<2x4x256xf32, #tpu.memory_space<vmem>>, vector<2x4x256xf32>
    tpu.vector_store %arg6[%c0_383, %c0_384, %c0_385], %476 {strides = array<i32>} : memref<2x4x256xf32, #tpu.memory_space<vmem>>, vector<2x4x256xf32>,
    return
  }
  func.func @transform_0(%arg0: i32) -> (i32, i32, i32) {
    %c0_i32 = arith.constant 0 : i32
    %c0_i32_0 = arith.constant 0 : i32
    %c0_i32_1 = arith.constant 0 : i32
    return %arg0, %c0_i32, %c0_i32_0 : i32, i32, i32
  }
  func.func @transform_1(%arg0: i32) -> (i32, i32, i32) {
    %c0_i32 = arith.constant 0 : i32
    %c0_i32_0 = arith.constant 0 : i32
    %c0_i32_1 = arith.constant 0 : i32
    %c0_i32_2 = arith.constant 0 : i32
    return %c0_i32, %c0_i32_0, %c0_i32_1 : i32, i32, i32
  }
  func.func @transform_2(%arg0: i32) -> (i32, i32, i32) {
    %c0_i32 = arith.constant 0 : i32
    %c0_i32_0 = arith.constant 0 : i32
    %c0_i32_1 = arith.constant 0 : i32
    %c0_i32_2 = arith.constant 0 : i32
    return %c0_i32, %c0_i32_0, %c0_i32_1 : i32, i32, i32
  }
  func.func @transform_3(%arg0: i32) -> (i32, i32, i32) {
    %c0_i32 = arith.constant 0 : i32
    %c0_i32_0 = arith.constant 0 : i32
    %c0_i32_1 = arith.constant 0 : i32
    %c0_i32_2 = arith.constant 0 : i32
    return %c0_i32, %c0_i32_0, %c0_i32_1 : i32, i32, i32
  }
  func.func @transform_4(%arg0: i32) -> (i32, i32, i32) {
    %c0_i32 = arith.constant 0 : i32
    %c0_i32_0 = arith.constant 0 : i32
    %c0_i32_1 = arith.constant 0 : i32
    %c0_i32_2 = arith.constant 0 : i32
    return %c0_i32, %c0_i32_0, %c0_i32_1 : i32, i32, i32
  }
  func.func @transform_5(%arg0: i32) -> (i32, i32, i32) {
    %c0_i32 = arith.constant 0 : i32
    %c0_i32_0 = arith.constant 0 : i32
    %c0_i32_1 = arith.constant 0 : i32
    return %arg0, %c0_i32, %c0_i32_0 : i32, i32, i32
  }
}

</mosaic_0001>

<bundles_post_ra>
// kernel: attention_refinement_forward.1
= control target key start
LH: loop header
LB: loop body
LE: loop exit
PB: predicated region body
PF: predicated region fallthrough
CT: control target
= control target key end

     0   :  { %v3203_v0 = vmov 2   ;;  %v4294_v1 = vmov 0   ;;  %v3205_v3 = vmov 3   ;;  %v3206_v4 = vmov 1   ;;  %s3275_s24 = smov 127   ;;  %s3277_s25 = smov 125   ;;  %s4288_s1 = inlined_call_operand.vmem [shape: f32[1,4,72], index: 1, kind: input, shape index: {}]   ;;  %s4289_s0 = inlined_call_operand.vmem [shape: f32[2,72,256], index: 0, kind: input, shape index: {}]   ;;  %s4290_s2 = inlined_call_operand.vmem [shape: f32[1,4,1], index: 2, kind: input, shape index: {}]   ;;  %s4291_s3 = inlined_call_operand.vmem [shape: f32[1,4,4], index: 3, kind: input, shape index: {}]   ;;  %s4292_s4 = inlined_call_operand.vmem [shape: f32[1,4,1], index: 4, kind: input, shape index: {}]   ;;  %s4293_s5 = inlined_call_operand.vmem [shape: f32[2,4,256], index: 5, kind: output, shape index: {}]  }
   0x1   :  { %3122 = vset.pattern.permute.xlu1 %v3203_v0  ;;  %3120 = vset.pattern.permute.xlu0 %v4294_v1  ;;  %v3312_v2 = vld [vmem:[%s4288_s1] sm:$0xf]  ;;  %v3207_v5 = vmov 4   ;;  %v3208_v6 = vmov 5   ;;  %v3209_v7 = vmov 6   ;;  %v3210_v8 = vmov 8  }
   0x2   :  { %102 = vperm.xlu1 %3122, %v3312_v2   ;;  %26 = vperm.xlu0 %3120, %v3312_v2   ;;  %v3211_v9 = vmov 7   ;;  %v3212_v10 = vmov 11   ;;  %v3213_v11 = vmov 9   ;;  %v3214_v12 = vmov 14  }
   0x3   :  { %v3215_v13 = vmov 10   ;;  %v3216_v14 = vmov 17   ;;  %v3217_v15 = vmov 12   ;;  %v3218_v16 = vmov 20  }
   0x4   :  { %v3219_v17 = vmov 13   ;;  %v3220_v18 = vmov 23   ;;  %v3221_v19 = vmov 15   ;;  %v3222_v20 = vmov 26  }
   0x5   :  { %v3223_v21 = vmov 16   ;;  %v3224_v22 = vmov 29   ;;  %v3225_v23 = vmov 18   ;;  %v3226_v24 = vmov 32  }
   0x6   :  { %3123 = vset.pattern.permute.xlu1 %v3205_v3  ;;  %3121 = vset.pattern.permute.xlu0 %v3206_v4  ;;  %v3227_v25 = vmov 19   ;;  %v3228_v26 = vmov 35   ;;  %v3229_v27 = vmov 21   ;;  %v3230_v28 = vmov 38  }
   0x7   :  { %140 = vperm.xlu1 %3123, %v3312_v2   ;;  %64 = vperm.xlu0 %3121, %v3312_v2   ;;  %v3231_v29 = vmov 22   ;;  %v3232_v30 = vmov 41   ;;  %v3233_v31 = vmov 24   ;;  %v3234_v32 = vmov 44  }
   0x8   :  { %v3235_v33 = vmov 25   ;;  %v3236_v34 = vmov 47   ;;  %v3237_v35 = vmov 27   ;;  %v3238_v36 = vmov 50  }
   0x9   :  { %v3239_v37 = vmov 28   ;;  %v3240_v38 = vmov 53   ;;  %v3241_v39 = vmov 30   ;;  %v3242_v40 = vmov 56  }
   0xa   :  { %v3243_v41 = vmov 31   ;;  %v3244_v42 = vmov 59   ;;  %v3245_v43 = vmov 33   ;;  %v3246_v44 = vmov 62  }
   0xb   :  { %3124 = vset.pattern.permute.xlu1 %v3207_v5  ;;  %3125 = vset.pattern.permute.xlu0 %v3208_v6  ;;  %v3247_v45 = vmov 34   ;;  %v3248_v46 = vmov 65   ;;  %v31_v47 = vlaneseq  ;;  %v3249_v48 = vmov 36   ;;  %v3373_v54 = vld [vmem:[%s4289_s0 + $0x2] ss:$8 sm:$0x3] }
   0xc   :  { %178 = vperm.xlu1 %3124, %v3312_v2   ;;  %216 = vperm.xlu0 %3125, %v3312_v2   ;;  %v3250_v49 = vmov 68   ;;  %v3251_v51 = vmov 37   ;;  %v3252_v55 = vmov 71   ;;  %v3379_v56 = vld [vmem:[%s4289_s0 + $0x92] ss:$8 sm:$0x3] }
   0xd   :  { %v3361_v50 = vshrl.u32 %v31_v47, 7  ;;  %v21_v57 = vld [vmem:[%s4289_s0] ss:$8 sm:$0x3]  ;;  %v3253_v3 = vmov 39   ;;  %vm2771_vm0 = vcmask 1043456  }
   0xe   :  { %v2900_v58 = vld [vmem:[%s4289_s0 + $0x90] ss:$8 sm:$0x3]  ;;  %v3391_v59 = vld [vmem:[%s4289_s0 + $0x3] ss:$8 sm:$0x3] }
   0xf   :  { %v3365_v52 = vsub.s32 0, %v3361_v50  ;;  %v3368_v53 = vsub.s32 1, %v3361_v50  ;;  %v3396_v60 = vld [vmem:[%s4289_s0 + $0x93] ss:$8 sm:$0x3] }
  0x10   :  { %3126 = vset.pattern.permute.xlu1 %v3209_v7  ;;  %3128 = vset.pattern.permute.xlu0 %v3210_v8  ;;  %v3401_v61 = vld [vmem:[%s4289_s0 + $0x1] ss:$8 sm:$0x3]  ;;  %v3410_v0 = vld [vmem:[%s4289_s0 + $0x91] ss:$8 sm:$0x3] }
  0x11   :  { %254 = vperm.xlu1 %3126, %v3312_v2   ;;  %330 = vperm.xlu0 %3128, %v3312_v2   ;;  %v110_v62 = vrot.slane %v3373_v54, %v3365_v52  ;;  %v114_v63 = vrot.slane %v3373_v54, %v3368_v53  ;;  %v118_v4 = vrot.slane %v3379_v56, %v3365_v52  ;;  %v3421_v8 = vld [vmem:[%s4289_s0 + $0x4] ss:$8 sm:$0x3] }
  0x12   :  { %v122_v5 = vrot.slane %v3379_v56, %v3368_v53  ;;  %v34_v6 = vrot.slane %v21_v57, %v3365_v52  ;;  %v38_v7 = vrot.slane %v21_v57, %v3368_v53 }
  0x15   :  { %3127 = vset.pattern.permute.xlu1 %v3211_v9  ;;  %3131 = vset.pattern.permute.xlu0 %v3212_v10  ;;  %v3426_v9 = vld [vmem:[%s4289_s0 + $0x94] ss:$8 sm:$0x3]  ;;  %v42_v10 = vrot.slane %v2900_v58, %v3365_v52 }
  0x16   :  { %292 = vperm.xlu1 %3127, %v3312_v2   ;;  %444 = vperm.xlu0 %3131, %v3312_v2  }
  0x1a   :  { %3129 = vset.pattern.permute.xlu1 %v3213_v11  ;;  %3134 = vset.pattern.permute.xlu0 %v3214_v12  ;;  %v46_v11 = vrot.slane %v2900_v58, %v3368_v53  ;;  %v148_v12 = vrot.slane %v3391_v59, %v3365_v52 }
  0x1b   :  { %368 = vperm.xlu1 %3129, %v3312_v2   ;;  %558 = vperm.xlu0 %3134, %v3312_v2  }
  0x1f   :  { %3130 = vset.pattern.permute.xlu1 %v3215_v13  ;;  %3137 = vset.pattern.permute.xlu0 %v3216_v14  ;;  %v3436_v13 = vld [vmem:[%s4289_s0 + $0x5] ss:$8 sm:$0x3]  ;;  %v152_v14 = vrot.slane %v3391_v59, %v3368_v53 }
  0x20   :  { %406 = vperm.xlu1 %3130, %v3312_v2   ;;  %672 = vperm.xlu0 %3137, %v3312_v2  }
  0x24   :  { %3132 = vset.pattern.permute.xlu1 %v3217_v15  ;;  %3140 = vset.pattern.permute.xlu0 %v3218_v16  ;;  %v156_v15 = vrot.slane %v3396_v60, %v3365_v52  ;;  %v160_v16 = vrot.slane %v3396_v60, %v3368_v53 }
  0x25   :  { %482 = vperm.xlu1 %3132, %v3312_v2   ;;  %786 = vperm.xlu0 %3140, %v3312_v2  }
  0x29   :  { %3133 = vset.pattern.permute.xlu1 %v3219_v17  ;;  %3143 = vset.pattern.permute.xlu0 %v3220_v18  ;;  %v72_v17 = vrot.slane %v3401_v61, %v3365_v52  ;;  %v3450_v18 = vld [vmem:[%s4289_s0 + $0x95] ss:$8 sm:$0x3] }
  0x2a   :  { %520 = vperm.xlu1 %3133, %v3312_v2   ;;  %900 = vperm.xlu0 %3143, %v3312_v2  }
  0x2e   :  { %3135 = vset.pattern.permute.xlu1 %v3221_v19  ;;  %3146 = vset.pattern.permute.xlu0 %v3222_v20 }
  0x2f   :  { %596 = vperm.xlu1 %3135, %v3312_v2   ;;  %1014 = vperm.xlu0 %3146, %v3312_v2  }
  0x33   :  { %3136 = vset.pattern.permute.xlu1 %v3223_v21  ;;  %3149 = vset.pattern.permute.xlu0 %v3224_v22  ;;  %v76_v21 = vrot.slane %v3401_v61, %v3368_v53  ;;  %v80_v22 = vrot.slane %v3410_v0, %v3365_v52 }
  0x34   :  { %634 = vperm.xlu1 %3136, %v3312_v2   ;;  %1128 = vperm.xlu0 %3149, %v3312_v2  }
  0x38   :  { %3138 = vset.pattern.permute.xlu1 %v3225_v23  ;;  %3152 = vset.pattern.permute.xlu0 %v3226_v24  ;;  %v84_v23 = vrot.slane %v3410_v0, %v3368_v53  ;;  %v186_v24 = vrot.slane %v3421_v8, %v3365_v52 }
  0x39   :  { %710 = vperm.xlu1 %3138, %v3312_v2   ;;  %1242 = vperm.xlu0 %3152, %v3312_v2  }
  0x3d   :  { %3139 = vset.pattern.permute.xlu1 %v3227_v25  ;;  %3155 = vset.pattern.permute.xlu0 %v3228_v26  ;;  %v3463_v25 = vld [vmem:[%s4289_s0 + $0x6] ss:$8 sm:$0x3]  ;;  %v3468_v26 = vld [vmem:[%s4289_s0 + $0x96] ss:$8 sm:$0x3] }
  0x3e   :  { %748 = vperm.xlu1 %3139, %v3312_v2   ;;  %1356 = vperm.xlu0 %3155, %v3312_v2  }
  0x42   :  { %3141 = vset.pattern.permute.xlu1 %v3229_v27  ;;  %3158 = vset.pattern.permute.xlu0 %v3230_v28  ;;  %v190_v27 = vrot.slane %v3421_v8, %v3368_v53  ;;  %v194_v28 = vrot.slane %v3426_v9, %v3365_v52 }
  0x43   :  { %824 = vperm.xlu1 %3141, %v3312_v2   ;;  %1470 = vperm.xlu0 %3158, %v3312_v2  }
  0x47   :  { %3142 = vset.pattern.permute.xlu1 %v3231_v29  ;;  %3161 = vset.pattern.permute.xlu0 %v3232_v30  ;;  %v198_v29 = vrot.slane %v3426_v9, %v3368_v53  ;;  %v224_v30 = vrot.slane %v3436_v13, %v3365_v52  ;;  %v3255_v9 = vmov 42  }
  0x48   :  { %862 = vperm.xlu1 %3142, %v3312_v2   ;;  %1584 = vperm.xlu0 %3161, %v3312_v2  }
  0x4c   :  { %3144 = vset.pattern.permute.xlu1 %v3233_v31  ;;  %3164 = vset.pattern.permute.xlu0 %v3234_v32  ;;  %v3481_v31 = vld [vmem:[%s4289_s0 + $0x7] ss:$8 sm:$0x3]  ;;  %v3486_v32 = vld [vmem:[%s4289_s0 + $0x97] ss:$8 sm:$0x3] }
  0x4d   :  { %938 = vperm.xlu1 %3144, %v3312_v2   ;;  %1698 = vperm.xlu0 %3164, %v3312_v2  }
  0x51   :  { %3145 = vset.pattern.permute.xlu1 %v3235_v33  ;;  %3167 = vset.pattern.permute.xlu0 %v3236_v34  ;;  %v3254_v33 = vmov 40   ;;  %v228_v34 = vrot.slane %v3436_v13, %v3368_v53 }
  0x52   :  { %976 = vperm.xlu1 %3145, %v3312_v2   ;;  %1812 = vperm.xlu0 %3167, %v3312_v2  }
  0x56   :  { %3147 = vset.pattern.permute.xlu1 %v3237_v35  ;;  %3170 = vset.pattern.permute.xlu0 %v3238_v36  ;;  %v232_v35 = vrot.slane %v3450_v18, %v3365_v52  ;;  %v236_v36 = vrot.slane %v3450_v18, %v3368_v53 }
  0x57   :  { %1052 = vperm.xlu1 %3147, %v3312_v2   ;;  %1926 = vperm.xlu0 %3170, %v3312_v2  }
  0x5b   :  { %3148 = vset.pattern.permute.xlu1 %v3239_v37  ;;  %3173 = vset.pattern.permute.xlu0 %v3240_v38  ;;  %v262_v37 = vrot.slane %v3463_v25, %v3365_v52  ;;  %v266_v38 = vrot.slane %v3463_v25, %v3368_v53 }
  0x5c   :  { %1090 = vperm.xlu1 %3148, %v3312_v2   ;;  %2040 = vperm.xlu0 %3173, %v3312_v2  }
  0x60   :  { %3150 = vset.pattern.permute.xlu1 %v3241_v39  ;;  %3176 = vset.pattern.permute.xlu0 %v3242_v40  ;;  %v270_v39 = vrot.slane %v3468_v26, %v3365_v52  ;;  %v274_v40 = vrot.slane %v3468_v26, %v3368_v53 }
  0x61   :  { %1166 = vperm.xlu1 %3150, %v3312_v2   ;;  %2154 = vperm.xlu0 %3176, %v3312_v2  }
  0x65   :  { %3151 = vset.pattern.permute.xlu1 %v3243_v41  ;;  %3179 = vset.pattern.permute.xlu0 %v3244_v42  ;;  %v3506_v41 = vld [vmem:[%s4289_s0 + $0x10] ss:$8 sm:$0x3]  ;;  %v3511_v42 = vld [vmem:[%s4289_s0 + $0xa0] ss:$8 sm:$0x3] }
  0x66   :  { %1204 = vperm.xlu1 %3151, %v3312_v2   ;;  %2268 = vperm.xlu0 %3179, %v3312_v2   ;;  %v338_v58 = vrot.slane %v3506_v41, %v3365_v52  ;;  %v342_v60 = vrot.slane %v3506_v41, %v3368_v53  ;;  %v346_v61 = vrot.slane %v3511_v42, %v3365_v52 }
  0x67   :  { %v350_v0 = vrot.slane %v3511_v42, %v3368_v53  ;;  %v4295_v42 = vrot.slane %v3486_v32, %v3365_v52 }
  0x6a   :  { %3153 = vset.pattern.permute.xlu1 %v3245_v43  ;;  %3182 = vset.pattern.permute.xlu0 %v3246_v44  ;;  %v300_v43 = vrot.slane %v3481_v31, %v3365_v52  ;;  %v304_v44 = vrot.slane %v3481_v31, %v3368_v53 }
  0x6b   :  { %1280 = vperm.xlu1 %3153, %v3312_v2   ;;  %2382 = vperm.xlu0 %3182, %v3312_v2  }
  0x6f   :  { %3154 = vset.pattern.permute.xlu1 %v3247_v45  ;;  %3185 = vset.pattern.permute.xlu0 %v3248_v46 }
  0x70   :  { %1318 = vperm.xlu1 %3154, %v3312_v2   ;;  %2496 = vperm.xlu0 %3185, %v3312_v2  }
  0x74   :  { %3156 = vset.pattern.permute.xlu1 %v3249_v48  ;;  %3188 = vset.pattern.permute.xlu0 %v3250_v49 }
  0x75   :  { %1394 = vperm.xlu1 %3156, %v3312_v2   ;;  %2610 = vperm.xlu0 %3188, %v3312_v2  }
  0x79   :  { %3157 = vset.pattern.permute.xlu1 %v3251_v51  ;;  %3191 = vset.pattern.permute.xlu0 %v3252_v55 }
  0x7a   :  { %1432 = vperm.xlu1 %3157, %v3312_v2   ;;  %2724 = vperm.xlu0 %3191, %v3312_v2  }
  0x7e   :  { %3159 = vset.pattern.permute.xlu1 %v3253_v3  ;;  %3193 = vset.pattern.permute.xlu0 %v4294_v1 }
  0x7f   :  { %1508 = vperm.xlu1 %3159, %v3312_v2  }
  0x81   :  { %v103_v19 = vpop.permute.xlu1 %102  ;;  %v27_v20 = vpop.permute.xlu0 %26 }
  0x82   :  { %v51_v47 = vmul.f32 %v34_v6, %v27_v20  ;;  %v52_v48 = vmul.f32 %v38_v7, %v27_v20  ;;  %v53_v49 = vmul.f32 %v42_v10, %v27_v20  ;;  %v54_v51 = vmul.f32 %v46_v11, %v27_v20 }
  0x83   :  { %3160 = vset.pattern.permute.xlu1 %v3254_v33  ;;  %v127_v10 = vmul.f32 %v110_v62, %v103_v19  ;;  %v128_v11 = vmul.f32 %v114_v63, %v103_v19  ;;  %v129_v18 = vmul.f32 %v118_v4, %v103_v19 }
  0x84   :  { %1546 = vperm.xlu1 %3160, %v3312_v2  }
  0x86   :  { %v141_v55 = vpop.permute.xlu1 %140  ;;  %v65_v57 = vpop.permute.xlu0 %64 }
  0x87   :  { %v89_v3 = vmul.f32 %v72_v17, %v65_v57  ;;  %v90_v8 = vmul.f32 %v76_v21, %v65_v57  ;;  %v91_v6 = vmul.f32 %v80_v22, %v65_v57  ;;  %v92_v7 = vmul.f32 %v84_v23, %v65_v57 }
  0x88   :  { %3162 = vset.pattern.permute.xlu1 %v3255_v9  ;;  %v130_v17 = vmul.f32 %v122_v5, %v103_v19  ;;  %v165_v62 = vmul.f32 %v148_v12, %v141_v55  ;;  %v166_v54 = vmul.f32 %v152_v14, %v141_v55  ;;  %v167_v63 = vmul.f32 %v156_v15, %v141_v55 }
  0x89   :  { %1622 = vperm.xlu1 %3162, %v3312_v2   ;;  %v93_v20 = vadd.f32 %v89_v3, %v51_v47  ;;  %v94_v21 = vadd.f32 %v90_v8, %v52_v48  ;;  %v95_v22 = vadd.f32 %v91_v6, %v53_v49  ;;  %v96_v23 = vadd.f32 %v92_v7, %v54_v51  ;;  %v2917_v8 = vld [vmem:[%s4289_s0 + $0x11] ss:$8 sm:$0x3] }
  0x8a   :  { %v168_v33 = vmul.f32 %v160_v16, %v141_v55  ;;  %v3256_v48 = vmov 43   ;;  %v3257_v7 = vmov 45   ;;  %v376_v25 = vrot.slane %v2917_v8, %v3365_v52 }
  0x8b   :  { %v179_v57 = vpop.permute.xlu1 %178  ;;  %v131_v9 = vadd.f32 %v127_v10, %v93_v20  ;;  %v132_v4 = vadd.f32 %v128_v11, %v94_v21  ;;  %v133_v1 = vadd.f32 %v129_v18, %v95_v22  ;;  %v134_v46 = vadd.f32 %v130_v17, %v96_v23  ;;  %v217_v56 = vpop.permute.xlu0 %216  ;;  %v2921_v21 = vld [vmem:[%s4289_s0 + $0x13] ss:$8 sm:$0x3] }
  0x8c   :  { %v203_v5 = vmul.f32 %v186_v24, %v179_v57  ;;  %v204_v19 = vmul.f32 %v190_v27, %v179_v57  ;;  %v205_v45 = vmul.f32 %v194_v28, %v179_v57  ;;  %v206_v47 = vmul.f32 %v198_v29, %v179_v57  ;;  %v2920_v57 = vld [vmem:[%s4289_s0 + $0xa2] ss:$8 sm:$0x3] }
  0x8d   :  { %3163 = vset.pattern.permute.xlu1 %v3256_v48  ;;  %v169_v49 = vadd.f32 %v165_v62, %v131_v9  ;;  %v170_v51 = vadd.f32 %v166_v54, %v132_v4  ;;  %v171_v3 = vadd.f32 %v167_v63, %v133_v1  ;;  %v172_v59 = vadd.f32 %v168_v33, %v134_v46  ;;  %v2919_v33 = vld [vmem:[%s4289_s0 + $0x12] ss:$8 sm:$0x3] }
  0x8e   :  { %1660 = vperm.xlu1 %3163, %v3312_v2   ;;  %v241_v12 = vmul.f32 %v224_v30, %v217_v56  ;;  %v242_v14 = vmul.f32 %v228_v34, %v217_v56  ;;  %v243_v15 = vmul.f32 %v232_v35, %v217_v56  ;;  %v244_v16 = vmul.f32 %v236_v36, %v217_v56 }
  0x8f   :  { %v207_v55 = vadd.f32 %v203_v5, %v169_v49  ;;  %v208_v24 = vadd.f32 %v204_v19, %v170_v51  ;;  %v209_v27 = vadd.f32 %v205_v45, %v171_v3  ;;  %v210_v28 = vadd.f32 %v206_v47, %v172_v59  ;;  %v2923_v3 = vld [vmem:[%s4289_s0 + $0x14] ss:$8 sm:$0x3] }
  0x90   :  { %v255_v29 = vpop.permute.xlu1 %254  ;;  %v331_v35 = vpop.permute.xlu0 %330  ;;  %v3258_v22 = vmov 46   ;;  %v380_v31 = vrot.slane %v2917_v8, %v3368_v53  ;;  %v452_v9 = vrot.slane %v2921_v21, %v3365_v52  ;;  %v456_v4 = vrot.slane %v2921_v21, %v3368_v53 }
  0x91   :  { %v279_v1 = vmul.f32 %v262_v37, %v255_v29  ;;  %v280_v13 = vmul.f32 %v266_v38, %v255_v29  ;;  %v281_v30 = vmul.f32 %v270_v39, %v255_v29  ;;  %v282_v34 = vmul.f32 %v274_v40, %v255_v29  ;;  %v2918_v40 = vld [vmem:[%s4289_s0 + $0xa1] ss:$8 sm:$0x3] }
  0x92   :  { %v245_v36 = vadd.f32 %v241_v12, %v207_v55  ;;  %v246_v45 = vadd.f32 %v242_v14, %v208_v24  ;;  %v247_v46 = vadd.f32 %v243_v15, %v209_v27  ;;  %v248_v6 = vadd.f32 %v244_v16, %v210_v28  ;;  %3165 = vset.pattern.permute.xlu1 %v3257_v7 }
  0x93   :  { %1736 = vperm.xlu1 %3165, %v3312_v2   ;;  %v355_v37 = vmul.f32 %v338_v58, %v331_v35  ;;  %v356_v26 = vmul.f32 %v342_v60, %v331_v35  ;;  %v357_v38 = vmul.f32 %v346_v61, %v331_v35  ;;  %v358_v39 = vmul.f32 %v350_v0, %v331_v35  ;;  %v2924_v35 = vld [vmem:[%s4289_s0 + $0xa4] ss:$8 sm:$0x3] }
  0x94   :  { %v283_v10 = vadd.f32 %v279_v1, %v245_v36  ;;  %v284_v11 = vadd.f32 %v280_v13, %v246_v45  ;;  %v285_v18 = vadd.f32 %v281_v30, %v247_v46  ;;  %v286_v58 = vadd.f32 %v282_v34, %v248_v6 }
  0x95   :  { %v293_v17 = vpop.permute.xlu1 %292  ;;  %v4296_v0 = vrot.slane %v3486_v32, %v3368_v53  ;;  %v388_v23 = vrot.slane %v2918_v40, %v3368_v53  ;;  %v445_v16 = vpop.permute.xlu0 %444  ;;  %v3259_v55 = vmov 48   ;;  %v414_v24 = vrot.slane %v2919_v33, %v3365_v52 }
  0x96   :  { %v317_v41 = vmul.f32 %v300_v43, %v293_v17  ;;  %v318_v60 = vmul.f32 %v304_v44, %v293_v17  ;;  %v319_v61 = vmul.f32 %v4295_v42, %v293_v17  ;;  %v2922_v43 = vld [vmem:[%s4289_s0 + $0xa3] ss:$8 sm:$0x3]  ;;  %v384_v44 = vrot.slane %v2918_v40, %v3365_v52  ;;  %v2928_v40 = vld [vmem:[%s4289_s0 + $0xa6] ss:$8 sm:$0x3] }
  0x97   :  { %v320_v20 = vmul.f32 %v4296_v0, %v293_v17  ;;  %3166 = vset.pattern.permute.xlu1 %v3258_v22  ;;  %v460_v56 = vrot.slane %v2922_v43, %v3365_v52  ;;  %v464_v5 = vrot.slane %v2922_v43, %v3368_v53  ;;  %v418_v27 = vrot.slane %v2919_v33, %v3368_v53  ;;  %v2926_v0 = vld [vmem:[%s4289_s0 + $0xa5] ss:$8 sm:$0x3] }
  0x98   :  { %v321_v62 = vadd.f32 %v317_v41, %v283_v10  ;;  %v322_v54 = vadd.f32 %v318_v60, %v284_v11  ;;  %v323_v32 = vadd.f32 %v319_v61, %v285_v18  ;;  %1774 = vperm.xlu1 %3166, %v3312_v2   ;;  %v422_v28 = vrot.slane %v2920_v57, %v3365_v52  ;;  %v2925_v61 = vld [vmem:[%s4289_s0 + $0x15] ss:$8 sm:$0x3] }
  0x99   :  { %v324_v63 = vadd.f32 %v320_v20, %v286_v58  ;;  %v426_v29 = vrot.slane %v2920_v57, %v3368_v53  ;;  %v490_v8 = vrot.slane %v2923_v3, %v3365_v52  ;;  %v469_v1 = vmul.f32 %v452_v9, %v445_v16 }
  0x9a   :  { %v359_v19 = vadd.f32 %v355_v37, %v321_v62  ;;  %v360_v47 = vadd.f32 %v356_v26, %v322_v54  ;;  %v361_v48 = vadd.f32 %v357_v38, %v323_v32  ;;  %v369_v51 = vpop.permute.xlu1 %368  ;;  %v470_v13 = vmul.f32 %v456_v4, %v445_v16  ;;  %v2929_v32 = vld [vmem:[%s4289_s0 + $0x17] ss:$8 sm:$0x3]  ;;  %v559_v4 = vpop.permute.xlu0 %558 }
  0x9b   :  { %v362_v49 = vadd.f32 %v358_v39, %v324_v63  ;;  %v393_v59 = vmul.f32 %v376_v25, %v369_v51  ;;  %v394_v12 = vmul.f32 %v380_v31, %v369_v51  ;;  %v395_v14 = vmul.f32 %v384_v44, %v369_v51  ;;  %v2927_v39 = vld [vmem:[%s4289_s0 + $0x16] ss:$8 sm:$0x3] }
  0x9c   :  { %v396_v15 = vmul.f32 %v388_v23, %v369_v51  ;;  %3168 = vset.pattern.permute.xlu1 %v3259_v55  ;;  %v471_v30 = vmul.f32 %v460_v56, %v445_v16  ;;  %v472_v34 = vmul.f32 %v464_v5, %v445_v16  ;;  %v3260_v10 = vmov 49  }
  0x9d   :  { %1850 = vperm.xlu1 %3168, %v3312_v2   ;;  %v397_v36 = vadd.f32 %v393_v59, %v359_v19  ;;  %v398_v45 = vadd.f32 %v394_v12, %v360_v47  ;;  %v399_v46 = vadd.f32 %v395_v14, %v361_v48  ;;  %v494_v11 = vrot.slane %v2923_v3, %v3368_v53  ;;  %v2930_v14 = vld [vmem:[%s4289_s0 + $0xa7] ss:$8 sm:$0x3] }
  0x9e   :  { %v400_v6 = vadd.f32 %v396_v15, %v362_v49  ;;  %v498_v18 = vrot.slane %v2924_v35, %v3365_v52  ;;  %v502_v58 = vrot.slane %v2924_v35, %v3368_v53  ;;  %v566_v20 = vrot.slane %v2927_v39, %v3365_v52 }
  0x9f   :  { %v407_v7 = vpop.permute.xlu1 %406  ;;  %v570_v21 = vrot.slane %v2927_v39, %v3368_v53  ;;  %v574_v43 = vrot.slane %v2928_v40, %v3365_v52  ;;  %v578_v22 = vrot.slane %v2928_v40, %v3368_v53  ;;  %v3261_v56 = vmov 51  }
  0xa0   :  { %v431_v25 = vmul.f32 %v414_v24, %v407_v7  ;;  %v432_v37 = vmul.f32 %v418_v27, %v407_v7  ;;  %v433_v26 = vmul.f32 %v422_v28, %v407_v7  ;;  %v434_v38 = vmul.f32 %v426_v29, %v407_v7 }
  0xa1   :  { %3169 = vset.pattern.permute.xlu1 %v3260_v10  ;;  %v528_v5 = vrot.slane %v2925_v61, %v3365_v52  ;;  %v532_v19 = vrot.slane %v2925_v61, %v3368_v53  ;;  %v536_v47 = vrot.slane %v2926_v0, %v3365_v52  ;;  %v540_v48 = vrot.slane %v2926_v0, %v3368_v53 }
  0xa2   :  { %v435_v17 = vadd.f32 %v431_v25, %v397_v36  ;;  %v436_v41 = vadd.f32 %v432_v37, %v398_v45  ;;  %v437_v60 = vadd.f32 %v433_v26, %v399_v46  ;;  %v438_v42 = vadd.f32 %v434_v38, %v400_v6  ;;  %1888 = vperm.xlu1 %3169, %v3312_v2   ;;  %v2931_v37 = vld [vmem:[%s4289_s0 + $0x20] ss:$8 sm:$0x3]  ;;  %v2932_v26 = vld [vmem:[%s4289_s0 + $0xb0] ss:$8 sm:$0x3] }
  0xa3   :  { %v604_v49 = vrot.slane %v2929_v32, %v3365_v52  ;;  %v583_v51 = vmul.f32 %v566_v20, %v559_v4  ;;  %v584_v3 = vmul.f32 %v570_v21, %v559_v4  ;;  %v585_v59 = vmul.f32 %v574_v43, %v559_v4  ;;  %v673_v21 = vpop.permute.xlu0 %672 }
  0xa4   :  { %v473_v31 = vadd.f32 %v469_v1, %v435_v17  ;;  %v474_v44 = vadd.f32 %v470_v13, %v436_v41  ;;  %v475_v23 = vadd.f32 %v471_v30, %v437_v60  ;;  %v476_v62 = vadd.f32 %v472_v34, %v438_v42  ;;  %v483_v54 = vpop.permute.xlu1 %482  ;;  %v2933_v13 = vld [vmem:[%s4289_s0 + $0x21] ss:$8 sm:$0x3]  ;;  %v2934_v30 = vld [vmem:[%s4289_s0 + $0xb1] ss:$8 sm:$0x3] }
  0xa5   :  { %v507_v63 = vmul.f32 %v490_v8, %v483_v54  ;;  %v508_v33 = vmul.f32 %v494_v11, %v483_v54  ;;  %v509_v57 = vmul.f32 %v498_v18, %v483_v54  ;;  %v510_v9 = vmul.f32 %v502_v58, %v483_v54  ;;  %v2935_v60 = vld [vmem:[%s4289_s0 + $0x22] ss:$8 sm:$0x3] }
  0xa6   :  { %3171 = vset.pattern.permute.xlu1 %v3261_v56  ;;  %v586_v12 = vmul.f32 %v578_v22, %v559_v4  ;;  %v3262_v34 = vmov 52   ;;  %v608_v35 = vrot.slane %v2929_v32, %v3368_v53  ;;  %v612_v36 = vrot.slane %v2930_v14, %v3365_v52 }
  0xa7   :  { %1964 = vperm.xlu1 %3171, %v3312_v2   ;;  %v511_v15 = vadd.f32 %v507_v63, %v473_v31  ;;  %v512_v16 = vadd.f32 %v508_v33, %v474_v44  ;;  %v513_v55 = vadd.f32 %v509_v57, %v475_v23  ;;  %v514_v24 = vadd.f32 %v510_v9, %v476_v62  ;;  %v2936_v57 = vld [vmem:[%s4289_s0 + $0xb2] ss:$8 sm:$0x3] }
  0xa8   :  { %v616_v45 = vrot.slane %v2930_v14, %v3368_v53  ;;  %v680_v38 = vrot.slane %v2933_v13, %v3365_v52  ;;  %v684_v39 = vrot.slane %v2933_v13, %v3368_v53  ;;  %v688_v40 = vrot.slane %v2934_v30, %v3365_v52 }
  0xa9   :  { %v521_v27 = vpop.permute.xlu1 %520  ;;  %v692_v10 = vrot.slane %v2934_v30, %v3368_v53  ;;  %v3263_v43 = vmov 54   ;;  %v642_v22 = vrot.slane %v2931_v37, %v3365_v52  ;;  %v646_v31 = vrot.slane %v2931_v37, %v3368_v53 }
  0xaa   :  { %v545_v28 = vmul.f32 %v528_v5, %v521_v27  ;;  %v546_v29 = vmul.f32 %v532_v19, %v521_v27  ;;  %v547_v8 = vmul.f32 %v536_v47, %v521_v27  ;;  %v548_v1 = vmul.f32 %v540_v48, %v521_v27 }
  0xab   :  { %3172 = vset.pattern.permute.xlu1 %v3262_v34  ;;  %v650_v44 = vrot.slane %v2932_v26, %v3365_v52  ;;  %v654_v23 = vrot.slane %v2932_v26, %v3368_v53  ;;  %v718_v62 = vrot.slane %v2935_v60, %v3365_v52  ;;  %v697_v54 = vmul.f32 %v680_v38, %v673_v21 }
  0xac   :  { %v549_v46 = vadd.f32 %v545_v28, %v511_v15  ;;  %v550_v6 = vadd.f32 %v546_v29, %v512_v16  ;;  %v551_v7 = vadd.f32 %v547_v8, %v513_v55  ;;  %v552_v25 = vadd.f32 %v548_v1, %v514_v24  ;;  %2002 = vperm.xlu1 %3172, %v3312_v2   ;;  %v2937_v29 = vld [vmem:[%s4289_s0 + $0x23] ss:$8 sm:$0x3]  ;;  %v2938_v8 = vld [vmem:[%s4289_s0 + $0xb3] ss:$8 sm:$0x3] }
  0xad   :  { %v698_v32 = vmul.f32 %v684_v39, %v673_v21  ;;  %v699_v63 = vmul.f32 %v688_v40, %v673_v21  ;;  %v700_v33 = vmul.f32 %v692_v10, %v673_v21  ;;  %v722_v14 = vrot.slane %v2935_v60, %v3368_v53  ;;  %v787_v39 = vpop.permute.xlu0 %786 }
  0xae   :  { %v587_v11 = vadd.f32 %v583_v51, %v549_v46  ;;  %v588_v18 = vadd.f32 %v584_v3, %v550_v6  ;;  %v589_v58 = vadd.f32 %v585_v59, %v551_v7  ;;  %v590_v17 = vadd.f32 %v586_v12, %v552_v25  ;;  %v597_v41 = vpop.permute.xlu1 %596  ;;  %v2939_v3 = vld [vmem:[%s4289_s0 + $0x24] ss:$8 sm:$0x3]  ;;  %v2940_v59 = vld [vmem:[%s4289_s0 + $0xb4] ss:$8 sm:$0x3] }
  0xaf   :  { %v621_v42 = vmul.f32 %v604_v49, %v597_v41  ;;  %v622_v61 = vmul.f32 %v608_v35, %v597_v41  ;;  %v623_v0 = vmul.f32 %v612_v36, %v597_v41  ;;  %v624_v20 = vmul.f32 %v616_v45, %v597_v41  ;;  %v2941_v7 = vld [vmem:[%s4289_s0 + $0x25] ss:$8 sm:$0x3] }
  0xb0   :  { %3174 = vset.pattern.permute.xlu1 %v3263_v43  ;;  %v3264_v12 = vmov 55   ;;  %v726_v15 = vrot.slane %v2936_v57, %v3365_v52  ;;  %v730_v16 = vrot.slane %v2936_v57, %v3368_v53  ;;  %v794_v1 = vrot.slane %v2939_v3, %v3365_v52 }
  0xb1   :  { %2078 = vperm.xlu1 %3174, %v3312_v2   ;;  %v625_v9 = vadd.f32 %v621_v42, %v587_v11  ;;  %v626_v4 = vadd.f32 %v622_v61, %v588_v18  ;;  %v627_v56 = vadd.f32 %v623_v0, %v589_v58  ;;  %v628_v5 = vadd.f32 %v624_v20, %v590_v17  ;;  %v2942_v0 = vld [vmem:[%s4289_s0 + $0xb5] ss:$8 sm:$0x3] }
  0xb2   :  { %v798_v13 = vrot.slane %v2939_v3, %v3368_v53  ;;  %v802_v30 = vrot.slane %v2940_v59, %v3365_v52  ;;  %v806_v34 = vrot.slane %v2940_v59, %v3368_v53  ;;  %v3265_v40 = vmov 57  }
  0xb3   :  { %v635_v19 = vpop.permute.xlu1 %634  ;;  %v756_v10 = vrot.slane %v2937_v29, %v3365_v52  ;;  %v760_v11 = vrot.slane %v2937_v29, %v3368_v53  ;;  %v764_v18 = vrot.slane %v2938_v8, %v3365_v52  ;;  %v768_v58 = vrot.slane %v2938_v8, %v3368_v53 }
  0xb4   :  { %v659_v47 = vmul.f32 %v642_v22, %v635_v19  ;;  %v660_v48 = vmul.f32 %v646_v31, %v635_v19  ;;  %v661_v49 = vmul.f32 %v650_v44, %v635_v19  ;;  %v662_v51 = vmul.f32 %v654_v23, %v635_v19 }
  0xb5   :  { %3175 = vset.pattern.permute.xlu1 %v3264_v12  ;;  %v832_v17 = vrot.slane %v2941_v7, %v3365_v52  ;;  %v811_v41 = vmul.f32 %v794_v1, %v787_v39  ;;  %v812_v60 = vmul.f32 %v798_v13, %v787_v39  ;;  %v813_v42 = vmul.f32 %v802_v30, %v787_v39  ;;  %v901_v1 = vpop.permute.xlu0 %900 }
  0xb6   :  { %v663_v55 = vadd.f32 %v659_v47, %v625_v9  ;;  %v664_v24 = vadd.f32 %v660_v48, %v626_v4  ;;  %v665_v27 = vadd.f32 %v661_v49, %v627_v56  ;;  %v666_v28 = vadd.f32 %v662_v51, %v628_v5  ;;  %2116 = vperm.xlu1 %3175, %v3312_v2   ;;  %v2943_v48 = vld [vmem:[%s4289_s0 + $0x26] ss:$8 sm:$0x3]  ;;  %v2944_v49 = vld [vmem:[%s4289_s0 + $0xb6] ss:$8 sm:$0x3] }
  0xb7   :  { %v814_v61 = vmul.f32 %v806_v34, %v787_v39  ;;  %v836_v57 = vrot.slane %v2941_v7, %v3368_v53  ;;  %v840_v9 = vrot.slane %v2942_v0, %v3365_v52  ;;  %v844_v4 = vrot.slane %v2942_v0, %v3368_v53 }
  0xb8   :  { %v701_v35 = vadd.f32 %v697_v54, %v663_v55  ;;  %v702_v36 = vadd.f32 %v698_v32, %v664_v24  ;;  %v703_v45 = vadd.f32 %v699_v63, %v665_v27  ;;  %v704_v46 = vadd.f32 %v700_v33, %v666_v28  ;;  %v711_v6 = vpop.permute.xlu1 %710  ;;  %v2945_v32 = vld [vmem:[%s4289_s0 + $0x27] ss:$8 sm:$0x3]  ;;  %v2946_v63 = vld [vmem:[%s4289_s0 + $0xb7] ss:$8 sm:$0x3] }
  0xb9   :  { %v735_v25 = vmul.f32 %v718_v62, %v711_v6  ;;  %v736_v37 = vmul.f32 %v722_v14, %v711_v6  ;;  %v737_v26 = vmul.f32 %v726_v15, %v711_v6  ;;  %v738_v38 = vmul.f32 %v730_v16, %v711_v6  ;;  %v2947_v24 = vld [vmem:[%s4289_s0 + $0x30] ss:$8 sm:$0x3] }
  0xba   :  { %3177 = vset.pattern.permute.xlu1 %v3265_v40  ;;  %v3266_v33 = vmov 58   ;;  %v908_v51 = vrot.slane %v2945_v32, %v3365_v52  ;;  %v912_v3 = vrot.slane %v2945_v32, %v3368_v53  ;;  %v916_v59 = vrot.slane %v2946_v63, %v3365_v52 }
  0xbb   :  { %2192 = vperm.xlu1 %3177, %v3312_v2   ;;  %v739_v20 = vadd.f32 %v735_v25, %v701_v35  ;;  %v740_v21 = vadd.f32 %v736_v37, %v702_v36  ;;  %v741_v43 = vadd.f32 %v737_v26, %v703_v45  ;;  %v742_v22 = vadd.f32 %v738_v38, %v704_v46  ;;  %v3751_v45 = vld [vmem:[%s4288_s1] sm:$0xf] }
  0xbc   :  { %v920_v12 = vrot.slane %v2946_v63, %v3368_v53  ;;  %v3267_v13 = vmov 60   ;;  %v870_v30 = vrot.slane %v2943_v48, %v3365_v52  ;;  %v874_v34 = vrot.slane %v2943_v48, %v3368_v53  ;;  %v2948_v26 = vld [vmem:[%s4289_s0 + $0xc0] ss:$8 sm:$0x3] }
  0xbd   :  { %v749_v31 = vpop.permute.xlu1 %748  ;;  %v878_v35 = vrot.slane %v2944_v49, %v3365_v52  ;;  %v882_v36 = vrot.slane %v2944_v49, %v3368_v53  ;;  %v946_v46 = vrot.slane %v2947_v24, %v3365_v52  ;;  %v925_v6 = vmul.f32 %v908_v51, %v901_v1 }
  0xbe   :  { %v773_v44 = vmul.f32 %v756_v10, %v749_v31  ;;  %v774_v23 = vmul.f32 %v760_v11, %v749_v31  ;;  %v775_v62 = vmul.f32 %v764_v18, %v749_v31  ;;  %v776_v54 = vmul.f32 %v768_v58, %v749_v31 }
  0xbf   :  { %3178 = vset.pattern.permute.xlu1 %v3266_v33  ;;  %v926_v7 = vmul.f32 %v912_v3, %v901_v1  ;;  %v927_v25 = vmul.f32 %v916_v59, %v901_v1  ;;  %v928_v37 = vmul.f32 %v920_v12, %v901_v1  ;;  %v950_v0 = vrot.slane %v2947_v24, %v3368_v53  ;;  %v1015_v3 = vpop.permute.xlu0 %1014 }
  0xc0   :  { %v777_v56 = vadd.f32 %v773_v44, %v739_v20  ;;  %v778_v5 = vadd.f32 %v774_v23, %v740_v21  ;;  %v779_v19 = vadd.f32 %v775_v62, %v741_v43  ;;  %v780_v47 = vadd.f32 %v776_v54, %v742_v22  ;;  %2230 = vperm.xlu1 %3178, %v3312_v2   ;;  %v2949_v23 = vld [vmem:[%s4289_s0 + $0x31] ss:$8 sm:$0x3]  ;;  %v2950_v62 = vld [vmem:[%s4289_s0 + $0xc1] ss:$8 sm:$0x3] }
  0xc1   :  { %v954_v20 = vrot.slane %v2948_v26, %v3365_v52  ;;  %v958_v21 = vrot.slane %v2948_v26, %v3368_v53  ;;  %v3269_v59 = vmov 63   ;;  %v984_v12 = vrot.slane %v2949_v23, %v3365_v52 }
  0xc2   :  { %v815_v14 = vadd.f32 %v811_v41, %v777_v56  ;;  %v816_v15 = vadd.f32 %v812_v60, %v778_v5  ;;  %v817_v16 = vadd.f32 %v813_v42, %v779_v19  ;;  %v818_v2 = vadd.f32 %v814_v61, %v780_v47  ;;  %v825_v55 = vpop.permute.xlu1 %824  ;;  %v2951_v60 = vld [vmem:[%s4289_s0 + $0x32] ss:$8 sm:$0x3]  ;;  %v2952_v42 = vld [vmem:[%s4289_s0 + $0xc2] ss:$8 sm:$0x3] }
  0xc3   :  { %v849_v27 = vmul.f32 %v832_v17, %v825_v55  ;;  %v850_v28 = vmul.f32 %v836_v57, %v825_v55  ;;  %v851_v29 = vmul.f32 %v840_v9, %v825_v55  ;;  %v852_v8 = vmul.f32 %v844_v4, %v825_v55  ;;  %v2953_v19 = vld [vmem:[%s4289_s0 + $0x33] ss:$8 sm:$0x3] }
  0xc4   :  { %3180 = vset.pattern.permute.xlu1 %v3267_v13  ;;  %v3268_v61 = vmov 61   ;;  %v1022_v54 = vrot.slane %v2951_v60, %v3365_v52  ;;  %v1026_v32 = vrot.slane %v2951_v60, %v3368_v53  ;;  %v1030_v63 = vrot.slane %v2952_v42, %v3365_v52 }
  0xc5   :  { %2306 = vperm.xlu1 %3180, %v3751_v45   ;;  %v853_v38 = vadd.f32 %v849_v27, %v815_v14  ;;  %v854_v39 = vadd.f32 %v850_v28, %v816_v15  ;;  %v855_v40 = vadd.f32 %v851_v29, %v817_v16  ;;  %v856_v10 = vadd.f32 %v852_v8, %v818_v2  ;;  %v2954_v29 = vld [vmem:[%s4289_s0 + $0xc3] ss:$8 sm:$0x3] }
  0xc6   :  { %v1034_v33 = vrot.slane %v2952_v42, %v3368_v53  ;;  %v988_v14 = vrot.slane %v2949_v23, %v3368_v53  ;;  %v992_v15 = vrot.slane %v2950_v62, %v3365_v52  ;;  %v996_v16 = vrot.slane %v2950_v62, %v3368_v53 }
  0xc7   :  { %v863_v11 = vpop.permute.xlu1 %862  ;;  %v1060_v2 = vrot.slane %v2953_v19, %v3365_v52  ;;  %v1039_v55 = vmul.f32 %v1022_v54, %v1015_v3  ;;  %v1040_v24 = vmul.f32 %v1026_v32, %v1015_v3  ;;  %v1041_v27 = vmul.f32 %v1030_v63, %v1015_v3  ;;  %v1129_v32 = vpop.permute.xlu0 %1128 }
  0xc8   :  { %v887_v18 = vmul.f32 %v870_v30, %v863_v11  ;;  %v888_v58 = vmul.f32 %v874_v34, %v863_v11  ;;  %v889_v17 = vmul.f32 %v878_v35, %v863_v11  ;;  %v890_v41 = vmul.f32 %v882_v36, %v863_v11 }
  0xc9   :  { %3181 = vset.pattern.permute.xlu1 %v3268_v61  ;;  %v1042_v28 = vmul.f32 %v1034_v33, %v1015_v3  ;;  %v1064_v26 = vrot.slane %v2953_v19, %v3368_v53  ;;  %v3271_v63 = vmov 66  }
  0xca   :  { %v891_v43 = vadd.f32 %v887_v18, %v853_v38  ;;  %v892_v22 = vadd.f32 %v888_v58, %v854_v39  ;;  %v893_v31 = vadd.f32 %v889_v17, %v855_v40  ;;  %v894_v44 = vadd.f32 %v890_v41, %v856_v10  ;;  %2344 = vperm.xlu1 %3181, %v3751_v45   ;;  %v2955_v58 = vld [vmem:[%s4289_s0 + $0x34] ss:$8 sm:$0x3]  ;;  %v2956_v17 = vld [vmem:[%s4289_s0 + $0xc4] ss:$8 sm:$0x3] }
  0xcb   :  { %v1068_v38 = vrot.slane %v2954_v29, %v3365_v52  ;;  %v1072_v39 = vrot.slane %v2954_v29, %v3368_v53  ;;  %v1098_v33 = vrot.slane %v2955_v58, %v3365_v52 }
  0xcc   :  { %v929_v57 = vadd.f32 %v925_v6, %v891_v43  ;;  %v930_v9 = vadd.f32 %v926_v7, %v892_v22  ;;  %v931_v4 = vadd.f32 %v927_v25, %v893_v31  ;;  %v932_v56 = vadd.f32 %v928_v37, %v894_v44  ;;  %v939_v5 = vpop.permute.xlu1 %938  ;;  %v2957_v7 = vld [vmem:[%s4289_s0 + $0x35] ss:$8 sm:$0x3]  ;;  %v2958_v25 = vld [vmem:[%s4289_s0 + $0xc5] ss:$8 sm:$0x3] }
  0xcd   :  { %v963_v47 = vmul.f32 %v946_v46, %v939_v5  ;;  %v964_v48 = vmul.f32 %v950_v0, %v939_v5  ;;  %v965_v49 = vmul.f32 %v954_v20, %v939_v5  ;;  %v966_v51 = vmul.f32 %v958_v21, %v939_v5  ;;  %v2959_v31 = vld [vmem:[%s4289_s0 + $0x36] ss:$8 sm:$0x3] }
  0xce   :  { %3183 = vset.pattern.permute.xlu1 %v3269_v59  ;;  %v3270_v37 = vmov 64   ;;  %v1136_v41 = vrot.slane %v2957_v7, %v3365_v52  ;;  %v1140_v60 = vrot.slane %v2957_v7, %v3368_v53  ;;  %v1144_v42 = vrot.slane %v2958_v25, %v3365_v52 }
  0xcf   :  { %2420 = vperm.xlu1 %3183, %v3751_v45   ;;  %v967_v8 = vadd.f32 %v963_v47, %v929_v57  ;;  %v968_v1 = vadd.f32 %v964_v48, %v930_v9  ;;  %v969_v13 = vadd.f32 %v965_v49, %v931_v4  ;;  %v970_v30 = vadd.f32 %v966_v51, %v932_v56  ;;  %v2960_v49 = vld [vmem:[%s4289_s0 + $0xc6] ss:$8 sm:$0x3] }
  0xd0   :  { %v1148_v61 = vrot.slane %v2958_v25, %v3368_v53  ;;  %v1102_v57 = vrot.slane %v2955_v58, %v3368_v53  ;;  %v1106_v9 = vrot.slane %v2956_v17, %v3365_v52  ;;  %v1110_v4 = vrot.slane %v2956_v17, %v3368_v53 }
  0xd1   :  { %v977_v34 = vpop.permute.xlu1 %976  ;;  %v1174_v56 = vrot.slane %v2959_v31, %v3365_v52  ;;  %v1153_v5 = vmul.f32 %v1136_v41, %v1129_v32  ;;  %v1154_v19 = vmul.f32 %v1140_v60, %v1129_v32  ;;  %v1155_v47 = vmul.f32 %v1144_v42, %v1129_v32  ;;  %v1243_v41 = vpop.permute.xlu0 %1242 }
  0xd2   :  { %v1001_v35 = vmul.f32 %v984_v12, %v977_v34  ;;  %v1002_v36 = vmul.f32 %v988_v14, %v977_v34  ;;  %v1003_v46 = vmul.f32 %v992_v15, %v977_v34  ;;  %v1004_v6 = vmul.f32 %v996_v16, %v977_v34 }
  0xd3   :  { %3184 = vset.pattern.permute.xlu1 %v3270_v37  ;;  %v1156_v48 = vmul.f32 %v1148_v61, %v1129_v32  ;;  %v1178_v29 = vrot.slane %v2959_v31, %v3368_v53  ;;  %v3273_v60 = vmov 69  }
  0xd4   :  { %v1005_v40 = vadd.f32 %v1001_v35, %v967_v8  ;;  %v1006_v10 = vadd.f32 %v1002_v36, %v968_v1  ;;  %v1007_v11 = vadd.f32 %v1003_v46, %v969_v13  ;;  %v1008_v18 = vadd.f32 %v1004_v6, %v970_v30  ;;  %2458 = vperm.xlu1 %3184, %v3751_v45   ;;  %v2961_v36 = vld [vmem:[%s4289_s0 + $0x37] ss:$8 sm:$0x3]  ;;  %v2962_v46 = vld [vmem:[%s4289_s0 + $0xc7] ss:$8 sm:$0x3] }
  0xd5   :  { %v1182_v8 = vrot.slane %v2960_v49, %v3365_v52  ;;  %v1186_v1 = vrot.slane %v2960_v49, %v3368_v53  ;;  %v1212_v42 = vrot.slane %v2961_v36, %v3365_v52  ;;  %v1216_v61 = vrot.slane %v2961_v36, %v3368_v53 }
  0xd6   :  { %v1043_v0 = vadd.f32 %v1039_v55, %v1005_v40  ;;  %v1044_v20 = vadd.f32 %v1040_v24, %v1006_v10  ;;  %v1045_v21 = vadd.f32 %v1041_v27, %v1007_v11  ;;  %v1046_v43 = vadd.f32 %v1042_v28, %v1008_v18  ;;  %v1053_v22 = vpop.permute.xlu1 %1052  ;;  %v2963_v24 = vld [vmem:[%s4289_s0 + $0x40] ss:$8 sm:$0x3]  ;;  %v2964_v27 = vld [vmem:[%s4289_s0 + $0xd0] ss:$8 sm:$0x3] }
  0xd7   :  { %v1077_v44 = vmul.f32 %v1060_v2, %v1053_v22  ;;  %v1078_v23 = vmul.f32 %v1064_v26, %v1053_v22  ;;  %v1079_v62 = vmul.f32 %v1068_v38, %v1053_v22  ;;  %v1080_v54 = vmul.f32 %v1072_v39, %v1053_v22 }
  0xd8   :  { %3186 = vset.pattern.permute.xlu1 %v3271_v63  ;;  %v3272_v28 = vmov 67   ;;  %v1250_v6 = vrot.slane %v2963_v24, %v3365_v52  ;;  %v1254_v7 = vrot.slane %v2963_v24, %v3368_v53  ;;  %v1258_v25 = vrot.slane %v2964_v27, %v3365_v52 }
  0xd9   :  { %2534 = vperm.xlu1 %3186, %v3751_v45   ;;  %v1081_v51 = vadd.f32 %v1077_v44, %v1043_v0  ;;  %v1082_v3 = vadd.f32 %v1078_v23, %v1044_v20  ;;  %v1083_v59 = vadd.f32 %v1079_v62, %v1045_v21  ;;  %v1084_v12 = vadd.f32 %v1080_v54, %v1046_v43  ;;  %v2965_v44 = vld [vmem:[%s4289_s0 + $0x41] ss:$8 sm:$0x3]  ;;  %v2966_v23 = vld [vmem:[%s4289_s0 + $0xd1] ss:$8 sm:$0x3] }
  0xda   :  { %v1262_v37 = vrot.slane %v2964_v27, %v3368_v53  ;;  %v1220_v0 = vrot.slane %v2962_v46, %v3365_v52  ;;  %v1224_v20 = vrot.slane %v2962_v46, %v3368_v53  ;;  %v1267_v21 = vmul.f32 %v1250_v6, %v1243_v41  ;;  %v1357_v6 = vpop.permute.xlu0 %1356 }
  0xdb   :  { %v1091_v14 = vpop.permute.xlu1 %1090  ;;  %v1268_v43 = vmul.f32 %v1254_v7, %v1243_v41  ;;  %v1269_v22 = vmul.f32 %v1258_v25, %v1243_v41  ;;  %v1292_v49 = vrot.slane %v2965_v44, %v3368_v53  ;;  %v4297_v7 = vmov 0  }
  0xdc   :  { %v1115_v15 = vmul.f32 %v1098_v33, %v1091_v14  ;;  %v1116_v16 = vmul.f32 %v1102_v57, %v1091_v14  ;;  %v1117_v2 = vmul.f32 %v1106_v9, %v1091_v14  ;;  %v1118_v55 = vmul.f32 %v1110_v4, %v1091_v14 }
  0xdd   :  { %3187 = vset.pattern.permute.xlu1 %v3272_v28  ;;  %v1270_v31 = vmul.f32 %v1262_v37, %v1243_v41 }
  0xde   :  { %v1119_v13 = vadd.f32 %v1115_v15, %v1081_v51  ;;  %v1120_v30 = vadd.f32 %v1116_v16, %v1082_v3  ;;  %v1121_v34 = vadd.f32 %v1117_v2, %v1083_v59  ;;  %v1122_v35 = vadd.f32 %v1118_v55, %v1084_v12  ;;  %2572 = vperm.xlu1 %3187, %v3751_v45   ;;  %v2967_v16 = vld [vmem:[%s4289_s0 + $0x42] ss:$8 sm:$0x3]  ;;  %v2968_v2 = vld [vmem:[%s4289_s0 + $0xd2] ss:$8 sm:$0x3] }
  0xdf   :  { %v1296_v51 = vrot.slane %v2966_v23, %v3365_v52  ;;  %v1300_v3 = vrot.slane %v2966_v23, %v3368_v53  ;;  %v1326_v25 = vrot.slane %v2967_v16, %v3365_v52  ;;  %v1330_v37 = vrot.slane %v2967_v16, %v3368_v53 }
  0xe0   :  { %v1157_v26 = vadd.f32 %v1153_v5, %v1119_v13  ;;  %v1158_v38 = vadd.f32 %v1154_v19, %v1120_v30  ;;  %v1159_v39 = vadd.f32 %v1155_v47, %v1121_v34  ;;  %v1160_v40 = vadd.f32 %v1156_v48, %v1122_v35  ;;  %v1167_v10 = vpop.permute.xlu1 %1166  ;;  %v2969_v5 = vld [vmem:[%s4289_s0 + $0x43] ss:$8 sm:$0x3]  ;;  %v2970_v19 = vld [vmem:[%s4289_s0 + $0xd3] ss:$8 sm:$0x3] }
  0xe1   :  { %v1191_v11 = vmul.f32 %v1174_v56, %v1167_v10  ;;  %v1192_v18 = vmul.f32 %v1178_v29, %v1167_v10  ;;  %v1193_v58 = vmul.f32 %v1182_v8, %v1167_v10  ;;  %v1194_v17 = vmul.f32 %v1186_v1, %v1167_v10  ;;  %v2757_v30 = vld [vmem:[%s4290_s2] sm:$0xf] }
  0xe2   :  { %3189 = vset.pattern.permute.xlu1 %v3273_v60  ;;  %v3274_v47 = vmov 70   ;;  %v1288_v48 = vrot.slane %v2965_v44, %v3365_v52  ;;  %v1364_v55 = vrot.slane %v2969_v5, %v3365_v52  ;;  %v1368_v24 = vrot.slane %v2969_v5, %v3368_v53 }
  0xe3   :  { %2648 = vperm.xlu1 %3189, %v3751_v45   ;;  %v1195_v62 = vadd.f32 %v1191_v11, %v1157_v26  ;;  %v1196_v54 = vadd.f32 %v1192_v18, %v1158_v38  ;;  %v1197_v32 = vadd.f32 %v1193_v58, %v1159_v39  ;;  %v1198_v63 = vadd.f32 %v1194_v17, %v1160_v40  ;;  %v2971_v18 = vld [vmem:[%s4289_s0 + $0x44] ss:$8 sm:$0x3]  ;;  %v2972_v58 = vld [vmem:[%s4289_s0 + $0xd4] ss:$8 sm:$0x3] }
  0xe4   :  { %v1372_v27 = vrot.slane %v2970_v19, %v3365_v52  ;;  %v1376_v28 = vrot.slane %v2970_v19, %v3368_v53  ;;  %v1334_v26 = vrot.slane %v2968_v2, %v3365_v52  ;;  %v1338_v38 = vrot.slane %v2968_v2, %v3368_v53  ;;  %v1471_v2 = vpop.permute.xlu0 %1470 }
  0xe5   :  { %v1205_v33 = vpop.permute.xlu1 %1204  ;;  %v1381_v39 = vmul.f32 %v1364_v55, %v1357_v6  ;;  %v1382_v40 = vmul.f32 %v1368_v24, %v1357_v6  ;;  %v1402_v44 = vrot.slane %v2971_v18, %v3365_v52  ;;  %v1406_v23 = vrot.slane %v2971_v18, %v3368_v53 }
  0xe6   :  { %v1229_v57 = vmul.f32 %v1212_v42, %v1205_v33  ;;  %v1230_v9 = vmul.f32 %v1216_v61, %v1205_v33  ;;  %v1231_v4 = vmul.f32 %v1220_v0, %v1205_v33  ;;  %v1232_v56 = vmul.f32 %v1224_v20, %v1205_v33 }
  0xe7   :  { %3190 = vset.pattern.permute.xlu1 %v3274_v47  ;;  %v1383_v10 = vmul.f32 %v1372_v27, %v1357_v6  ;;  %v1384_v11 = vmul.f32 %v1376_v28, %v1357_v6 }
  0xe8   :  { %v1233_v59 = vadd.f32 %v1229_v57, %v1195_v62  ;;  %v1234_v12 = vadd.f32 %v1230_v9, %v1196_v54  ;;  %v1235_v14 = vadd.f32 %v1231_v4, %v1197_v32  ;;  %v1236_v15 = vadd.f32 %v1232_v56, %v1198_v63  ;;  %2686 = vperm.xlu1 %3190, %v3751_v45   ;;  %v2973_v9 = vld [vmem:[%s4289_s0 + $0x45] ss:$8 sm:$0x3]  ;;  %v2974_v4 = vld [vmem:[%s4289_s0 + $0xd5] ss:$8 sm:$0x3] }
  0xe9   :  { %v1410_v62 = vrot.slane %v2972_v58, %v3365_v52  ;;  %v1414_v54 = vrot.slane %v2972_v58, %v3368_v53  ;;  %v1440_v55 = vrot.slane %v2973_v9, %v3365_v52  ;;  %v1444_v24 = vrot.slane %v2973_v9, %v3368_v53 }
  0xea   :  { %v1271_v29 = vadd.f32 %v1267_v21, %v1233_v59  ;;  %v1272_v8 = vadd.f32 %v1268_v43, %v1234_v12  ;;  %v1273_v1 = vadd.f32 %v1269_v22, %v1235_v14  ;;  %v1274_v45 = vadd.f32 %v1270_v31, %v1236_v15  ;;  %v1281_v13 = vpop.permute.xlu1 %1280  ;;  %v2975_v22 = vld [vmem:[%s4289_s0 + $0x46] ss:$8 sm:$0x3]  ;;  %v2976_v31 = vld [vmem:[%s4289_s0 + $0xd6] ss:$8 sm:$0x3] }
  0xeb   :  { %v1305_v34 = vmul.f32 %v1288_v48, %v1281_v13  ;;  %v1306_v35 = vmul.f32 %v1292_v49, %v1281_v13  ;;  %v1307_v36 = vmul.f32 %v1296_v51, %v1281_v13  ;;  %v1308_v46 = vmul.f32 %v1300_v3, %v1281_v13  ;;  %v2977_v13 = vld [vmem:[%s4289_s0 + $0x47] ss:$8 sm:$0x3] }
  0xec   :  { %3192 = vset.pattern.permute.xlu1 %v4297_v7  ;;  %v1478_v56 = vrot.slane %v2975_v22, %v3365_v52  ;;  %v1482_v5 = vrot.slane %v2975_v22, %v3368_v53  ;;  %v1486_v19 = vrot.slane %v2976_v31, %v3365_v52  ;;  %v1490_v47 = vrot.slane %v2976_v31, %v3368_v53 }
  0xed   :  { %2760 = vperm.xlu1 %3192, %v2757_v30   ;;  %v1309_v17 = vadd.f32 %v1305_v34, %v1271_v29  ;;  %v1310_v41 = vadd.f32 %v1306_v35, %v1272_v8  ;;  %v1311_v60 = vadd.f32 %v1307_v36, %v1273_v1  ;;  %v1312_v42 = vadd.f32 %v1308_v46, %v1274_v45  ;;  %v2978_v30 = vld [vmem:[%s4289_s0 + $0xd7] ss:$8 sm:$0x3] }
  0xee   :  { %v1448_v27 = vrot.slane %v2974_v4, %v3365_v52  ;;  %v1452_v28 = vrot.slane %v2974_v4, %v3368_v53  ;;  %v1495_v29 = vmul.f32 %v1478_v56, %v1471_v2  ;;  %v1496_v8 = vmul.f32 %v1482_v5, %v1471_v2 }
  0xef   :  { %v1319_v61 = vpop.permute.xlu1 %1318  ;;  %v1497_v1 = vmul.f32 %v1486_v19, %v1471_v2  ;;  %v1498_v45 = vmul.f32 %v1490_v47, %v1471_v2  ;;  %v1528_v18 = vrot.slane %v2978_v30, %v3368_v53 }
  0xf0   :  { %v1343_v0 = vmul.f32 %v1326_v25, %v1319_v61  ;;  %v1344_v20 = vmul.f32 %v1330_v37, %v1319_v61  ;;  %v1345_v21 = vmul.f32 %v1334_v26, %v1319_v61  ;;  %v1346_v43 = vmul.f32 %v1338_v38, %v1319_v61  ;;  %v2981_v38 = vld [vmem:[%s4289_s0 + $0x51] ss:$8 sm:$0x3]  ;;  %v2980_v61 = vld [vmem:[%s4289_s0 + $0xe0] ss:$8 sm:$0x3] }
  0xf1   :  { %v1562_v56 = vrot.slane %v2980_v61, %v3365_v52  ;;  %v1566_v5 = vrot.slane %v2980_v61, %v3368_v53 }
  0xf2   :  { %v1347_v32 = vadd.f32 %v1343_v0, %v1309_v17  ;;  %v1348_v63 = vadd.f32 %v1344_v20, %v1310_v41  ;;  %v1349_v33 = vadd.f32 %v1345_v21, %v1311_v60  ;;  %v1350_v57 = vadd.f32 %v1346_v43, %v1312_v42  ;;  %v2979_v42 = vld [vmem:[%s4289_s0 + $0x50] ss:$8 sm:$0x3] }
  0xf3   :  { %v1592_v0 = vrot.slane %v2981_v38, %v3365_v52  ;;  %v1596_v20 = vrot.slane %v2981_v38, %v3368_v53  ;;  %v1554_v9 = vrot.slane %v2979_v42, %v3365_v52  ;;  %v1558_v4 = vrot.slane %v2979_v42, %v3368_v53 }
  0xf4   :  { %v1385_v48 = vadd.f32 %v1381_v39, %v1347_v32  ;;  %v1386_v49 = vadd.f32 %v1382_v40, %v1348_v63  ;;  %v1387_v51 = vadd.f32 %v1383_v10, %v1349_v33  ;;  %v1388_v3 = vadd.f32 %v1384_v11, %v1350_v57  ;;  %v1395_v59 = vpop.permute.xlu1 %1394  ;;  %v2982_v39 = vld [vmem:[%s4289_s0 + $0xe1] ss:$8 sm:$0x3]  ;;  %v1585_v57 = vpop.permute.xlu0 %1584 }
  0xf5   :  { %v1419_v12 = vmul.f32 %v1402_v44, %v1395_v59  ;;  %v1420_v14 = vmul.f32 %v1406_v23, %v1395_v59  ;;  %v1421_v15 = vmul.f32 %v1410_v62, %v1395_v59  ;;  %v1422_v16 = vmul.f32 %v1414_v54, %v1395_v59 }
  0xf6   :  { %v1516_v40 = vrot.slane %v2977_v13, %v3365_v52  ;;  %v1520_v10 = vrot.slane %v2977_v13, %v3368_v53  ;;  %v1524_v11 = vrot.slane %v2978_v30, %v3365_v52  ;;  %v1600_v21 = vrot.slane %v2982_v39, %v3365_v52 }
  0xf7   :  { %v1423_v34 = vadd.f32 %v1419_v12, %v1385_v48  ;;  %v1424_v35 = vadd.f32 %v1420_v14, %v1386_v49  ;;  %v1425_v36 = vadd.f32 %v1421_v15, %v1387_v51  ;;  %v1426_v46 = vadd.f32 %v1422_v16, %v1388_v3  ;;  %v2983_v51 = vld [vmem:[%s4289_s0 + $0x52] ss:$8 sm:$0x3]  ;;  %v2984_v3 = vld [vmem:[%s4289_s0 + $0xe2] ss:$8 sm:$0x3] }
  0xf8   :  { %v1604_v43 = vrot.slane %v2982_v39, %v3368_v53  ;;  %v1609_v19 = vmul.f32 %v1592_v0, %v1585_v57  ;;  %v1610_v47 = vmul.f32 %v1596_v20, %v1585_v57  ;;  %v1611_v48 = vmul.f32 %v1600_v21, %v1585_v57 }
  0xf9   :  { %v1433_v6 = vpop.permute.xlu1 %1432  ;;  %v1642_v13 = vrot.slane %v2984_v3, %v3368_v53 }
  0xfa   :  { %v1457_v7 = vmul.f32 %v1440_v55, %v1433_v6  ;;  %v1458_v25 = vmul.f32 %v1444_v24, %v1433_v6  ;;  %v1459_v37 = vmul.f32 %v1448_v27, %v1433_v6  ;;  %v1460_v26 = vmul.f32 %v1452_v28, %v1433_v6  ;;  %v2987_v28 = vld [vmem:[%s4289_s0 + $0x54] ss:$8 sm:$0x3]  ;;  %v2986_v6 = vld [vmem:[%s4289_s0 + $0xe3] ss:$8 sm:$0x3] }
  0xfb   :  { %v1612_v49 = vmul.f32 %v1604_v43, %v1585_v57  ;;  %v1676_v0 = vrot.slane %v2986_v6, %v3365_v52  ;;  %v1680_v20 = vrot.slane %v2986_v6, %v3368_v53 }
  0xfc   :  { %v1461_v58 = vadd.f32 %v1457_v7, %v1423_v34  ;;  %v1462_v17 = vadd.f32 %v1458_v25, %v1424_v35  ;;  %v1463_v41 = vadd.f32 %v1459_v37, %v1425_v36  ;;  %v1464_v60 = vadd.f32 %v1460_v26, %v1426_v46  ;;  %v2985_v46 = vld [vmem:[%s4289_s0 + $0x53] ss:$8 sm:$0x3] }
  0xfd   :  { %v1706_v7 = vrot.slane %v2987_v28, %v3365_v52  ;;  %v1710_v25 = vrot.slane %v2987_v28, %v3368_v53  ;;  %v1668_v42 = vrot.slane %v2985_v46, %v3365_v52  ;;  %v1672_v61 = vrot.slane %v2985_v46, %v3368_v53 }
  0xfe   :  { %v1499_v22 = vadd.f32 %v1495_v29, %v1461_v58  ;;  %v1500_v31 = vadd.f32 %v1496_v8, %v1462_v17  ;;  %v1501_v44 = vadd.f32 %v1497_v1, %v1463_v41  ;;  %v1502_v23 = vadd.f32 %v1498_v45, %v1464_v60  ;;  %v1509_v62 = vpop.permute.xlu1 %1508  ;;  %v2988_v29 = vld [vmem:[%s4289_s0 + $0xe4] ss:$8 sm:$0x3]  ;;  %v1699_v60 = vpop.permute.xlu0 %1698 }
  0xff   :  { %v1533_v54 = vmul.f32 %v1516_v40, %v1509_v62  ;;  %v1534_v32 = vmul.f32 %v1520_v10, %v1509_v62  ;;  %v1535_v63 = vmul.f32 %v1524_v11, %v1509_v62  ;;  %v1536_v33 = vmul.f32 %v1528_v18, %v1509_v62 }
 0x100   :  { %v1630_v8 = vrot.slane %v2983_v51, %v3365_v52  ;;  %v1634_v1 = vrot.slane %v2983_v51, %v3368_v53  ;;  %v1638_v45 = vrot.slane %v2984_v3, %v3365_v52  ;;  %v1714_v37 = vrot.slane %v2988_v29, %v3365_v52 }
 0x101   :  { %v1537_v59 = vadd.f32 %v1533_v54, %v1499_v22  ;;  %v1538_v12 = vadd.f32 %v1534_v32, %v1500_v31  ;;  %v1539_v14 = vadd.f32 %v1535_v63, %v1501_v44  ;;  %v1540_v15 = vadd.f32 %v1536_v33, %v1502_v23  ;;  %v2989_v44 = vld [vmem:[%s4289_s0 + $0x55] ss:$8 sm:$0x3]  ;;  %v2990_v23 = vld [vmem:[%s4289_s0 + $0xe5] ss:$8 sm:$0x3] }
 0x102   :  { %v1718_v26 = vrot.slane %v2988_v29, %v3368_v53  ;;  %v1723_v21 = vmul.f32 %v1706_v7, %v1699_v60  ;;  %v1724_v43 = vmul.f32 %v1710_v25, %v1699_v60  ;;  %v1725_v22 = vmul.f32 %v1714_v37, %v1699_v60 }
 0x103   :  { %v1547_v16 = vpop.permute.xlu1 %1546  ;;  %v1756_v51 = vrot.slane %v2990_v23, %v3368_v53 }
 0x104   :  { %v1571_v2 = vmul.f32 %v1554_v9, %v1547_v16  ;;  %v1572_v55 = vmul.f32 %v1558_v4, %v1547_v16  ;;  %v1573_v24 = vmul.f32 %v1562_v56, %v1547_v16  ;;  %v1574_v27 = vmul.f32 %v1566_v5, %v1547_v16  ;;  %v2993_v5 = vld [vmem:[%s4289_s0 + $0x57] ss:$8 sm:$0x3]  ;;  %v2992_v16 = vld [vmem:[%s4289_s0 + $0xe6] ss:$8 sm:$0x3] }
 0x105   :  { %v1726_v31 = vmul.f32 %v1718_v26, %v1699_v60  ;;  %v1790_v7 = vrot.slane %v2992_v16, %v3365_v52  ;;  %v1794_v25 = vrot.slane %v2992_v16, %v3368_v53 }
 0x106   :  { %v1575_v30 = vadd.f32 %v1571_v2, %v1537_v59  ;;  %v1576_v34 = vadd.f32 %v1572_v55, %v1538_v12  ;;  %v1577_v35 = vadd.f32 %v1573_v24, %v1539_v14  ;;  %v1578_v36 = vadd.f32 %v1574_v27, %v1540_v15  ;;  %v2991_v15 = vld [vmem:[%s4289_s0 + $0x56] ss:$8 sm:$0x3] }
 0x107   :  { %v1820_v2 = vrot.slane %v2993_v5, %v3365_v52  ;;  %v1824_v55 = vrot.slane %v2993_v5, %v3368_v53  ;;  %v1782_v46 = vrot.slane %v2991_v15, %v3365_v52  ;;  %v1786_v6 = vrot.slane %v2991_v15, %v3368_v53 }
 0x108   :  { %v1613_v38 = vadd.f32 %v1609_v19, %v1575_v30  ;;  %v1614_v39 = vadd.f32 %v1610_v47, %v1576_v34  ;;  %v1615_v40 = vadd.f32 %v1611_v48, %v1577_v35  ;;  %v1616_v10 = vadd.f32 %v1612_v49, %v1578_v36  ;;  %v1623_v11 = vpop.permute.xlu1 %1622  ;;  %v2994_v19 = vld [vmem:[%s4289_s0 + $0xe7] ss:$8 sm:$0x3]  ;;  %v1813_v36 = vpop.permute.xlu0 %1812 }
 0x109   :  { %v1647_v18 = vmul.f32 %v1630_v8, %v1623_v11  ;;  %v1648_v58 = vmul.f32 %v1634_v1, %v1623_v11  ;;  %v1649_v17 = vmul.f32 %v1638_v45, %v1623_v11  ;;  %v1650_v41 = vmul.f32 %v1642_v13, %v1623_v11 }
 0x10a   :  { %v1744_v47 = vrot.slane %v2989_v44, %v3365_v52  ;;  %v1748_v48 = vrot.slane %v2989_v44, %v3368_v53  ;;  %v1752_v49 = vrot.slane %v2990_v23, %v3365_v52  ;;  %v1828_v24 = vrot.slane %v2994_v19, %v3365_v52 }
 0x10b   :  { %v1651_v62 = vadd.f32 %v1647_v18, %v1613_v38  ;;  %v1652_v54 = vadd.f32 %v1648_v58, %v1614_v39  ;;  %v1653_v32 = vadd.f32 %v1649_v17, %v1615_v40  ;;  %v1654_v63 = vadd.f32 %v1650_v41, %v1616_v10  ;;  %v2995_v40 = vld [vmem:[%s4289_s0 + $0x60] ss:$8 sm:$0x3]  ;;  %v2996_v10 = vld [vmem:[%s4289_s0 + $0xf0] ss:$8 sm:$0x3] }
 0x10c   :  { %v1832_v27 = vrot.slane %v2994_v19, %v3368_v53  ;;  %v1837_v37 = vmul.f32 %v1820_v2, %v1813_v36  ;;  %v1838_v26 = vmul.f32 %v1824_v55, %v1813_v36  ;;  %v1839_v38 = vmul.f32 %v1828_v24, %v1813_v36 }
 0x10d   :  { %v1661_v33 = vpop.permute.xlu1 %1660  ;;  %v1870_v44 = vrot.slane %v2996_v10, %v3368_v53 }
 0x10e   :  { %v1685_v57 = vmul.f32 %v1668_v42, %v1661_v33  ;;  %v1686_v9 = vmul.f32 %v1672_v61, %v1661_v33  ;;  %v1687_v4 = vmul.f32 %v1676_v0, %v1661_v33  ;;  %v1688_v56 = vmul.f32 %v1680_v20, %v1661_v33  ;;  %v2999_v20 = vld [vmem:[%s4289_s0 + $0x62] ss:$8 sm:$0x3]  ;;  %v2998_v33 = vld [vmem:[%s4289_s0 + $0xf1] ss:$8 sm:$0x3] }
 0x10f   :  { %v1840_v39 = vmul.f32 %v1832_v27, %v1813_v36  ;;  %v1904_v2 = vrot.slane %v2998_v33, %v3365_v52  ;;  %v1908_v55 = vrot.slane %v2998_v33, %v3368_v53 }
 0x110   :  { %v1689_v3 = vadd.f32 %v1685_v57, %v1651_v62  ;;  %v1690_v59 = vadd.f32 %v1686_v9, %v1652_v54  ;;  %v1691_v12 = vadd.f32 %v1687_v4, %v1653_v32  ;;  %v1692_v14 = vadd.f32 %v1688_v56, %v1654_v63  ;;  %v2997_v63 = vld [vmem:[%s4289_s0 + $0x61] ss:$8 sm:$0x3] }
 0x111   :  { %v1934_v57 = vrot.slane %v2999_v20, %v3365_v52  ;;  %v1938_v9 = vrot.slane %v2999_v20, %v3368_v53  ;;  %v1896_v15 = vrot.slane %v2997_v63, %v3365_v52  ;;  %v1900_v16 = vrot.slane %v2997_v63, %v3368_v53 }
 0x112   :  { %v1727_v28 = vadd.f32 %v1723_v21, %v1689_v3  ;;  %v1728_v29 = vadd.f32 %v1724_v43, %v1690_v59  ;;  %v1729_v8 = vadd.f32 %v1725_v22, %v1691_v12  ;;  %v1730_v1 = vadd.f32 %v1726_v31, %v1692_v14  ;;  %v1737_v45 = vpop.permute.xlu1 %1736  ;;  %v3000_v21 = vld [vmem:[%s4289_s0 + $0xf2] ss:$8 sm:$0x3]  ;;  %v1927_v14 = vpop.permute.xlu0 %1926 }
 0x113   :  { %v1761_v13 = vmul.f32 %v1744_v47, %v1737_v45  ;;  %v1762_v30 = vmul.f32 %v1748_v48, %v1737_v45  ;;  %v1763_v34 = vmul.f32 %v1752_v49, %v1737_v45  ;;  %v1764_v35 = vmul.f32 %v1756_v51, %v1737_v45 }
 0x114   :  { %v1858_v43 = vrot.slane %v2995_v40, %v3365_v52  ;;  %v1862_v22 = vrot.slane %v2995_v40, %v3368_v53  ;;  %v1866_v31 = vrot.slane %v2996_v10, %v3365_v52  ;;  %v1942_v4 = vrot.slane %v3000_v21, %v3365_v52 }
 0x115   :  { %v1765_v11 = vadd.f32 %v1761_v13, %v1727_v28  ;;  %v1766_v18 = vadd.f32 %v1762_v30, %v1728_v29  ;;  %v1767_v58 = vadd.f32 %v1763_v34, %v1729_v8  ;;  %v1768_v17 = vadd.f32 %v1764_v35, %v1730_v1  ;;  %v3001_v8 = vld [vmem:[%s4289_s0 + $0x63] ss:$8 sm:$0x3]  ;;  %v3002_v1 = vld [vmem:[%s4289_s0 + $0xf3] ss:$8 sm:$0x3] }
 0x116   :  { %v1946_v56 = vrot.slane %v3000_v21, %v3368_v53  ;;  %v1951_v24 = vmul.f32 %v1934_v57, %v1927_v14  ;;  %v1952_v27 = vmul.f32 %v1938_v9, %v1927_v14  ;;  %v1953_v28 = vmul.f32 %v1942_v4, %v1927_v14 }
 0x117   :  { %v1775_v41 = vpop.permute.xlu1 %1774  ;;  %v1984_v40 = vrot.slane %v3002_v1, %v3368_v53 }
 0x118   :  { %v1799_v60 = vmul.f32 %v1782_v46, %v1775_v41  ;;  %v1800_v42 = vmul.f32 %v1786_v6, %v1775_v41  ;;  %v1801_v61 = vmul.f32 %v1790_v7, %v1775_v41  ;;  %v1802_v0 = vmul.f32 %v1794_v25, %v1775_v41  ;;  %v3005_v25 = vld [vmem:[%s4289_s0 + $0x65] ss:$8 sm:$0x3]  ;;  %v3004_v41 = vld [vmem:[%s4289_s0 + $0xf4] ss:$8 sm:$0x3] }
 0x119   :  { %v1954_v29 = vmul.f32 %v1946_v56, %v1927_v14  ;;  %v2018_v57 = vrot.slane %v3004_v41, %v3365_v52  ;;  %v2022_v9 = vrot.slane %v3004_v41, %v3368_v53 }
 0x11a   :  { %v1803_v23 = vadd.f32 %v1799_v60, %v1765_v11  ;;  %v1804_v62 = vadd.f32 %v1800_v42, %v1766_v18  ;;  %v1805_v54 = vadd.f32 %v1801_v61, %v1767_v58  ;;  %v1806_v32 = vadd.f32 %v1802_v0, %v1768_v17  ;;  %v3003_v17 = vld [vmem:[%s4289_s0 + $0x64] ss:$8 sm:$0x3] }
 0x11b   :  { %v2048_v60 = vrot.slane %v3005_v25, %v3365_v52  ;;  %v2052_v42 = vrot.slane %v3005_v25, %v3368_v53  ;;  %v2010_v63 = vrot.slane %v3003_v17, %v3365_v52  ;;  %v2014_v33 = vrot.slane %v3003_v17, %v3368_v53 }
 0x11c   :  { %v1841_v5 = vadd.f32 %v1837_v37, %v1803_v23  ;;  %v1842_v19 = vadd.f32 %v1838_v26, %v1804_v62  ;;  %v1843_v47 = vadd.f32 %v1839_v38, %v1805_v54  ;;  %v1844_v48 = vadd.f32 %v1840_v39, %v1806_v32  ;;  %v1851_v49 = vpop.permute.xlu1 %1850  ;;  %v3006_v37 = vld [vmem:[%s4289_s0 + $0xf5] ss:$8 sm:$0x3]  ;;  %v2041_v32 = vpop.permute.xlu0 %2040 }
 0x11d   :  { %v1875_v51 = vmul.f32 %v1858_v43, %v1851_v49  ;;  %v1876_v3 = vmul.f32 %v1862_v22, %v1851_v49  ;;  %v1877_v59 = vmul.f32 %v1866_v31, %v1851_v49  ;;  %v1878_v12 = vmul.f32 %v1870_v44, %v1851_v49 }
 0x11e   :  { %v1972_v26 = vrot.slane %v3001_v8, %v3365_v52  ;;  %v1976_v38 = vrot.slane %v3001_v8, %v3368_v53  ;;  %v1980_v39 = vrot.slane %v3002_v1, %v3365_v52  ;;  %v2056_v61 = vrot.slane %v3006_v37, %v3365_v52 }
 0x11f   :  { %v1879_v45 = vadd.f32 %v1875_v51, %v1841_v5  ;;  %v1880_v13 = vadd.f32 %v1876_v3, %v1842_v19  ;;  %v1881_v30 = vadd.f32 %v1877_v59, %v1843_v47  ;;  %v1882_v34 = vadd.f32 %v1878_v12, %v1844_v48  ;;  %v3007_v47 = vld [vmem:[%s4289_s0 + $0x66] ss:$8 sm:$0x3]  ;;  %v3008_v48 = vld [vmem:[%s4289_s0 + $0xf6] ss:$8 sm:$0x3] }
 0x120   :  { %v2060_v0 = vrot.slane %v3006_v37, %v3368_v53  ;;  %v2065_v4 = vmul.f32 %v2048_v60, %v2041_v32  ;;  %v2066_v56 = vmul.f32 %v2052_v42, %v2041_v32  ;;  %v2067_v5 = vmul.f32 %v2056_v61, %v2041_v32 }
 0x121   :  { %v1889_v35 = vpop.permute.xlu1 %1888  ;;  %v2098_v8 = vrot.slane %v3008_v48, %v3368_v53 }
 0x122   :  { %v1913_v36 = vmul.f32 %v1896_v15, %v1889_v35  ;;  %v1914_v46 = vmul.f32 %v1900_v16, %v1889_v35  ;;  %v1915_v6 = vmul.f32 %v1904_v2, %v1889_v35  ;;  %v1916_v7 = vmul.f32 %v1908_v55, %v1889_v35  ;;  %v3011_v55 = vld [vmem:[%s4289_s0 + $0x70] ss:$8 sm:$0x3]  ;;  %v3010_v35 = vld [vmem:[%s4289_s0 + $0xf7] ss:$8 sm:$0x3] }
 0x123   :  { %v2068_v19 = vmul.f32 %v2060_v0, %v2041_v32  ;;  %v2132_v60 = vrot.slane %v3010_v35, %v3365_v52  ;;  %v2136_v42 = vrot.slane %v3010_v35, %v3368_v53 }
 0x124   :  { %v1917_v10 = vadd.f32 %v1913_v36, %v1879_v45  ;;  %v1918_v11 = vadd.f32 %v1914_v46, %v1880_v13  ;;  %v1919_v18 = vadd.f32 %v1915_v6, %v1881_v30  ;;  %v1920_v58 = vadd.f32 %v1916_v7, %v1882_v34  ;;  %v3009_v34 = vld [vmem:[%s4289_s0 + $0x67] ss:$8 sm:$0x3] }
 0x125   :  { %v2162_v36 = vrot.slane %v3011_v55, %v3365_v52  ;;  %v2166_v46 = vrot.slane %v3011_v55, %v3368_v53  ;;  %v2124_v17 = vrot.slane %v3009_v34, %v3365_v52  ;;  %v2128_v41 = vrot.slane %v3009_v34, %v3368_v53 }
 0x126   :  { %v1955_v20 = vadd.f32 %v1951_v24, %v1917_v10  ;;  %v1956_v21 = vadd.f32 %v1952_v27, %v1918_v11  ;;  %v1957_v43 = vadd.f32 %v1953_v28, %v1919_v18  ;;  %v1958_v22 = vadd.f32 %v1954_v29, %v1920_v58  ;;  %v1965_v31 = vpop.permute.xlu1 %1964  ;;  %v3012_v24 = vld [vmem:[%s4289_s0 + $0x100] ss:$8 sm:$0x3]  ;;  %v2155_v58 = vpop.permute.xlu0 %2154 }
 0x127   :  { %v1989_v44 = vmul.f32 %v1972_v26, %v1965_v31  ;;  %v1990_v23 = vmul.f32 %v1976_v38, %v1965_v31  ;;  %v1991_v62 = vmul.f32 %v1980_v39, %v1965_v31  ;;  %v1992_v54 = vmul.f32 %v1984_v40, %v1965_v31 }
 0x128   :  { %v2086_v27 = vrot.slane %v3007_v47, %v3365_v52  ;;  %v2090_v28 = vrot.slane %v3007_v47, %v3368_v53  ;;  %v2094_v29 = vrot.slane %v3008_v48, %v3365_v52  ;;  %v2170_v6 = vrot.slane %v3012_v24, %v3365_v52 }
 0x129   :  { %v1993_v49 = vadd.f32 %v1989_v44, %v1955_v20  ;;  %v1994_v51 = vadd.f32 %v1990_v23, %v1956_v21  ;;  %v1995_v3 = vadd.f32 %v1991_v62, %v1957_v43  ;;  %v1996_v59 = vadd.f32 %v1992_v54, %v1958_v22  ;;  %v3013_v43 = vld [vmem:[%s4289_s0 + $0x71] ss:$8 sm:$0x3]  ;;  %v3014_v22 = vld [vmem:[%s4289_s0 + $0x101] ss:$8 sm:$0x3] }
 0x12a   :  { %v2174_v7 = vrot.slane %v3012_v24, %v3368_v53  ;;  %v2179_v61 = vmul.f32 %v2162_v36, %v2155_v58  ;;  %v2180_v0 = vmul.f32 %v2166_v46, %v2155_v58  ;;  %v2181_v20 = vmul.f32 %v2170_v6, %v2155_v58 }
 0x12b   :  { %v2003_v12 = vpop.permute.xlu1 %2002  ;;  %v2212_v47 = vrot.slane %v3014_v22, %v3368_v53 }
 0x12c   :  { %v2027_v14 = vmul.f32 %v2010_v63, %v2003_v12  ;;  %v2028_v15 = vmul.f32 %v2014_v33, %v2003_v12  ;;  %v2029_v16 = vmul.f32 %v2018_v57, %v2003_v12  ;;  %v2030_v2 = vmul.f32 %v2022_v9, %v2003_v12  ;;  %v3017_v9 = vld [vmem:[%s4289_s0 + $0x73] ss:$8 sm:$0x3]  ;;  %v3016_v12 = vld [vmem:[%s4289_s0 + $0x102] ss:$8 sm:$0x3] }
 0x12d   :  { %v2182_v21 = vmul.f32 %v2174_v7, %v2155_v58  ;;  %v2246_v36 = vrot.slane %v3016_v12, %v3365_v52  ;;  %v2250_v46 = vrot.slane %v3016_v12, %v3368_v53 }
 0x12e   :  { %v2031_v1 = vadd.f32 %v2027_v14, %v1993_v49  ;;  %v2032_v45 = vadd.f32 %v2028_v15, %v1994_v51  ;;  %v2033_v13 = vadd.f32 %v2029_v16, %v1995_v3  ;;  %v2034_v30 = vadd.f32 %v2030_v2, %v1996_v59  ;;  %v3015_v59 = vld [vmem:[%s4289_s0 + $0x72] ss:$8 sm:$0x3] }
 0x12f   :  { %v2276_v14 = vrot.slane %v3017_v9, %v3365_v52  ;;  %v2280_v15 = vrot.slane %v3017_v9, %v3368_v53  ;;  %v2238_v34 = vrot.slane %v3015_v59, %v3365_v52  ;;  %v2242_v35 = vrot.slane %v3015_v59, %v3368_v53 }
 0x130   :  { %v2069_v25 = vadd.f32 %v2065_v4, %v2031_v1  ;;  %v2070_v37 = vadd.f32 %v2066_v56, %v2032_v45  ;;  %v2071_v26 = vadd.f32 %v2067_v5, %v2033_v13  ;;  %v2072_v38 = vadd.f32 %v2068_v19, %v2034_v30  ;;  %v2079_v39 = vpop.permute.xlu1 %2078  ;;  %v3018_v4 = vld [vmem:[%s4289_s0 + $0x103] ss:$8 sm:$0x3]  ;;  %v2269_v30 = vpop.permute.xlu0 %2268 }
 0x131   :  { %v2103_v40 = vmul.f32 %v2086_v27, %v2079_v39  ;;  %v2104_v10 = vmul.f32 %v2090_v28, %v2079_v39  ;;  %v2105_v11 = vmul.f32 %v2094_v29, %v2079_v39  ;;  %v2106_v18 = vmul.f32 %v2098_v8, %v2079_v39 }
 0x132   :  { %v2200_v56 = vrot.slane %v3013_v43, %v3365_v52  ;;  %v2204_v5 = vrot.slane %v3013_v43, %v3368_v53  ;;  %v2208_v19 = vrot.slane %v3014_v22, %v3365_v52  ;;  %v2284_v16 = vrot.slane %v3018_v4, %v3365_v52 }
 0x133   :  { %v2107_v31 = vadd.f32 %v2103_v40, %v2069_v25  ;;  %v2108_v44 = vadd.f32 %v2104_v10, %v2070_v37  ;;  %v2109_v23 = vadd.f32 %v2105_v11, %v2071_v26  ;;  %v2110_v62 = vadd.f32 %v2106_v18, %v2072_v38  ;;  %v3019_v26 = vld [vmem:[%s4289_s0 + $0x74] ss:$8 sm:$0x3]  ;;  %v3020_v38 = vld [vmem:[%s4289_s0 + $0x104] ss:$8 sm:$0x3] }
 0x134   :  { %v2288_v2 = vrot.slane %v3018_v4, %v3368_v53  ;;  %v2293_v6 = vmul.f32 %v2276_v14, %v2269_v30  ;;  %v2294_v7 = vmul.f32 %v2280_v15, %v2269_v30  ;;  %v2295_v25 = vmul.f32 %v2284_v16, %v2269_v30 }
 0x135   :  { %v2117_v54 = vpop.permute.xlu1 %2116  ;;  %v2326_v43 = vrot.slane %v3020_v38, %v3368_v53 }
 0x136   :  { %v2141_v32 = vmul.f32 %v2124_v17, %v2117_v54  ;;  %v2142_v63 = vmul.f32 %v2128_v41, %v2117_v54  ;;  %v2143_v33 = vmul.f32 %v2132_v60, %v2117_v54  ;;  %v2144_v57 = vmul.f32 %v2136_v42, %v2117_v54  ;;  %v3023_v42 = vld [vmem:[%s4289_s0 + $0x76] ss:$8 sm:$0x3]  ;;  %v3022_v54 = vld [vmem:[%s4289_s0 + $0x105] ss:$8 sm:$0x3] }
 0x137   :  { %v2296_v37 = vmul.f32 %v2288_v2, %v2269_v30  ;;  %v2360_v14 = vrot.slane %v3022_v54, %v3365_v52  ;;  %v2364_v15 = vrot.slane %v3022_v54, %v3368_v53 }
 0x138   :  { %v2145_v48 = vadd.f32 %v2141_v32, %v2107_v31  ;;  %v2146_v49 = vadd.f32 %v2142_v63, %v2108_v44  ;;  %v2147_v51 = vadd.f32 %v2143_v33, %v2109_v23  ;;  %v2148_v3 = vadd.f32 %v2144_v57, %v2110_v62  ;;  %v3021_v62 = vld [vmem:[%s4289_s0 + $0x75] ss:$8 sm:$0x3] }
 0x139   :  { %v2390_v32 = vrot.slane %v3023_v42, %v3365_v52  ;;  %v2394_v63 = vrot.slane %v3023_v42, %v3368_v53  ;;  %v2352_v59 = vrot.slane %v3021_v62, %v3365_v52  ;;  %v2356_v12 = vrot.slane %v3021_v62, %v3368_v53 }
 0x13a   :  { %v2183_v55 = vadd.f32 %v2179_v61, %v2145_v48  ;;  %v2184_v24 = vadd.f32 %v2180_v0, %v2146_v49  ;;  %v2185_v27 = vadd.f32 %v2181_v20, %v2147_v51  ;;  %v2186_v28 = vadd.f32 %v2182_v21, %v2148_v3  ;;  %v2193_v29 = vpop.permute.xlu1 %2192  ;;  %v3024_v61 = vld [vmem:[%s4289_s0 + $0x106] ss:$8 sm:$0x3]  ;;  %v2383_v3 = vpop.permute.xlu0 %2382 }
 0x13b   :  { %v2217_v8 = vmul.f32 %v2200_v56, %v2193_v29  ;;  %v2218_v1 = vmul.f32 %v2204_v5, %v2193_v29  ;;  %v2219_v45 = vmul.f32 %v2208_v19, %v2193_v29  ;;  %v2220_v13 = vmul.f32 %v2212_v47, %v2193_v29 }
 0x13c   :  { %v2314_v0 = vrot.slane %v3019_v26, %v3365_v52  ;;  %v2318_v20 = vrot.slane %v3019_v26, %v3368_v53  ;;  %v2322_v21 = vrot.slane %v3020_v38, %v3365_v52  ;;  %v2398_v33 = vrot.slane %v3024_v61, %v3365_v52 }
 0x13d   :  { %v2221_v39 = vadd.f32 %v2217_v8, %v2183_v55  ;;  %v2222_v40 = vadd.f32 %v2218_v1, %v2184_v24  ;;  %v2223_v10 = vadd.f32 %v2219_v45, %v2185_v27  ;;  %v2224_v11 = vadd.f32 %v2220_v13, %v2186_v28  ;;  %v3025_v27 = vld [vmem:[%s4289_s0 + $0x77] ss:$8 sm:$0x3]  ;;  %v3026_v28 = vld [vmem:[%s4289_s0 + $0x107] ss:$8 sm:$0x3] }
 0x13e   :  { %v2402_v57 = vrot.slane %v3024_v61, %v3368_v53  ;;  %v2407_v16 = vmul.f32 %v2390_v32, %v2383_v3  ;;  %v2408_v2 = vmul.f32 %v2394_v63, %v2383_v3  ;;  %v2409_v55 = vmul.f32 %v2398_v33, %v2383_v3 }
 0x13f   :  { %v2231_v18 = vpop.permute.xlu1 %2230  ;;  %v2440_v26 = vrot.slane %v3026_v28, %v3368_v53 }
 0x140   :  { %v2255_v58 = vmul.f32 %v2238_v34, %v2231_v18  ;;  %v2256_v17 = vmul.f32 %v2242_v35, %v2231_v18  ;;  %v2257_v41 = vmul.f32 %v2246_v36, %v2231_v18  ;;  %v2258_v60 = vmul.f32 %v2250_v46, %v2231_v18  ;;  %v3029_v46 = vld [vmem:[%s4289_s0 + $0x81] ss:$8 sm:$0x3]  ;;  %v3028_v18 = vld [vmem:[%s4289_s0 + $0x110] ss:$8 sm:$0x3] }
 0x141   :  { %v2410_v24 = vmul.f32 %v2402_v57, %v2383_v3  ;;  %v2474_v32 = vrot.slane %v3028_v18, %v3365_v52  ;;  %v2478_v63 = vrot.slane %v3028_v18, %v3368_v53 }
 0x142   :  { %v2259_v22 = vadd.f32 %v2255_v58, %v2221_v39  ;;  %v2260_v31 = vadd.f32 %v2256_v17, %v2222_v40  ;;  %v2261_v44 = vadd.f32 %v2257_v41, %v2223_v10  ;;  %v2262_v23 = vadd.f32 %v2258_v60, %v2224_v11  ;;  %v3027_v11 = vld [vmem:[%s4289_s0 + $0x80] ss:$8 sm:$0x3] }
 0x143   :  { %v2504_v58 = vrot.slane %v3029_v46, %v3365_v52  ;;  %v2508_v17 = vrot.slane %v3029_v46, %v3368_v53  ;;  %v2466_v62 = vrot.slane %v3027_v11, %v3365_v52  ;;  %v2470_v54 = vrot.slane %v3027_v11, %v3368_v53 }
 0x144   :  { %v2297_v9 = vadd.f32 %v2293_v6, %v2259_v22  ;;  %v2298_v4 = vadd.f32 %v2294_v7, %v2260_v31  ;;  %v2299_v56 = vadd.f32 %v2295_v25, %v2261_v44  ;;  %v2300_v5 = vadd.f32 %v2296_v37, %v2262_v23  ;;  %v2307_v19 = vpop.permute.xlu1 %2306  ;;  %v3030_v6 = vld [vmem:[%s4289_s0 + $0x111] ss:$8 sm:$0x3]  ;;  %v2497_v23 = vpop.permute.xlu0 %2496 }
 0x145   :  { %v2331_v47 = vmul.f32 %v2314_v0, %v2307_v19  ;;  %v2332_v48 = vmul.f32 %v2318_v20, %v2307_v19  ;;  %v2333_v49 = vmul.f32 %v2322_v21, %v2307_v19  ;;  %v2334_v51 = vmul.f32 %v2326_v43, %v2307_v19 }
 0x146   :  { %v2428_v7 = vrot.slane %v3025_v27, %v3365_v52  ;;  %v2432_v25 = vrot.slane %v3025_v27, %v3368_v53  ;;  %v2436_v37 = vrot.slane %v3026_v28, %v3365_v52  ;;  %v2512_v41 = vrot.slane %v3030_v6, %v3365_v52 }
 0x147   :  { %v2335_v29 = vadd.f32 %v2331_v47, %v2297_v9  ;;  %v2336_v8 = vadd.f32 %v2332_v48, %v2298_v4  ;;  %v2337_v1 = vadd.f32 %v2333_v49, %v2299_v56  ;;  %v2338_v45 = vadd.f32 %v2334_v51, %v2300_v5  ;;  %v3031_v56 = vld [vmem:[%s4289_s0 + $0x82] ss:$8 sm:$0x3]  ;;  %v3032_v5 = vld [vmem:[%s4289_s0 + $0x112] ss:$8 sm:$0x3] }
 0x148   :  { %v2516_v60 = vrot.slane %v3030_v6, %v3368_v53  ;;  %v2521_v33 = vmul.f32 %v2504_v58, %v2497_v23  ;;  %v2522_v57 = vmul.f32 %v2508_v17, %v2497_v23  ;;  %v2523_v9 = vmul.f32 %v2512_v41, %v2497_v23 }
 0x149   :  { %v2345_v13 = vpop.permute.xlu1 %2344  ;;  %v2554_v27 = vrot.slane %v3032_v5, %v3368_v53 }
 0x14a   :  { %v2369_v30 = vmul.f32 %v2352_v59, %v2345_v13  ;;  %v2370_v34 = vmul.f32 %v2356_v12, %v2345_v13  ;;  %v2371_v35 = vmul.f32 %v2360_v14, %v2345_v13  ;;  %v2372_v36 = vmul.f32 %v2364_v15, %v2345_v13  ;;  %v3035_v15 = vld [vmem:[%s4289_s0 + $0x84] ss:$8 sm:$0x3]  ;;  %v3034_v13 = vld [vmem:[%s4289_s0 + $0x113] ss:$8 sm:$0x3] }
 0x14b   :  { %v2524_v4 = vmul.f32 %v2516_v60, %v2497_v23  ;;  %v2588_v58 = vrot.slane %v3034_v13, %v3365_v52  ;;  %v2592_v17 = vrot.slane %v3034_v13, %v3368_v53 }
 0x14c   :  { %v2373_v38 = vadd.f32 %v2369_v30, %v2335_v29  ;;  %v2374_v39 = vadd.f32 %v2370_v34, %v2336_v8  ;;  %v2375_v40 = vadd.f32 %v2371_v35, %v2337_v1  ;;  %v2376_v10 = vadd.f32 %v2372_v36, %v2338_v45  ;;  %v3033_v45 = vld [vmem:[%s4289_s0 + $0x83] ss:$8 sm:$0x3] }
 0x14d   :  { %v2618_v30 = vrot.slane %v3035_v15, %v3365_v52  ;;  %v2622_v34 = vrot.slane %v3035_v15, %v3368_v53  ;;  %v2580_v11 = vrot.slane %v3033_v45, %v3365_v52  ;;  %v2584_v18 = vrot.slane %v3033_v45, %v3368_v53 }
 0x14e   :  { %v2411_v42 = vadd.f32 %v2407_v16, %v2373_v38  ;;  %v2412_v61 = vadd.f32 %v2408_v2, %v2374_v39  ;;  %v2413_v0 = vadd.f32 %v2409_v55, %v2375_v40  ;;  %v2414_v20 = vadd.f32 %v2410_v24, %v2376_v10  ;;  %v2421_v21 = vpop.permute.xlu1 %2420  ;;  %v3036_v16 = vld [vmem:[%s4289_s0 + $0x114] ss:$8 sm:$0x3]  ;;  %v2611_v10 = vpop.permute.xlu0 %2610 }
 0x14f   :  { %v2445_v43 = vmul.f32 %v2428_v7, %v2421_v21  ;;  %v2446_v22 = vmul.f32 %v2432_v25, %v2421_v21  ;;  %v2447_v31 = vmul.f32 %v2436_v37, %v2421_v21  ;;  %v2448_v44 = vmul.f32 %v2440_v26, %v2421_v21 }
 0x150   :  { %v2542_v2 = vrot.slane %v3031_v56, %v3365_v52  ;;  %v2546_v55 = vrot.slane %v3031_v56, %v3368_v53  ;;  %v2550_v24 = vrot.slane %v3032_v5, %v3365_v52  ;;  %v2626_v35 = vrot.slane %v3036_v16, %v3365_v52 }
 0x151   :  { %v2449_v19 = vadd.f32 %v2445_v43, %v2411_v42  ;;  %v2450_v47 = vadd.f32 %v2446_v22, %v2412_v61  ;;  %v2451_v48 = vadd.f32 %v2447_v31, %v2413_v0  ;;  %v2452_v49 = vadd.f32 %v2448_v44, %v2414_v20  ;;  %v3037_v0 = vld [vmem:[%s4289_s0 + $0x85] ss:$8 sm:$0x3]  ;;  %v3038_v20 = vld [vmem:[%s4289_s0 + $0x115] ss:$8 sm:$0x3] }
 0x152   :  { %v2630_v36 = vrot.slane %v3036_v16, %v3368_v53  ;;  %v2635_v41 = vmul.f32 %v2618_v30, %v2611_v10  ;;  %v2636_v60 = vmul.f32 %v2622_v34, %v2611_v10  ;;  %v2637_v42 = vmul.f32 %v2626_v35, %v2611_v10 }
 0x153   :  { %v2459_v51 = vpop.permute.xlu1 %2458  ;;  %v2668_v56 = vrot.slane %v3038_v20, %v3368_v53 }
 0x154   :  { %v2483_v3 = vmul.f32 %v2466_v62, %v2459_v51  ;;  %v2484_v59 = vmul.f32 %v2470_v54, %v2459_v51  ;;  %v2485_v12 = vmul.f32 %v2474_v32, %v2459_v51  ;;  %v2486_v14 = vmul.f32 %v2478_v63, %v2459_v51  ;;  %v3041_v63 = vld [vmem:[%s4289_s0 + $0x87] ss:$8 sm:$0x3]  ;;  %v3040_v51 = vld [vmem:[%s4289_s0 + $0x116] ss:$8 sm:$0x3] }
 0x155   :  { %v2638_v61 = vmul.f32 %v2630_v36, %v2611_v10  ;;  %v2702_v30 = vrot.slane %v3040_v51, %v3365_v52  ;;  %v2706_v34 = vrot.slane %v3040_v51, %v3368_v53 }
 0x156   :  { %v2487_v28 = vadd.f32 %v2483_v3, %v2449_v19  ;;  %v2488_v29 = vadd.f32 %v2484_v59, %v2450_v47  ;;  %v2489_v8 = vadd.f32 %v2485_v12, %v2451_v48  ;;  %v2490_v1 = vadd.f32 %v2486_v14, %v2452_v49  ;;  %v3039_v49 = vld [vmem:[%s4289_s0 + $0x86] ss:$8 sm:$0x3] }
 0x157   :  { %v2732_v3 = vrot.slane %v3041_v63, %v3365_v52  ;;  %v2736_v59 = vrot.slane %v3041_v63, %v3368_v53  ;;  %v2694_v45 = vrot.slane %v3039_v49, %v3365_v52  ;;  %v2698_v13 = vrot.slane %v3039_v49, %v3368_v53  ;;  %v2784_v49 = vld [vmem:[%s4291_s3] sm:$0xf]  ;;  %s3276_s3 = smov 126  }
 0x158   :  { %v2525_v46 = vadd.f32 %v2521_v33, %v2487_v28  ;;  %v2526_v6 = vadd.f32 %v2522_v57, %v2488_v29  ;;  %v2527_v7 = vadd.f32 %v2523_v9, %v2489_v8  ;;  %v2528_v25 = vadd.f32 %v2524_v4, %v2490_v1  ;;  %v2535_v37 = vpop.permute.xlu1 %2534  ;;  %v3042_v33 = vld [vmem:[%s4289_s0 + $0x117] ss:$8 sm:$0x3]  ;;  %v2725_v1 = vpop.permute.xlu0 %2724 }
 0x159   :  { %v2559_v26 = vmul.f32 %v2542_v2, %v2535_v37  ;;  %v2560_v38 = vmul.f32 %v2546_v55, %v2535_v37  ;;  %v2561_v39 = vmul.f32 %v2550_v24, %v2535_v37  ;;  %v2562_v40 = vmul.f32 %v2554_v27, %v2535_v37 }
 0x15a   :  { %v2656_v57 = vrot.slane %v3037_v0, %v3365_v52  ;;  %v2660_v9 = vrot.slane %v3037_v0, %v3368_v53  ;;  %v2664_v4 = vrot.slane %v3038_v20, %v3365_v52  ;;  %v2740_v12 = vrot.slane %v3042_v33, %v3365_v52 }
 0x15b   :  { %v2563_v21 = vadd.f32 %v2559_v26, %v2525_v46  ;;  %v2564_v43 = vadd.f32 %v2560_v38, %v2526_v6  ;;  %v2565_v22 = vadd.f32 %v2561_v39, %v2527_v7  ;;  %v2566_v31 = vadd.f32 %v2562_v40, %v2528_v25 }
 0x15c   :  { %v2744_v14 = vrot.slane %v3042_v33, %v3368_v53  ;;  %v2749_v35 = vmul.f32 %v2732_v3, %v2725_v1  ;;  %v2750_v36 = vmul.f32 %v2736_v59, %v2725_v1  ;;  %v2751_v46 = vmul.f32 %v2740_v12, %v2725_v1 }
 0x15d   :  { %v2573_v44 = vpop.permute.xlu1 %2572  ;;  %v2839_v59 = vsub.s32 3, %v3361_v50 }
 0x15e   :  { %v2597_v23 = vmul.f32 %v2580_v11, %v2573_v44  ;;  %v2598_v62 = vmul.f32 %v2584_v18, %v2573_v44  ;;  %v2599_v54 = vmul.f32 %v2588_v58, %v2573_v44  ;;  %v2600_v32 = vmul.f32 %v2592_v17, %v2573_v44 }
 0x15f   :  { %v2752_v6 = vmul.f32 %v2744_v14, %v2725_v1 }
 0x160   :  { %v2601_v5 = vadd.f32 %v2597_v23, %v2563_v21  ;;  %v2602_v19 = vadd.f32 %v2598_v62, %v2564_v43  ;;  %v2603_v47 = vadd.f32 %v2599_v54, %v2565_v22  ;;  %v2604_v48 = vadd.f32 %v2600_v32, %v2566_v31 }
 0x162   :  { %v2639_v15 = vadd.f32 %v2635_v41, %v2601_v5  ;;  %v2640_v16 = vadd.f32 %v2636_v60, %v2602_v19  ;;  %v2641_v2 = vadd.f32 %v2637_v42, %v2603_v47  ;;  %v2642_v55 = vadd.f32 %v2638_v61, %v2604_v48  ;;  %v2649_v24 = vpop.permute.xlu1 %2648 }
 0x163   :  { %v2673_v27 = vmul.f32 %v2656_v57, %v2649_v24  ;;  %v2674_v28 = vmul.f32 %v2660_v9, %v2649_v24  ;;  %v2675_v29 = vmul.f32 %v2664_v4, %v2649_v24  ;;  %v2676_v8 = vmul.f32 %v2668_v56, %v2649_v24 }
 0x164   :  { %v2819_v47 = vsub.s32 2, %v3361_v50 }
 0x165   :  { %v2677_v7 = vadd.f32 %v2673_v27, %v2639_v15  ;;  %v2678_v25 = vadd.f32 %v2674_v28, %v2640_v16  ;;  %v2679_v37 = vadd.f32 %v2675_v29, %v2641_v2  ;;  %v2680_v26 = vadd.f32 %v2676_v8, %v2642_v55 }
 0x167   :  { %v2687_v38 = vpop.permute.xlu1 %2686 }
 0x168   :  { %v2711_v39 = vmul.f32 %v2694_v45, %v2687_v38  ;;  %v2712_v40 = vmul.f32 %v2698_v13, %v2687_v38  ;;  %v2713_v10 = vmul.f32 %v2702_v30, %v2687_v38  ;;  %v2714_v11 = vmul.f32 %v2706_v34, %v2687_v38 }
 0x16a   :  { %v2715_v18 = vadd.f32 %v2711_v39, %v2677_v7  ;;  %v2716_v58 = vadd.f32 %v2712_v40, %v2678_v25  ;;  %v2717_v17 = vadd.f32 %v2713_v10, %v2679_v37  ;;  %v2718_v41 = vadd.f32 %v2714_v11, %v2680_v26 }
 0x16c   :  { %v2761_v60 = vpop.permute.xlu1 %2760  ;;  %v2755_v42 = vadd.f32 %v2751_v46, %v2717_v17  ;;  %v2756_v61 = vadd.f32 %v2752_v6, %v2718_v41  ;;  %v2753_v0 = vadd.f32 %v2749_v35, %v2715_v18  ;;  %v2754_v20 = vadd.f32 %v2750_v36, %v2716_v58  ;;  %v2857_v6 = vld [vmem:[%s4292_s4] sm:$0xf] }
 0x16e   :  { %v4242_v21 = vadd.f32 %v2761_v60, %v2755_v42  ;;  %v4244_v43 = vadd.f32 %v2761_v60, %v2756_v61  ;;  %v4246_v22 = vadd.f32 %v2761_v60, %v2753_v0  ;;  %v4248_v31 = vadd.f32 %v2761_v60, %v2754_v20 }
 0x170   :  { %v2769_v44 = vmax.f32 %v4242_v21, 0.0  ;;  %v2770_v23 = vmax.f32 %v4244_v43, 0.0  ;;  %v2767_v62 = vmax.f32 %v4246_v22, 0.0  ;;  %v2768_v54 = vmax.f32 %v4248_v31, 0.0 }
 0x172   :  { %v2777_v32 = vsel %vm2771_vm0, %v2769_v44, 0.0  ;;  %v2778_v63 = vsel %vm2771_vm0, %v2770_v23, 0.0  ;;  %v2772_v33 = vsel %vm2771_vm0, %v2767_v62, 0.0  ;;  %v2773_v57 = vsel %vm2771_vm0, %v2768_v54, 0.0 }
 0x173   :  { %v2779_v9 = vadd.f32 %v2778_v63, %v2777_v32  ;;  %v2774_v4 = vadd.f32 %v2773_v57, %v2772_v33 }
 0x175   :  { %2780 = vadd.xlane.f32.xlu0 %v2779_v9  ;;  %2775 = vadd.xlane.f32.xlu1 %v2774_v4 }
 0x202   :  { %v2781_v56 = vpop.xlane.xlu0 %2780  ;;  %v2776_v5 = vpop.xlane.xlu1 %2775 }
 0x203   :  { %v2783_v19 = vmul.f32 0.00390625, %v2781_v56  ;;  %v2782_v48 = vmul.f32 0.00390625, %v2776_v5 }
 0x205   :  { %v2804_v51 = vrot.slane %v2783_v19, %v3368_v53  ;;  %v2800_v3 = vrot.slane %v2782_v48, %v3368_v53  ;;  %v2788_v12 = vrot.slane %v2782_v48, %v3365_v52  ;;  %v2792_v14 = vrot.slane %v2783_v19, %v3365_v52 }
 0x206   :  { %v2820_v15 = vrot.slane %v2782_v48, %v2819_v47  ;;  %v2824_v55 = vrot.slane %v2783_v19, %v2819_v47  ;;  %v2840_v28 = vrot.slane %v2782_v48, %v2839_v59  ;;  %v2844_v1 = vrot.slane %v2783_v19, %v2839_v59 }
 0x207   :  { %v2806_v16 = vmul.f32 %v2804_v51, %v2784_v49  ;;  %v2805_v2 = vmul.f32 %v2800_v3, %v2784_v49  ;;  %v2793_v24 = vmul.f32 %v2788_v12, %v2784_v49  ;;  %v2794_v27 = vmul.f32 %v2792_v14, %v2784_v49 }
 0x208   :  { %v2825_v29 = vmul.f32 %v2820_v15, %v2784_v49  ;;  %v2826_v8 = vmul.f32 %v2824_v55, %v2784_v49  ;;  %v2845_v50 = vmul.f32 %v2840_v28, %v2784_v49  ;;  %v2846_v53 = vmul.f32 %v2844_v1, %v2784_v49 }
 0x209   :  { %2811 = vrot.lane.b32.xlu1 %v2806_v16, %s3275_s24  ;;  %2809 = vrot.lane.b32.xlu0 %v2805_v2, %s3275_s24 }
 0x20d   :  { %2829 = vrot.lane.b32.xlu1 %v2825_v29, %s3276_s3  ;;  %2831 = vrot.lane.b32.xlu0 %v2826_v8, %s3276_s3 }
 0x211   :  { %2849 = vrot.lane.b32.xlu1 %v2845_v50, %s3277_s25  ;;  %2851 = vrot.lane.b32.xlu0 %v2846_v53, %s3277_s25 }
 0x27b   :  { %v2810_v52 = vpop.permute.xlu0 %2809  ;;  %v2812_v45 = vpop.permute.xlu1 %2811 }
 0x27c   :  { %v2815_v34 = vadd.f32 %v2810_v52, %v2793_v24  ;;  %v2816_v35 = vadd.f32 %v2812_v45, %v2794_v27 }
 0x27f   :  { %v2832_v13 = vpop.permute.xlu0 %2831  ;;  %v2830_v30 = vpop.permute.xlu1 %2829 }
 0x280   :  { %v2836_v36 = vadd.f32 %v2832_v13, %v2816_v35  ;;  %v2835_v46 = vadd.f32 %v2830_v30, %v2815_v34 }
 0x283   :  { %v2852_v7 = vpop.permute.xlu0 %2851  ;;  %v2850_v25 = vpop.permute.xlu1 %2849 }
 0x284   :  { %v2856_v37 = vadd.f32 %v2852_v7, %v2836_v36  ;;  %v2855_v26 = vadd.f32 %v2850_v25, %v2835_v46 }
 0x286   :  { %v2859_v38 = vadd.f32 %v2857_v6, %v2856_v37  ;;  %v2858_v39 = vadd.f32 %v2857_v6, %v2855_v26 }
 0x288   :  { %v3044_v40 = vmul.f32 -1.442695, %v2859_v38  ;;  %v3043_v10 = vmul.f32 -1.442695, %v2858_v39 }
 0x28a   :  { %3194 = vpow2.f32 %v3044_v40 }
 0x28b   :  { %3196 = vpow2.f32 %v3043_v10 }
 0x294   :  { %v3195_v11 = vpop.eup %3194 }
 0x295   :  { %v3197_v18 = vpop.eup %3196  ;;  %v2867_v58 = vadd.f32 1.0, %v3195_v11 }
 0x296   :  { %v2866_v17 = vadd.f32 1.0, %v3197_v18 }
 0x297   :  { %3198 = vrcp.f32 %v2867_v58 }
 0x298   :  { %3200 = vrcp.f32 %v2866_v17 }
 0x2a1   :  { %v3199_v41 = vpop.eup %3198 }
 0x2a2   :  { %v3201_v60 = vpop.eup %3200  ;;  %2879 = vperm.xlu0 %3193, %v3199_v41  }
 0x2a3   :  { %2874 = vperm.xlu1 %3192, %v3201_v60  }
 0x321   :  { %v2880_v42 = vpop.permute.xlu0 %2879 }
 0x322   :  { %v2884_v61 = vmul.f32 %v2880_v42, %v2769_v44  ;;  %v2885_v0 = vmul.f32 %v2880_v42, %v2770_v23  ;;  %v2875_v20 = vpop.permute.xlu1 %2874 }
 0x323   :  { %v2882_v32 = vmul.f32 %v2875_v20, %v2767_v62  ;;  %v2883_v63 = vmul.f32 %v2875_v20, %v2768_v54 }
 0x324   :  { %v2891_v33 = vcombine.low %v2884_v61, %v2885_v0 }
 0x325   :  { %v2890_v57 = vcombine.low %v2882_v32, %v2883_v63 }
 0x326   :  { %2895 = vst [vmem:[%s4293_s5 + $0x8] sm:$0xff] %v2891_v33 }
 0x327   :  { %2894 = vst [vmem:[%s4293_s5] sm:$0xff] %v2890_v57 }

</bundles_post_ra>
